<compile_context>
chip_gen: v6e
topology: v6e:2x2x1
jax: 0.10.0
libtpu: 0.0.40
codegen_flags: <defaults>
</compile_context>

<pallas_src>
import numpy as np

import jax
import jax.numpy as jnp
from jax.experimental import pallas as pl
from jax.experimental.pallas import tpu as pltpu

IN_CHANNELS = 4
CLASSES = 5
ENC_CHANNELS = (16, 32, 64, 128)   # synthetic backbone channels at reductions 4, 8, 16, 32
REDUCTION_SCALE = 0.5

# Bicubic x2 tap weights (PyTorch F.interpolate(mode='bicubic'), a=-0.75,
# align_corners=False): fractional offsets 0.75 (even outputs) / 0.25 (odd).
_WE = (-0.03515625, 0.26171875, 0.87890625, -0.10546875)
_WO = (-0.10546875, 0.87890625, 0.26171875, -0.03515625)


# ----------------------------------------------------------------------------
# BlockSpec helpers
# ----------------------------------------------------------------------------
def _batch_spec(arr):
    """One batch element per grid step; all other dims whole."""
    nd = arr.ndim
    return pl.BlockSpec((1,) + arr.shape[1:],
                        lambda b, _nd=nd: (b,) + (0,) * (_nd - 1))


def _bcast_spec(arr):
    """Whole array, identical for every grid step (weights / constants)."""
    nd = arr.ndim
    return pl.BlockSpec(arr.shape, lambda b, _nd=nd: (0,) * _nd)


# ----------------------------------------------------------------------------
# Kernel 1: fused encoder 1x1 conv + CFR 1x1 conv (both + ReLU), batch folded
#           into the matmul M dim, two outputs, intermediate stays in VMEM.
# ----------------------------------------------------------------------------
def _enc_cfr_kernel(x_ref, we_ref, be_ref, wc_ref, bc_ref, oe_ref, oc_ref):
    f32, bf16 = jnp.float32, jnp.bfloat16
    x = x_ref[...].astype(bf16)
    ye = jnp.dot(x, we_ref[...], preferred_element_type=f32) + be_ref[0]
    ye = jnp.maximum(ye, 0.0)
    oe_ref[...] = ye.astype(oe_ref.dtype)
    yc = jnp.dot(ye.astype(bf16), wc_ref[...], preferred_element_type=f32) + bc_ref[0]
    oc_ref[...] = jnp.maximum(yc, 0.0).astype(oc_ref.dtype)


def encoder_cfr_level(x, we, be, wc, bc):
    """x: (B,h,w,Cin). Returns (encoder feature, reduced CFR feature), both bf16."""
    B, h, w, Cin = x.shape
    Ce, Cr = we.shape[1], wc.shape[1]
    M = B * h * w                            # batch folded into the matmul M dim
    xf = x.reshape(M, Cin)
    oe, oc = pl.pallas_call(
        _enc_cfr_kernel,
        out_shape=(jax.ShapeDtypeStruct((M, Ce), jnp.bfloat16),
                   jax.ShapeDtypeStruct((M, Cr), jnp.bfloat16)),
        grid=(1,),
        in_specs=[pl.BlockSpec((M, Cin), lambda i: (0, 0)),
                  pl.BlockSpec((Cin, Ce), lambda i: (0, 0)),
                  pl.BlockSpec((1, Ce), lambda i: (0, 0)),
                  pl.BlockSpec((Ce, Cr), lambda i: (0, 0)),
                  pl.BlockSpec((1, Cr), lambda i: (0, 0))],
        out_specs=(pl.BlockSpec((M, Ce), lambda i: (0, 0)),
                   pl.BlockSpec((M, Cr), lambda i: (0, 0))),
    )(xf, we, be.reshape(1, Ce), wc, bc.reshape(1, Cr))
    return oe.reshape(B, h, w, Ce), oc.reshape(B, h, w, Cr)


# ----------------------------------------------------------------------------
# Kernel 2: ONE fused decoder+head kernel (grid over batch).
#   3x [bicubic x2 + skip concat + (3x3 conv + eval-BN + ReLU) x2] + head
#   (1x1 conv to classes + bicubic x4), flattened-lane layout everywhere.
# ----------------------------------------------------------------------------
def _row_combine_relu(p, n, bias):
    """out[h] = P1[h] + P0[h-1] + P2[h+1] (zero beyond borders) + bias, ReLU.
    Row shifts are sublane slice/concat ops (no MXU), P0/P2 stay f32."""
    p0 = p[:, 0:n]
    p1 = p[:, n:2 * n]
    p2 = p[:, 2 * n:3 * n]
    zero = jnp.zeros((1, n), p.dtype)
    p0_dn = jnp.concatenate([zero, p0[:-1, :]], axis=0)   # row h <- p0[h-1]
    p2_up = jnp.concatenate([p2[1:, :], zero], axis=0)    # row h <- p2[h+1]
    return jnp.maximum(p1 + p0_dn + p2_up + bias, 0.0)


def _decoder_stage(x, skip, r_ref, ub1u_ref, b1s_ref, bias1_ref, b2_ref, bias2_ref):
    f32, bf16 = jnp.float32, jnp.bfloat16
    n1 = bias1_ref.shape[-1]
    n2 = bias2_ref.shape[-1]
    # conv1 (3x3, pad=1) over [bicubic-x2(x) | skip]; the bicubic column
    # upsample is pre-composed into ub1u, the row upsample is the tiny r matmul.
    xp = jnp.dot(x.astype(bf16), ub1u_ref[...], preferred_element_type=f32)       # (h, 3n1)
    p = (jnp.dot(r_ref[...], xp.astype(bf16), preferred_element_type=f32)
         + jnp.dot(skip.astype(bf16), b1s_ref[...], preferred_element_type=f32))  # (2h, 3n1)
    y1 = _row_combine_relu(p, n1, bias1_ref[0])
    # conv2 (3x3, pad=1) + BN + ReLU
    q = jnp.dot(y1.astype(bf16), b2_ref[...], preferred_element_type=f32)          # (2h, 3n2)
    return _row_combine_relu(q, n2, bias2_ref[0])


def _decoder_head_kernel(*refs):
    (x0_ref, s1_ref, s2_ref, s3_ref,
     r1, ub1, bs1, bb11, b21, bb21,
     r2, ub2, bs2, bb12, b22, bb22,
     r3, ub3, bs3, bb13, b23, bb23,
     dpr, rpr, bpr, o_ref) = refs
    f32, bf16 = jnp.float32, jnp.bfloat16

    y = _decoder_stage(x0_ref[0], s1_ref[0], r1, ub1, bs1, bb11, b21, bb21)
    y = _decoder_stage(y,         s2_ref[0], r2, ub2, bs2, bb12, b22, bb22)
    y = _decoder_stage(y,         s3_ref[0], r3, ub3, bs3, bb13, b23, bb23)

    # fused head: 1x1 conv to classes + bicubic x4, pre-composed to 2 matmuls
    t = jnp.dot(y.astype(bf16), dpr[...], preferred_element_type=f32)              # (h, 4w*CLS)
    out = jnp.dot(rpr[...], t.astype(bf16), preferred_element_type=f32) + bpr[0]   # (4h, 4w*CLS)
    o_ref[0] = out                                                                  # one slab store


def decoder_head(x0, skips, dec_params, head_params):
    B = x0.shape[0]
    consts = []
    for dp in dec_params:
        consts += [dp['r'], dp['ub1u'], dp['b1s'], dp['bias1'], dp['b2'], dp['bias2']]
    consts += [head_params['d'], head_params['r'], head_params['bias']]
    Ho = 4 * skips[-1].shape[1]
    n_out = head_params['bias'].shape[-1]
    return pl.pallas_call(
        _decoder_head_kernel,
        out_shape=jax.ShapeDtypeStruct((B, Ho, n_out), jnp.float32),
        grid=(B,),
        in_specs=([_batch_spec(x0)] + [_batch_spec(s) for s in skips]
                  + [_bcast_spec(c) for c in consts]),
        out_specs=pl.BlockSpec((1, Ho, n_out), lambda b: (b, 0, 0)),
        compiler_params=pltpu.CompilerParams(dimension_semantics=("parallel",)),
    )(x0, *skips, *consts)


# ----------------------------------------------------------------------------
# Parameter preparation (done once at init in f32 numpy, not in the forward)
# ----------------------------------------------------------------------------
def _up2_matrix_np(n):
    """Bicubic x2 (align_corners=False, a=-0.75, border clamp) as a
    right-multiply matrix of shape (n, 2n)."""
    u = np.zeros((n, 2 * n), np.float32)
    for j in range(n):
        for k in range(4):
            u[min(max(j - 2 + k, 0), n - 1), 2 * j] += _WE[k]       # even outputs
            u[min(max(j - 1 + k, 0), n - 1), 2 * j + 1] += _WO[k]   # odd outputs
    return u


def _conv_band_np(w, wsp, bn_scale):
    """3x3 conv weights (3,3,Cin,Cout) -> flattened-lane band matrix of shape
    (wsp*Cin, 3*wsp*Cout); columns ordered (ky, j, cout); eval-BN scale folded.
    X_flat @ band = [P0 | P1 | P2]; the row combination of P* is the conv."""
    w = np.asarray(w, np.float32) * np.asarray(bn_scale, np.float32)[None, None, None, :]
    cin, cout = w.shape[2], w.shape[3]
    # e[kx, j_in, j] = 1  iff  j_in == j + kx - 1  (zero-padding handled by drop)
    e = np.stack([np.eye(wsp, wsp, 1 - kx, dtype=np.float32) for kx in range(3)])
    t = np.einsum('xij,yxcd->icyjd', e, w)        # (j_in, cin, ky, j, cout)
    return t.reshape(wsp * cin, 3 * wsp * cout)


def _conv_init(key, shape, fan_in):
    return jax.random.normal(key, shape, jnp.float32) / jnp.sqrt(float(fan_in))


def _folded_bn(key, cout, conv_bias):
    # Eval-mode BatchNorm2d folded into (scale, bias); conv bias folded in too.
    k1, k2, k3, k4 = jax.random.split(key, 4)
    gamma = 1.0 + 0.1 * jax.random.normal(k1, (cout,), jnp.float32)
    beta = 0.1 * jax.random.normal(k2, (cout,), jnp.float32)
    mean = 0.1 * jax.random.normal(k3, (cout,), jnp.float32)
    var = jnp.abs(1.0 + 0.1 * jax.random.normal(k4, (cout,), jnp.float32))
    scale = gamma / jnp.sqrt(var + 1e-5)
    bias = beta - scale * mean + scale * conv_bias
    return scale, bias


def init_params(key, hw=(64, 64)):
    Hin, Win = hw
    ks = iter(jax.random.split(key, 64))
    p = {}

    # TODO(synk): timm resnet34 features_only backbone has no clean Pallas
    #             equivalent; replaced with a deterministic synthetic pyramid
    #             (space_to_depth + 1x1 conv + ReLU) at the same reductions.
    # TODO(synk): CFR is undefined in the reference; approximated as 1x1 conv +
    #             ReLU (fused with the encoder conv of the same level).
    enc, red_per_level = [], []
    cin = IN_CHANNELS * 16
    for cout in ENC_CHANNELS:
        we = _conv_init(next(ks), (cin, cout), cin)
        be = 0.01 * jax.random.normal(next(ks), (cout,), jnp.float32)
        cred = int(cout * REDUCTION_SCALE)
        wc = _conv_init(next(ks), (cout, cred), cout)
        bc = 0.01 * jax.random.normal(next(ks), (cred,), jnp.float32)
        enc.append((we.astype(jnp.bfloat16), be, wc.astype(jnp.bfloat16), bc))
        red_per_level.append(cred)
        cin = cout * 4
    p['enc'] = enc

    # Decoder channel bookkeeping (zip-truncated to 3 decoders, as in the reference).
    red = red_per_level[::-1]                 # deepest first: [64, 32, 16, 8]
    dec_in = red
    dec_skip = red[1:] + [0]
    dec_out = red[1:] + [int(red[-1] * 0.5)]  # [32, 16, 8, 4]
    feat_h = [Hin // r for r in (32, 16, 8, 4)]
    feat_w = [Win // r for r in (32, 16, 8, 4)]

    decs = []
    for i in range(3):
        cin_up, cskip, cout = dec_in[i], dec_skip[i], dec_out[i]
        cin_tot = cin_up + cskip
        hi, wi = feat_h[i], feat_w[i]
        ho, wo = feat_h[i + 1], feat_w[i + 1]                 # = 2*hi, 2*wi

        w1 = _conv_init(next(ks), (3, 3, cin_tot, cout), 9 * cin_tot)
        cb1 = 0.01 * jax.random.normal(next(ks), (cout,), jnp.float32)
        sc1, fb1 = _folded_bn(next(ks), cout, cb1)
        w2 = _conv_init(next(ks), (3, 3, cout, cout), 9 * cout)
        cb2 = 0.01 * jax.random.normal(next(ks), (cout,), jnp.float32)
        sc2, fb2 = _folded_bn(next(ks), cout, cb2)

        w1_np, sc1_np = np.asarray(w1), np.asarray(sc1)
        w2_np, sc2_np = np.asarray(w2), np.asarray(sc2)
        b1u = _conv_band_np(w1_np[:, :, :cin_up, :], wo, sc1_np)   # (wo*cin_up, 3*wo*cout)
        b1s = _conv_band_np(w1_np[:, :, cin_up:, :], wo, sc1_np)   # (wo*cskip,  3*wo*cout)
        b2 = _conv_band_np(w2_np, wo, sc2_np)                      # (wo*cout,   3*wo*cout)
        # pre-compose the bicubic column-upsample into conv1's up-half band (exact f32)
        u = np.kron(_up2_matrix_np(wi), np.eye(cin_up, dtype=np.float32))
        ub1u = u @ b1u                                             # (wi*cin_up, 3*wo*cout)

        decs.append(dict(
            r=jnp.asarray(_up2_matrix_np(hi).T, jnp.bfloat16),     # (2hi, hi), exact in bf16
            ub1u=jnp.asarray(ub1u, jnp.bfloat16),
            b1s=jnp.asarray(b1s, jnp.bfloat16),
            bias1=jnp.tile(fb1, (wo,)).reshape(1, wo * cout).astype(jnp.float32),
            b2=jnp.asarray(b2, jnp.bfloat16),
            bias2=jnp.tile(fb2, (wo,)).reshape(1, wo * cout).astype(jnp.float32),
        ))
    p['dec'] = decs

    # TODO(synk): Head is undefined in the reference; approximated as a 1x1 conv
    #             to `classes` followed by bicubic x4 to input resolution, all
    #             pre-composed by associativity into two constant matrices.
    ch = dec_out[2]               # channels of outputs[-1] actually produced
    h3, w3 = feat_h[3], feat_w[3]
    wh = _conv_init(next(ks), (ch, CLASSES), ch)
    bh = 0.01 * jax.random.normal(next(ks), (CLASSES,), jnp.float32)
    d = np.kron(np.eye(w3, dtype=np.float32), np.asarray(wh))               # (w3*ch, w3*CLS)
    u12 = (np.kron(_up2_matrix_np(w3), np.eye(CLASSES, dtype=np.float32))
           @ np.kron(_up2_matrix_np(2 * w3), np.eye(CLASSES, dtype=np.float32)))
    rp = _up2_matrix_np(2 * h3).T @ _up2_matrix_np(h3).T                    # (4h3, h3)
    bias_row = np.tile(np.asarray(bh), w3).reshape(1, w3 * CLASSES)
    p['head'] = dict(
        d=jnp.asarray(d @ u12, jnp.bfloat16),      # (w3*ch, 4*w3*CLS)
        r=jnp.asarray(rp, jnp.bfloat16),           # (4*h3, h3)
        bias=jnp.asarray(bias_row @ u12, jnp.float32),
    )
    return p


# ----------------------------------------------------------------------------
# Model glue
# ----------------------------------------------------------------------------
def _space_to_depth(x, f):
    B, H, W, C = x.shape
    x = x.reshape(B, H // f, f, W // f, f, C)
    return x.transpose(0, 1, 3, 2, 4, 5).reshape(B, H // f, W // f, f * f * C)


def _flatten_lanes(t):
    B, h, w, c = t.shape
    return t.reshape(B, h, w * c)     # contiguous (free) reshape


def model_forward(params, x_nchw):
    """Eval-mode forward. x_nchw: (B, C, H, W). Returns (logits NCHW, aux_loss (1,))."""
    B = x_nchw.shape[0]
    x = jnp.transpose(x_nchw, (0, 2, 3, 1)).astype(jnp.float32)   # -> NHWC

    # Encoder + CFR, one fused pallas_call per pyramid level (4 calls total).
    cfr_feats = []
    cur = x
    for (we, be, wc, bc), f in zip(params['enc'], (4, 2, 2, 2)):
        cur, red = encoder_cfr_level(_space_to_depth(cur, f), we, be, wc, bc)
        cfr_feats.append(red)
    cfr_feats = cfr_feats[::-1]       # deepest first: [/32, /16, /8, /4]

    # TODO(synk): `Block` is undefined in the reference; treated as identity
    #             with zero auxiliary loss.
    aux_loss_total = jnp.zeros((1,), jnp.float32)

    # Whole decoder path + head in ONE fused pallas_call (grid over batch),
    # flattened-lane layout (B, rows, W*C) so every store is lane-dense.
    x0 = _flatten_lanes(cfr_feats[0])
    skips = [_flatten_lanes(f_) for f_ in cfr_feats[1:]]
    logits2d = decoder_head(x0, skips, params['dec'], params['head'])   # (B, H, W*CLS)
    Hh = logits2d.shape[1]
    Wl = logits2d.shape[2] // CLASSES
    logits = logits2d.reshape(B, Hh, Wl, CLASSES)
    return jnp.transpose(logits, (0, 3, 1, 2)), aux_loss_total          # back to NCHW


if __name__ == "__main__":
    key = jax.random.PRNGKey(0)
    pkey, xkey = jax.random.split(key)

    # Smallest spatial size compatible with the /32 feature pyramid.
    B, H, W = 2, 64, 64
    params = init_params(pkey, (H, W))
    x = jax.random.normal(xkey, (B, IN_CHANNELS, H, W), jnp.float32)

    fwd = jax.jit(model_forward)
    out, aux_loss = fwd(params, x)
    jax.block_until_ready((out, aux_loss))

    assert out.shape == (B, CLASSES, H, W), out.shape
    assert aux_loss.shape == (1,), aux_loss.shape
    assert bool(jnp.all(jnp.isfinite(out))), "non-finite output"
    print("KERNEL_OK")
</pallas_src>

<mosaic_0001>
module attributes {stable_mosaic.version = 11 : i64} {
  func.func @_enc_cfr_kernel(%arg0: i32, %arg1: memref<512x64xf32, #tpu.memory_space<vmem>>, %arg2: memref<64x16xbf16, #tpu.memory_space<vmem>>, %arg3: memref<1x16xf32, #tpu.memory_space<vmem>>, %arg4: memref<16x8xbf16, #tpu.memory_space<vmem>>, %arg5: memref<1x8xf32, #tpu.memory_space<vmem>>, %arg6: memref<512x16xbf16, #tpu.memory_space<vmem>>, %arg7: memref<512x8xbf16, #tpu.memory_space<vmem>>) attributes {dimension_semantics = [#tpu.dimension_semantics<arbitrary>], iteration_bounds = array<i64: 1>, scalar_prefetch = 0 : i64, scratch_operands = 0 : i64, tpu.core_type = #tpu.core_type<tc>, window_params = [{pipeline_mode = #tpu.pipeline_mode<synchronous>, transform_indices = @transform_0, window_bounds = array<i64: 512, 64>}, {pipeline_mode = #tpu.pipeline_mode<synchronous>, transform_indices = @transform_1, window_bounds = array<i64: 64, 16>}, {pipeline_mode = #tpu.pipeline_mode<synchronous>, transform_indices = @transform_2, window_bounds = array<i64: 1, 16>}, {pipeline_mode = #tpu.pipeline_mode<synchronous>, transform_indices = @transform_3, window_bounds = array<i64: 16, 8>}, {pipeline_mode = #tpu.pipeline_mode<synchronous>, transform_indices = @transform_4, window_bounds = array<i64: 1, 8>}, {pipeline_mode = #tpu.pipeline_mode<synchronous>, transform_indices = @transform_5, window_bounds = array<i64: 512, 16>}, {pipeline_mode = #tpu.pipeline_mode<synchronous>, transform_indices = @transform_6, window_bounds = array<i64: 512, 8>}]} {
    %c0 = arith.constant 0 : index
    %c0_0 = arith.constant 0 : index
    %0 = vector.load %arg1[%c0, %c0_0] : memref<512x64xf32, #tpu.memory_space<vmem>>, vector<512x64xf32>
    %1 = arith.truncf %0 : vector<512x64xf32> to vector<512x64xbf16>
    %c0_1 = arith.constant 0 : index
    %c0_2 = arith.constant 0 : index
    %2 = vector.load %arg2[%c0_1, %c0_2] : memref<64x16xbf16, #tpu.memory_space<vmem>>, vector<64x16xbf16>
    %cst = arith.constant dense<0.000000e+00> : vector<512x16xf32>
    %3 = tpu.matmul %1, %2, %cst {dimension_numbers = #tpu.dot_dimension_numbers<[1], [0], [0], [1], [0, 0, 1, 1], [], []>} : vector<512x64xbf16>, vector<64x16xbf16>, vector<512x16xf32> -> vector<512x16xf32>
    %c0_3 = arith.constant 0 : index
    %c0_4 = arith.constant 0 : index
    %4 = vector.load %arg3[%c0_3, %c0_4] : memref<1x16xf32, #tpu.memory_space<vmem>>, vector<1x16xf32>
    %5 = vector.shape_cast %4 : vector<1x16xf32> to vector<16xf32>
    %6 = vector.shape_cast %5 : vector<16xf32> to vector<1x16xf32>
    %7 = vector.broadcast %6 : vector<1x16xf32> to vector<512x16xf32>
    %8 = arith.addf %3, %7 : vector<512x16xf32>
    %cst_5 = arith.constant 0.000000e+00 : f32
    %9 = vector.broadcast %cst_5 : f32 to vector<512x16xf32>
    %10 = arith.maximumf %8, %9 : vector<512x16xf32>
    %11 = arith.truncf %10 : vector<512x16xf32> to vector<512x16xbf16>
    %c0_6 = arith.constant 0 : index
    %c0_7 = arith.constant 0 : index
    %12 = vector.load %arg6[%c0_6, %c0_7] : memref<512x16xbf16, #tpu.memory_space<vmem>>, vector<512x16xbf16>
    tpu.vector_store %arg6[%c0_6, %c0_7], %11 {strides = array<i32>} : memref<512x16xbf16, #tpu.memory_space<vmem>>, vector<512x16xbf16>,
    %13 = arith.truncf %10 : vector<512x16xf32> to vector<512x16xbf16>
    %c0_8 = arith.constant 0 : index
    %c0_9 = arith.constant 0 : index
    %14 = vector.load %arg4[%c0_8, %c0_9] : memref<16x8xbf16, #tpu.memory_space<vmem>>, vector<16x8xbf16>
    %cst_10 = arith.constant dense<0.000000e+00> : vector<512x8xf32>
    %15 = tpu.matmul %13, %14, %cst_10 {dimension_numbers = #tpu.dot_dimension_numbers<[1], [0], [0], [1], [0, 0, 1, 1], [], []>} : vector<512x16xbf16>, vector<16x8xbf16>, vector<512x8xf32> -> vector<512x8xf32>
    %c0_11 = arith.constant 0 : index
    %c0_12 = arith.constant 0 : index
    %16 = vector.load %arg5[%c0_11, %c0_12] : memref<1x8xf32, #tpu.memory_space<vmem>>, vector<1x8xf32>
    %17 = vector.shape_cast %16 : vector<1x8xf32> to vector<8xf32>
    %18 = vector.shape_cast %17 : vector<8xf32> to vector<1x8xf32>
    %19 = vector.broadcast %18 : vector<1x8xf32> to vector<512x8xf32>
    %20 = arith.addf %15, %19 : vector<512x8xf32>
    %cst_13 = arith.constant 0.000000e+00 : f32
    %21 = vector.broadcast %cst_13 : f32 to vector<512x8xf32>
    %22 = arith.maximumf %20, %21 : vector<512x8xf32>
    %23 = arith.truncf %22 : vector<512x8xf32> to vector<512x8xbf16>
    %c0_14 = arith.constant 0 : index
    %c0_15 = arith.constant 0 : index
    %24 = vector.load %arg7[%c0_14, %c0_15] : memref<512x8xbf16, #tpu.memory_space<vmem>>, vector<512x8xbf16>
    tpu.vector_store %arg7[%c0_14, %c0_15], %23 {strides = array<i32>} : memref<512x8xbf16, #tpu.memory_space<vmem>>, vector<512x8xbf16>,
    return
  }
  func.func @transform_0(%arg0: i32) -> (i32, i32) {
    %c0_i32 = arith.constant 0 : i32
    %c0_i32_0 = arith.constant 0 : i32
    %c0_i32_1 = arith.constant 0 : i32
    return %c0_i32, %c0_i32_0 : i32, i32
  }
  func.func @transform_1(%arg0: i32) -> (i32, i32) {
    %c0_i32 = arith.constant 0 : i32
    %c0_i32_0 = arith.constant 0 : i32
    %c0_i32_1 = arith.constant 0 : i32
    return %c0_i32, %c0_i32_0 : i32, i32
  }
  func.func @transform_2(%arg0: i32) -> (i32, i32) {
    %c0_i32 = arith.constant 0 : i32
    %c0_i32_0 = arith.constant 0 : i32
    %c0_i32_1 = arith.constant 0 : i32
    return %c0_i32, %c0_i32_0 : i32, i32
  }
  func.func @transform_3(%arg0: i32) -> (i32, i32) {
    %c0_i32 = arith.constant 0 : i32
    %c0_i32_0 = arith.constant 0 : i32
    %c0_i32_1 = arith.constant 0 : i32
    return %c0_i32, %c0_i32_0 : i32, i32
  }
  func.func @transform_4(%arg0: i32) -> (i32, i32) {
    %c0_i32 = arith.constant 0 : i32
    %c0_i32_0 = arith.constant 0 : i32
    %c0_i32_1 = arith.constant 0 : i32
    return %c0_i32, %c0_i32_0 : i32, i32
  }
  func.func @transform_5(%arg0: i32) -> (i32, i32) {
    %c0_i32 = arith.constant 0 : i32
    %c0_i32_0 = arith.constant 0 : i32
    %c0_i32_1 = arith.constant 0 : i32
    return %c0_i32, %c0_i32_0 : i32, i32
  }
  func.func @transform_6(%arg0: i32) -> (i32, i32) {
    %c0_i32 = arith.constant 0 : i32
    %c0_i32_0 = arith.constant 0 : i32
    %c0_i32_1 = arith.constant 0 : i32
    return %c0_i32, %c0_i32_0 : i32, i32
  }
}

module attributes {stable_mosaic.version = 11 : i64} {
  func.func @_enc_cfr_kernel(%arg0: i32, %arg1: memref<128x64xbf16, #tpu.memory_space<vmem>>, %arg2: memref<64x32xbf16, #tpu.memory_space<vmem>>, %arg3: memref<1x32xf32, #tpu.memory_space<vmem>>, %arg4: memref<32x16xbf16, #tpu.memory_space<vmem>>, %arg5: memref<1x16xf32, #tpu.memory_space<vmem>>, %arg6: memref<128x32xbf16, #tpu.memory_space<vmem>>, %arg7: memref<128x16xbf16, #tpu.memory_space<vmem>>) attributes {dimension_semantics = [#tpu.dimension_semantics<arbitrary>], iteration_bounds = array<i64: 1>, scalar_prefetch = 0 : i64, scratch_operands = 0 : i64, tpu.core_type = #tpu.core_type<tc>, window_params = [{pipeline_mode = #tpu.pipeline_mode<synchronous>, transform_indices = @transform_0, window_bounds = array<i64: 128, 64>}, {pipeline_mode = #tpu.pipeline_mode<synchronous>, transform_indices = @transform_1, window_bounds = array<i64: 64, 32>}, {pipeline_mode = #tpu.pipeline_mode<synchronous>, transform_indices = @transform_2, window_bounds = array<i64: 1, 32>}, {pipeline_mode = #tpu.pipeline_mode<synchronous>, transform_indices = @transform_3, window_bounds = array<i64: 32, 16>}, {pipeline_mode = #tpu.pipeline_mode<synchronous>, transform_indices = @transform_4, window_bounds = array<i64: 1, 16>}, {pipeline_mode = #tpu.pipeline_mode<synchronous>, transform_indices = @transform_5, window_bounds = array<i64: 128, 32>}, {pipeline_mode = #tpu.pipeline_mode<synchronous>, transform_indices = @transform_6, window_bounds = array<i64: 128, 16>}]} {
    %c0 = arith.constant 0 : index
    %c0_0 = arith.constant 0 : index
    %0 = vector.load %arg1[%c0, %c0_0] : memref<128x64xbf16, #tpu.memory_space<vmem>>, vector<128x64xbf16>
    %c0_1 = arith.constant 0 : index
    %c0_2 = arith.constant 0 : index
    %1 = vector.load %arg2[%c0_1, %c0_2] : memref<64x32xbf16, #tpu.memory_space<vmem>>, vector<64x32xbf16>
    %cst = arith.constant dense<0.000000e+00> : vector<128x32xf32>
    %2 = tpu.matmul %0, %1, %cst {dimension_numbers = #tpu.dot_dimension_numbers<[1], [0], [0], [1], [0, 0, 1, 1], [], []>} : vector<128x64xbf16>, vector<64x32xbf16>, vector<128x32xf32> -> vector<128x32xf32>
    %c0_3 = arith.constant 0 : index
    %c0_4 = arith.constant 0 : index
    %3 = vector.load %arg3[%c0_3, %c0_4] : memref<1x32xf32, #tpu.memory_space<vmem>>, vector<1x32xf32>
    %4 = vector.shape_cast %3 : vector<1x32xf32> to vector<32xf32>
    %5 = vector.shape_cast %4 : vector<32xf32> to vector<1x32xf32>
    %6 = vector.broadcast %5 : vector<1x32xf32> to vector<128x32xf32>
    %7 = arith.addf %2, %6 : vector<128x32xf32>
    %cst_5 = arith.constant 0.000000e+00 : f32
    %8 = vector.broadcast %cst_5 : f32 to vector<128x32xf32>
    %9 = arith.maximumf %7, %8 : vector<128x32xf32>
    %10 = arith.truncf %9 : vector<128x32xf32> to vector<128x32xbf16>
    %c0_6 = arith.constant 0 : index
    %c0_7 = arith.constant 0 : index
    %11 = vector.load %arg6[%c0_6, %c0_7] : memref<128x32xbf16, #tpu.memory_space<vmem>>, vector<128x32xbf16>
    tpu.vector_store %arg6[%c0_6, %c0_7], %10 {strides = array<i32>} : memref<128x32xbf16, #tpu.memory_space<vmem>>, vector<128x32xbf16>,
    %12 = arith.truncf %9 : vector<128x32xf32> to vector<128x32xbf16>
    %c0_8 = arith.constant 0 : index
    %c0_9 = arith.constant 0 : index
    %13 = vector.load %arg4[%c0_8, %c0_9] : memref<32x16xbf16, #tpu.memory_space<vmem>>, vector<32x16xbf16>
    %cst_10 = arith.constant dense<0.000000e+00> : vector<128x16xf32>
    %14 = tpu.matmul %12, %13, %cst_10 {dimension_numbers = #tpu.dot_dimension_numbers<[1], [0], [0], [1], [0, 0, 1, 1], [], []>} : vector<128x32xbf16>, vector<32x16xbf16>, vector<128x16xf32> -> vector<128x16xf32>
    %c0_11 = arith.constant 0 : index
    %c0_12 = arith.constant 0 : index
    %15 = vector.load %arg5[%c0_11, %c0_12] : memref<1x16xf32, #tpu.memory_space<vmem>>, vector<1x16xf32>
    %16 = vector.shape_cast %15 : vector<1x16xf32> to vector<16xf32>
    %17 = vector.shape_cast %16 : vector<16xf32> to vector<1x16xf32>
    %18 = vector.broadcast %17 : vector<1x16xf32> to vector<128x16xf32>
    %19 = arith.addf %14, %18 : vector<128x16xf32>
    %cst_13 = arith.constant 0.000000e+00 : f32
    %20 = vector.broadcast %cst_13 : f32 to vector<128x16xf32>
    %21 = arith.maximumf %19, %20 : vector<128x16xf32>
    %22 = arith.truncf %21 : vector<128x16xf32> to vector<128x16xbf16>
    %c0_14 = arith.constant 0 : index
    %c0_15 = arith.constant 0 : index
    %23 = vector.load %arg7[%c0_14, %c0_15] : memref<128x16xbf16, #tpu.memory_space<vmem>>, vector<128x16xbf16>
    tpu.vector_store %arg7[%c0_14, %c0_15], %22 {strides = array<i32>} : memref<128x16xbf16, #tpu.memory_space<vmem>>, vector<128x16xbf16>,
    return
  }
  func.func @transform_0(%arg0: i32) -> (i32, i32) {
    %c0_i32 = arith.constant 0 : i32
    %c0_i32_0 = arith.constant 0 : i32
    %c0_i32_1 = arith.constant 0 : i32
    return %c0_i32, %c0_i32_0 : i32, i32
  }
  func.func @transform_1(%arg0: i32) -> (i32, i32) {
    %c0_i32 = arith.constant 0 : i32
    %c0_i32_0 = arith.constant 0 : i32
    %c0_i32_1 = arith.constant 0 : i32
    return %c0_i32, %c0_i32_0 : i32, i32
  }
  func.func @transform_2(%arg0: i32) -> (i32, i32) {
    %c0_i32 = arith.constant 0 : i32
    %c0_i32_0 = arith.constant 0 : i32
    %c0_i32_1 = arith.constant 0 : i32
    return %c0_i32, %c0_i32_0 : i32, i32
  }
  func.func @transform_3(%arg0: i32) -> (i32, i32) {
    %c0_i32 = arith.constant 0 : i32
    %c0_i32_0 = arith.constant 0 : i32
    %c0_i32_1 = arith.constant 0 : i32
    return %c0_i32, %c0_i32_0 : i32, i32
  }
  func.func @transform_4(%arg0: i32) -> (i32, i32) {
    %c0_i32 = arith.constant 0 : i32
    %c0_i32_0 = arith.constant 0 : i32
    %c0_i32_1 = arith.constant 0 : i32
    return %c0_i32, %c0_i32_0 : i32, i32
  }
  func.func @transform_5(%arg0: i32) -> (i32, i32) {
    %c0_i32 = arith.constant 0 : i32
    %c0_i32_0 = arith.constant 0 : i32
    %c0_i32_1 = arith.constant 0 : i32
    return %c0_i32, %c0_i32_0 : i32, i32
  }
  func.func @transform_6(%arg0: i32) -> (i32, i32) {
    %c0_i32 = arith.constant 0 : i32
    %c0_i32_0 = arith.constant 0 : i32
    %c0_i32_1 = arith.constant 0 : i32
    return %c0_i32, %c0_i32_0 : i32, i32
  }
}

module attributes {stable_mosaic.version = 11 : i64} {
  func.func @_enc_cfr_kernel(%arg0: i32, %arg1: memref<32x128xbf16, #tpu.memory_space<vmem>>, %arg2: memref<128x64xbf16, #tpu.memory_space<vmem>>, %arg3: memref<1x64xf32, #tpu.memory_space<vmem>>, %arg4: memref<64x32xbf16, #tpu.memory_space<vmem>>, %arg5: memref<1x32xf32, #tpu.memory_space<vmem>>, %arg6: memref<32x64xbf16, #tpu.memory_space<vmem>>, %arg7: memref<32x32xbf16, #tpu.memory_space<vmem>>) attributes {dimension_semantics = [#tpu.dimension_semantics<arbitrary>], iteration_bounds = array<i64: 1>, scalar_prefetch = 0 : i64, scratch_operands = 0 : i64, tpu.core_type = #tpu.core_type<tc>, window_params = [{pipeline_mode = #tpu.pipeline_mode<synchronous>, transform_indices = @transform_0, window_bounds = array<i64: 32, 128>}, {pipeline_mode = #tpu.pipeline_mode<synchronous>, transform_indices = @transform_1, window_bounds = array<i64: 128, 64>}, {pipeline_mode = #tpu.pipeline_mode<synchronous>, transform_indices = @transform_2, window_bounds = array<i64: 1, 64>}, {pipeline_mode = #tpu.pipeline_mode<synchronous>, transform_indices = @transform_3, window_bounds = array<i64: 64, 32>}, {pipeline_mode = #tpu.pipeline_mode<synchronous>, transform_indices = @transform_4, window_bounds = array<i64: 1, 32>}, {pipeline_mode = #tpu.pipeline_mode<synchronous>, transform_indices = @transform_5, window_bounds = array<i64: 32, 64>}, {pipeline_mode = #tpu.pipeline_mode<synchronous>, transform_indices = @transform_6, window_bounds = array<i64: 32, 32>}]} {
    %c0 = arith.constant 0 : index
    %c0_0 = arith.constant 0 : index
    %0 = vector.load %arg1[%c0, %c0_0] : memref<32x128xbf16, #tpu.memory_space<vmem>>, vector<32x128xbf16>
    %c0_1 = arith.constant 0 : index
    %c0_2 = arith.constant 0 : index
    %1 = vector.load %arg2[%c0_1, %c0_2] : memref<128x64xbf16, #tpu.memory_space<vmem>>, vector<128x64xbf16>
    %cst = arith.constant dense<0.000000e+00> : vector<32x64xf32>
    %2 = tpu.matmul %0, %1, %cst {dimension_numbers = #tpu.dot_dimension_numbers<[1], [0], [0], [1], [0, 0, 1, 1], [], []>} : vector<32x128xbf16>, vector<128x64xbf16>, vector<32x64xf32> -> vector<32x64xf32>
    %c0_3 = arith.constant 0 : index
    %c0_4 = arith.constant 0 : index
    %3 = vector.load %arg3[%c0_3, %c0_4] : memref<1x64xf32, #tpu.memory_space<vmem>>, vector<1x64xf32>
    %4 = vector.shape_cast %3 : vector<1x64xf32> to vector<64xf32>
    %5 = vector.shape_cast %4 : vector<64xf32> to vector<1x64xf32>
    %6 = vector.broadcast %5 : vector<1x64xf32> to vector<32x64xf32>
    %7 = arith.addf %2, %6 : vector<32x64xf32>
    %cst_5 = arith.constant 0.000000e+00 : f32
    %8 = vector.broadcast %cst_5 : f32 to vector<32x64xf32>
    %9 = arith.maximumf %7, %8 : vector<32x64xf32>
    %10 = arith.truncf %9 : vector<32x64xf32> to vector<32x64xbf16>
    %c0_6 = arith.constant 0 : index
    %c0_7 = arith.constant 0 : index
    %11 = vector.load %arg6[%c0_6, %c0_7] : memref<32x64xbf16, #tpu.memory_space<vmem>>, vector<32x64xbf16>
    tpu.vector_store %arg6[%c0_6, %c0_7], %10 {strides = array<i32>} : memref<32x64xbf16, #tpu.memory_space<vmem>>, vector<32x64xbf16>,
    %12 = arith.truncf %9 : vector<32x64xf32> to vector<32x64xbf16>
    %c0_8 = arith.constant 0 : index
    %c0_9 = arith.constant 0 : index
    %13 = vector.load %arg4[%c0_8, %c0_9] : memref<64x32xbf16, #tpu.memory_space<vmem>>, vector<64x32xbf16>
    %cst_10 = arith.constant dense<0.000000e+00> : vector<32x32xf32>
    %14 = tpu.matmul %12, %13, %cst_10 {dimension_numbers = #tpu.dot_dimension_numbers<[1], [0], [0], [1], [0, 0, 1, 1], [], []>} : vector<32x64xbf16>, vector<64x32xbf16>, vector<32x32xf32> -> vector<32x32xf32>
    %c0_11 = arith.constant 0 : index
    %c0_12 = arith.constant 0 : index
    %15 = vector.load %arg5[%c0_11, %c0_12] : memref<1x32xf32, #tpu.memory_space<vmem>>, vector<1x32xf32>
    %16 = vector.shape_cast %15 : vector<1x32xf32> to vector<32xf32>
    %17 = vector.shape_cast %16 : vector<32xf32> to vector<1x32xf32>
    %18 = vector.broadcast %17 : vector<1x32xf32> to vector<32x32xf32>
    %19 = arith.addf %14, %18 : vector<32x32xf32>
    %cst_13 = arith.constant 0.000000e+00 : f32
    %20 = vector.broadcast %cst_13 : f32 to vector<32x32xf32>
    %21 = arith.maximumf %19, %20 : vector<32x32xf32>
    %22 = arith.truncf %21 : vector<32x32xf32> to vector<32x32xbf16>
    %c0_14 = arith.constant 0 : index
    %c0_15 = arith.constant 0 : index
    %23 = vector.load %arg7[%c0_14, %c0_15] : memref<32x32xbf16, #tpu.memory_space<vmem>>, vector<32x32xbf16>
    tpu.vector_store %arg7[%c0_14, %c0_15], %22 {strides = array<i32>} : memref<32x32xbf16, #tpu.memory_space<vmem>>, vector<32x32xbf16>,
    return
  }
  func.func @transform_0(%arg0: i32) -> (i32, i32) {
    %c0_i32 = arith.constant 0 : i32
    %c0_i32_0 = arith.constant 0 : i32
    %c0_i32_1 = arith.constant 0 : i32
    return %c0_i32, %c0_i32_0 : i32, i32
  }
  func.func @transform_1(%arg0: i32) -> (i32, i32) {
    %c0_i32 = arith.constant 0 : i32
    %c0_i32_0 = arith.constant 0 : i32
    %c0_i32_1 = arith.constant 0 : i32
    return %c0_i32, %c0_i32_0 : i32, i32
  }
  func.func @transform_2(%arg0: i32) -> (i32, i32) {
    %c0_i32 = arith.constant 0 : i32
    %c0_i32_0 = arith.constant 0 : i32
    %c0_i32_1 = arith.constant 0 : i32
    return %c0_i32, %c0_i32_0 : i32, i32
  }
  func.func @transform_3(%arg0: i32) -> (i32, i32) {
    %c0_i32 = arith.constant 0 : i32
    %c0_i32_0 = arith.constant 0 : i32
    %c0_i32_1 = arith.constant 0 : i32
    return %c0_i32, %c0_i32_0 : i32, i32
  }
  func.func @transform_4(%arg0: i32) -> (i32, i32) {
    %c0_i32 = arith.constant 0 : i32
    %c0_i32_0 = arith.constant 0 : i32
    %c0_i32_1 = arith.constant 0 : i32
    return %c0_i32, %c0_i32_0 : i32, i32
  }
  func.func @transform_5(%arg0: i32) -> (i32, i32) {
    %c0_i32 = arith.constant 0 : i32
    %c0_i32_0 = arith.constant 0 : i32
    %c0_i32_1 = arith.constant 0 : i32
    return %c0_i32, %c0_i32_0 : i32, i32
  }
  func.func @transform_6(%arg0: i32) -> (i32, i32) {
    %c0_i32 = arith.constant 0 : i32
    %c0_i32_0 = arith.constant 0 : i32
    %c0_i32_1 = arith.constant 0 : i32
    return %c0_i32, %c0_i32_0 : i32, i32
  }
}

module attributes {stable_mosaic.version = 11 : i64} {
  func.func @_enc_cfr_kernel(%arg0: i32, %arg1: memref<8x256xbf16, #tpu.memory_space<vmem>>, %arg2: memref<256x128xbf16, #tpu.memory_space<vmem>>, %arg3: memref<1x128xf32, #tpu.memory_space<vmem>>, %arg4: memref<128x64xbf16, #tpu.memory_space<vmem>>, %arg5: memref<1x64xf32, #tpu.memory_space<vmem>>, %arg6: memref<8x128xbf16, #tpu.memory_space<vmem>>, %arg7: memref<8x64xbf16, #tpu.memory_space<vmem>>) attributes {dimension_semantics = [#tpu.dimension_semantics<arbitrary>], iteration_bounds = array<i64: 1>, scalar_prefetch = 0 : i64, scratch_operands = 0 : i64, tpu.core_type = #tpu.core_type<tc>, window_params = [{pipeline_mode = #tpu.pipeline_mode<synchronous>, transform_indices = @transform_0, window_bounds = array<i64: 8, 256>}, {pipeline_mode = #tpu.pipeline_mode<synchronous>, transform_indices = @transform_1, window_bounds = array<i64: 256, 128>}, {pipeline_mode = #tpu.pipeline_mode<synchronous>, transform_indices = @transform_2, window_bounds = array<i64: 1, 128>}, {pipeline_mode = #tpu.pipeline_mode<synchronous>, transform_indices = @transform_3, window_bounds = array<i64: 128, 64>}, {pipeline_mode = #tpu.pipeline_mode<synchronous>, transform_indices = @transform_4, window_bounds = array<i64: 1, 64>}, {pipeline_mode = #tpu.pipeline_mode<synchronous>, transform_indices = @transform_5, window_bounds = array<i64: 8, 128>}, {pipeline_mode = #tpu.pipeline_mode<synchronous>, transform_indices = @transform_6, window_bounds = array<i64: 8, 64>}]} {
    %c0 = arith.constant 0 : index
    %c0_0 = arith.constant 0 : index
    %0 = vector.load %arg1[%c0, %c0_0] : memref<8x256xbf16, #tpu.memory_space<vmem>>, vector<8x256xbf16>
    %c0_1 = arith.constant 0 : index
    %c0_2 = arith.constant 0 : index
    %1 = vector.load %arg2[%c0_1, %c0_2] : memref<256x128xbf16, #tpu.memory_space<vmem>>, vector<256x128xbf16>
    %cst = arith.constant dense<0.000000e+00> : vector<8x128xf32>
    %2 = tpu.matmul %0, %1, %cst {dimension_numbers = #tpu.dot_dimension_numbers<[1], [0], [0], [1], [0, 0, 1, 1], [], []>} : vector<8x256xbf16>, vector<256x128xbf16>, vector<8x128xf32> -> vector<8x128xf32>
    %c0_3 = arith.constant 0 : index
    %c0_4 = arith.constant 0 : index
    %3 = vector.load %arg3[%c0_3, %c0_4] : memref<1x128xf32, #tpu.memory_space<vmem>>, vector<1x128xf32>
    %4 = vector.shape_cast %3 : vector<1x128xf32> to vector<128xf32>
    %5 = vector.shape_cast %4 : vector<128xf32> to vector<1x128xf32>
    %6 = vector.broadcast %5 : vector<1x128xf32> to vector<8x128xf32>
    %7 = arith.addf %2, %6 : vector<8x128xf32>
    %cst_5 = arith.constant 0.000000e+00 : f32
    %8 = vector.broadcast %cst_5 : f32 to vector<8x128xf32>
    %9 = arith.maximumf %7, %8 : vector<8x128xf32>
    %10 = arith.truncf %9 : vector<8x128xf32> to vector<8x128xbf16>
    %c0_6 = arith.constant 0 : index
    %c0_7 = arith.constant 0 : index
    %11 = vector.load %arg6[%c0_6, %c0_7] : memref<8x128xbf16, #tpu.memory_space<vmem>>, vector<8x128xbf16>
    tpu.vector_store %arg6[%c0_6, %c0_7], %10 {strides = array<i32>} : memref<8x128xbf16, #tpu.memory_space<vmem>>, vector<8x128xbf16>,
    %12 = arith.truncf %9 : vector<8x128xf32> to vector<8x128xbf16>
    %c0_8 = arith.constant 0 : index
    %c0_9 = arith.constant 0 : index
    %13 = vector.load %arg4[%c0_8, %c0_9] : memref<128x64xbf16, #tpu.memory_space<vmem>>, vector<128x64xbf16>
    %cst_10 = arith.constant dense<0.000000e+00> : vector<8x64xf32>
    %14 = tpu.matmul %12, %13, %cst_10 {dimension_numbers = #tpu.dot_dimension_numbers<[1], [0], [0], [1], [0, 0, 1, 1], [], []>} : vector<8x128xbf16>, vector<128x64xbf16>, vector<8x64xf32> -> vector<8x64xf32>
    %c0_11 = arith.constant 0 : index
    %c0_12 = arith.constant 0 : index
    %15 = vector.load %arg5[%c0_11, %c0_12] : memref<1x64xf32, #tpu.memory_space<vmem>>, vector<1x64xf32>
    %16 = vector.shape_cast %15 : vector<1x64xf32> to vector<64xf32>
    %17 = vector.shape_cast %16 : vector<64xf32> to vector<1x64xf32>
    %18 = vector.broadcast %17 : vector<1x64xf32> to vector<8x64xf32>
    %19 = arith.addf %14, %18 : vector<8x64xf32>
    %cst_13 = arith.constant 0.000000e+00 : f32
    %20 = vector.broadcast %cst_13 : f32 to vector<8x64xf32>
    %21 = arith.maximumf %19, %20 : vector<8x64xf32>
    %22 = arith.truncf %21 : vector<8x64xf32> to vector<8x64xbf16>
    %c0_14 = arith.constant 0 : index
    %c0_15 = arith.constant 0 : index
    %23 = vector.load %arg7[%c0_14, %c0_15] : memref<8x64xbf16, #tpu.memory_space<vmem>>, vector<8x64xbf16>
    tpu.vector_store %arg7[%c0_14, %c0_15], %22 {strides = array<i32>} : memref<8x64xbf16, #tpu.memory_space<vmem>>, vector<8x64xbf16>,
    return
  }
  func.func @transform_0(%arg0: i32) -> (i32, i32) {
    %c0_i32 = arith.constant 0 : i32
    %c0_i32_0 = arith.constant 0 : i32
    %c0_i32_1 = arith.constant 0 : i32
    return %c0_i32, %c0_i32_0 : i32, i32
  }
  func.func @transform_1(%arg0: i32) -> (i32, i32) {
    %c0_i32 = arith.constant 0 : i32
    %c0_i32_0 = arith.constant 0 : i32
    %c0_i32_1 = arith.constant 0 : i32
    return %c0_i32, %c0_i32_0 : i32, i32
  }
  func.func @transform_2(%arg0: i32) -> (i32, i32) {
    %c0_i32 = arith.constant 0 : i32
    %c0_i32_0 = arith.constant 0 : i32
    %c0_i32_1 = arith.constant 0 : i32
    return %c0_i32, %c0_i32_0 : i32, i32
  }
  func.func @transform_3(%arg0: i32) -> (i32, i32) {
    %c0_i32 = arith.constant 0 : i32
    %c0_i32_0 = arith.constant 0 : i32
    %c0_i32_1 = arith.constant 0 : i32
    return %c0_i32, %c0_i32_0 : i32, i32
  }
  func.func @transform_4(%arg0: i32) -> (i32, i32) {
    %c0_i32 = arith.constant 0 : i32
    %c0_i32_0 = arith.constant 0 : i32
    %c0_i32_1 = arith.constant 0 : i32
    return %c0_i32, %c0_i32_0 : i32, i32
  }
  func.func @transform_5(%arg0: i32) -> (i32, i32) {
    %c0_i32 = arith.constant 0 : i32
    %c0_i32_0 = arith.constant 0 : i32
    %c0_i32_1 = arith.constant 0 : i32
    return %c0_i32, %c0_i32_0 : i32, i32
  }
  func.func @transform_6(%arg0: i32) -> (i32, i32) {
    %c0_i32 = arith.constant 0 : i32
    %c0_i32_0 = arith.constant 0 : i32
    %c0_i32_1 = arith.constant 0 : i32
    return %c0_i32, %c0_i32_0 : i32, i32
  }
}

module attributes {stable_mosaic.version = 11 : i64} {
  func.func @_decoder_head_kernel(%arg0: i32, %arg1: memref<1x2x128xbf16, #tpu.memory_space<vmem>>, %arg2: memref<1x4x128xbf16, #tpu.memory_space<vmem>>, %arg3: memref<1x8x128xbf16, #tpu.memory_space<vmem>>, %arg4: memref<1x16x128xbf16, #tpu.memory_space<vmem>>, %arg5: memref<4x2xbf16, #tpu.memory_space<vmem>>, %arg6: memref<128x384xbf16, #tpu.memory_space<vmem>>, %arg7: memref<128x384xbf16, #tpu.memory_space<vmem>>, %arg8: memref<1x128xf32, #tpu.memory_space<vmem>>, %arg9: memref<128x384xbf16, #tpu.memory_space<vmem>>, %arg10: memref<1x128xf32, #tpu.memory_space<vmem>>, %arg11: memref<8x4xbf16, #tpu.memory_space<vmem>>, %arg12: memref<128x384xbf16, #tpu.memory_space<vmem>>, %arg13: memref<128x384xbf16, #tpu.memory_space<vmem>>, %arg14: memref<1x128xf32, #tpu.memory_space<vmem>>, %arg15: memref<128x384xbf16, #tpu.memory_space<vmem>>, %arg16: memref<1x128xf32, #tpu.memory_space<vmem>>, %arg17: memref<16x8xbf16, #tpu.memory_space<vmem>>, %arg18: memref<128x384xbf16, #tpu.memory_space<vmem>>, %arg19: memref<128x384xbf16, #tpu.memory_space<vmem>>, %arg20: memref<1x128xf32, #tpu.memory_space<vmem>>, %arg21: memref<128x384xbf16, #tpu.memory_space<vmem>>, %arg22: memref<1x128xf32, #tpu.memory_space<vmem>>, %arg23: memref<128x320xbf16, #tpu.memory_space<vmem>>, %arg24: memref<64x16xbf16, #tpu.memory_space<vmem>>, %arg25: memref<1x320xf32, #tpu.memory_space<vmem>>, %arg26: memref<1x64x320xf32, #tpu.memory_space<vmem>>) attributes {dimension_semantics = [#tpu.dimension_semantics<parallel>], iteration_bounds = array<i64: 2>, scalar_prefetch = 0 : i64, scratch_operands = 0 : i64, tpu.core_type = #tpu.core_type<tc>, window_params = [{transform_indices = @transform_0, window_bounds = array<i64: 1, 2, 128>}, {transform_indices = @transform_1, window_bounds = array<i64: 1, 4, 128>}, {transform_indices = @transform_2, window_bounds = array<i64: 1, 8, 128>}, {transform_indices = @transform_3, window_bounds = array<i64: 1, 16, 128>}, {pipeline_mode = #tpu.pipeline_mode<synchronous>, transform_indices = @transform_4, window_bounds = array<i64: 4, 2>}, {pipeline_mode = #tpu.pipeline_mode<synchronous>, transform_indices = @transform_5, window_bounds = array<i64: 128, 384>}, {pipeline_mode = #tpu.pipeline_mode<synchronous>, transform_indices = @transform_6, window_bounds = array<i64: 128, 384>}, {pipeline_mode = #tpu.pipeline_mode<synchronous>, transform_indices = @transform_7, window_bounds = array<i64: 1, 128>}, {pipeline_mode = #tpu.pipeline_mode<synchronous>, transform_indices = @transform_8, window_bounds = array<i64: 128, 384>}, {pipeline_mode = #tpu.pipeline_mode<synchronous>, transform_indices = @transform_9, window_bounds = array<i64: 1, 128>}, {pipeline_mode = #tpu.pipeline_mode<synchronous>, transform_indices = @transform_10, window_bounds = array<i64: 8, 4>}, {pipeline_mode = #tpu.pipeline_mode<synchronous>, transform_indices = @transform_11, window_bounds = array<i64: 128, 384>}, {pipeline_mode = #tpu.pipeline_mode<synchronous>, transform_indices = @transform_12, window_bounds = array<i64: 128, 384>}, {pipeline_mode = #tpu.pipeline_mode<synchronous>, transform_indices = @transform_13, window_bounds = array<i64: 1, 128>}, {pipeline_mode = #tpu.pipeline_mode<synchronous>, transform_indices = @transform_14, window_bounds = array<i64: 128, 384>}, {pipeline_mode = #tpu.pipeline_mode<synchronous>, transform_indices = @transform_15, window_bounds = array<i64: 1, 128>}, {pipeline_mode = #tpu.pipeline_mode<synchronous>, transform_indices = @transform_16, window_bounds = array<i64: 16, 8>}, {pipeline_mode = #tpu.pipeline_mode<synchronous>, transform_indices = @transform_17, window_bounds = array<i64: 128, 384>}, {pipeline_mode = #tpu.pipeline_mode<synchronous>, transform_indices = @transform_18, window_bounds = array<i64: 128, 384>}, {pipeline_mode = #tpu.pipeline_mode<synchronous>, transform_indices = @transform_19, window_bounds = array<i64: 1, 128>}, {pipeline_mode = #tpu.pipeline_mode<synchronous>, transform_indices = @transform_20, window_bounds = array<i64: 128, 384>}, {pipeline_mode = #tpu.pipeline_mode<synchronous>, transform_indices = @transform_21, window_bounds = array<i64: 1, 128>}, {pipeline_mode = #tpu.pipeline_mode<synchronous>, transform_indices = @transform_22, window_bounds = array<i64: 128, 320>}, {pipeline_mode = #tpu.pipeline_mode<synchronous>, transform_indices = @transform_23, window_bounds = array<i64: 64, 16>}, {pipeline_mode = #tpu.pipeline_mode<synchronous>, transform_indices = @transform_24, window_bounds = array<i64: 1, 320>}, {transform_indices = @transform_25, window_bounds = array<i64: 1, 64, 320>}]} {
    %c0 = arith.constant 0 : index
    %c0_0 = arith.constant 0 : index
    %c0_1 = arith.constant 0 : index
    %0 = vector.load %arg1[%c0, %c0_0, %c0_1] : memref<1x2x128xbf16, #tpu.memory_space<vmem>>, vector<1x2x128xbf16>
    %1 = vector.shape_cast %0 : vector<1x2x128xbf16> to vector<2x128xbf16>
    %c0_2 = arith.constant 0 : index
    %c0_3 = arith.constant 0 : index
    %c0_4 = arith.constant 0 : index
    %2 = vector.load %arg2[%c0_2, %c0_3, %c0_4] : memref<1x4x128xbf16, #tpu.memory_space<vmem>>, vector<1x4x128xbf16>
    %3 = vector.shape_cast %2 : vector<1x4x128xbf16> to vector<4x128xbf16>
    %c0_5 = arith.constant 0 : index
    %c0_6 = arith.constant 0 : index
    %4 = vector.load %arg6[%c0_5, %c0_6] : memref<128x384xbf16, #tpu.memory_space<vmem>>, vector<128x384xbf16>
    %cst = arith.constant dense<0.000000e+00> : vector<2x384xf32>
    %5 = tpu.matmul %1, %4, %cst {dimension_numbers = #tpu.dot_dimension_numbers<[1], [0], [0], [1], [0, 0, 1, 1], [], []>} : vector<2x128xbf16>, vector<128x384xbf16>, vector<2x384xf32> -> vector<2x384xf32>
    %c0_7 = arith.constant 0 : index
    %c0_8 = arith.constant 0 : index
    %6 = vector.load %arg5[%c0_7, %c0_8] : memref<4x2xbf16, #tpu.memory_space<vmem>>, vector<4x2xbf16>
    %7 = arith.truncf %5 : vector<2x384xf32> to vector<2x384xbf16>
    %cst_9 = arith.constant dense<0.000000e+00> : vector<4x384xf32>
    %8 = tpu.matmul %6, %7, %cst_9 {dimension_numbers = #tpu.dot_dimension_numbers<[1], [0], [0], [1], [0, 0, 1, 1], [], []>} : vector<4x2xbf16>, vector<2x384xbf16>, vector<4x384xf32> -> vector<4x384xf32>
    %c0_10 = arith.constant 0 : index
    %c0_11 = arith.constant 0 : index
    %9 = vector.load %arg7[%c0_10, %c0_11] : memref<128x384xbf16, #tpu.memory_space<vmem>>, vector<128x384xbf16>
    %cst_12 = arith.constant dense<0.000000e+00> : vector<4x384xf32>
    %10 = tpu.matmul %3, %9, %cst_12 {dimension_numbers = #tpu.dot_dimension_numbers<[1], [0], [0], [1], [0, 0, 1, 1], [], []>} : vector<4x128xbf16>, vector<128x384xbf16>, vector<4x384xf32> -> vector<4x384xf32>
    %11 = arith.addf %8, %10 : vector<4x384xf32>
    %c0_13 = arith.constant 0 : index
    %c0_14 = arith.constant 0 : index
    %12 = vector.load %arg8[%c0_13, %c0_14] : memref<1x128xf32, #tpu.memory_space<vmem>>, vector<1x128xf32>
    %13 = vector.shape_cast %12 : vector<1x128xf32> to vector<128xf32>
    %14 = vector.extract_strided_slice %11 {offsets = [0, 0], sizes = [4, 128], strides = [1, 1]} : vector<4x384xf32> to vector<4x128xf32>
    %15 = vector.extract_strided_slice %11 {offsets = [0, 128], sizes = [4, 128], strides = [1, 1]} : vector<4x384xf32> to vector<4x128xf32>
    %16 = vector.extract_strided_slice %11 {offsets = [0, 256], sizes = [4, 128], strides = [1, 1]} : vector<4x384xf32> to vector<4x128xf32>
    %cst_15 = arith.constant 0.000000e+00 : f32
    %17 = vector.broadcast %cst_15 : f32 to vector<1x128xf32>
    %18 = vector.extract_strided_slice %14 {offsets = [0, 0], sizes = [3, 128], strides = [1, 1]} : vector<4x128xf32> to vector<3x128xf32>
    %19 = tpu.concatenate %17, %18 in 0 : vector<1x128xf32>, vector<3x128xf32> -> vector<4x128xf32>
    %20 = vector.extract_strided_slice %16 {offsets = [1, 0], sizes = [3, 128], strides = [1, 1]} : vector<4x128xf32> to vector<3x128xf32>
    %21 = tpu.concatenate %20, %17 in 0 : vector<3x128xf32>, vector<1x128xf32> -> vector<4x128xf32>
    %22 = arith.addf %15, %19 : vector<4x128xf32>
    %23 = arith.addf %22, %21 : vector<4x128xf32>
    %24 = vector.shape_cast %13 : vector<128xf32> to vector<1x128xf32>
    %25 = vector.broadcast %24 : vector<1x128xf32> to vector<4x128xf32>
    %26 = arith.addf %23, %25 : vector<4x128xf32>
    %cst_16 = arith.constant 0.000000e+00 : f32
    %27 = vector.broadcast %cst_16 : f32 to vector<4x128xf32>
    %28 = arith.maximumf %26, %27 : vector<4x128xf32>
    %29 = arith.truncf %28 : vector<4x128xf32> to vector<4x128xbf16>
    %c0_17 = arith.constant 0 : index
    %c0_18 = arith.constant 0 : index
    %30 = vector.load %arg9[%c0_17, %c0_18] : memref<128x384xbf16, #tpu.memory_space<vmem>>, vector<128x384xbf16>
    %cst_19 = arith.constant dense<0.000000e+00> : vector<4x384xf32>
    %31 = tpu.matmul %29, %30, %cst_19 {dimension_numbers = #tpu.dot_dimension_numbers<[1], [0], [0], [1], [0, 0, 1, 1], [], []>} : vector<4x128xbf16>, vector<128x384xbf16>, vector<4x384xf32> -> vector<4x384xf32>
    %c0_20 = arith.constant 0 : index
    %c0_21 = arith.constant 0 : index
    %32 = vector.load %arg10[%c0_20, %c0_21] : memref<1x128xf32, #tpu.memory_space<vmem>>, vector<1x128xf32>
    %33 = vector.shape_cast %32 : vector<1x128xf32> to vector<128xf32>
    %34 = vector.extract_strided_slice %31 {offsets = [0, 0], sizes = [4, 128], strides = [1, 1]} : vector<4x384xf32> to vector<4x128xf32>
    %35 = vector.extract_strided_slice %31 {offsets = [0, 128], sizes = [4, 128], strides = [1, 1]} : vector<4x384xf32> to vector<4x128xf32>
    %36 = vector.extract_strided_slice %31 {offsets = [0, 256], sizes = [4, 128], strides = [1, 1]} : vector<4x384xf32> to vector<4x128xf32>
    %cst_22 = arith.constant 0.000000e+00 : f32
    %37 = vector.broadcast %cst_22 : f32 to vector<1x128xf32>
    %38 = vector.extract_strided_slice %34 {offsets = [0, 0], sizes = [3, 128], strides = [1, 1]} : vector<4x128xf32> to vector<3x128xf32>
    %39 = tpu.concatenate %37, %38 in 0 : vector<1x128xf32>, vector<3x128xf32> -> vector<4x128xf32>
    %40 = vector.extract_strided_slice %36 {offsets = [1, 0], sizes = [3, 128], strides = [1, 1]} : vector<4x128xf32> to vector<3x128xf32>
    %41 = tpu.concatenate %40, %37 in 0 : vector<3x128xf32>, vector<1x128xf32> -> vector<4x128xf32>
    %42 = arith.addf %35, %39 : vector<4x128xf32>
    %43 = arith.addf %42, %41 : vector<4x128xf32>
    %44 = vector.shape_cast %33 : vector<128xf32> to vector<1x128xf32>
    %45 = vector.broadcast %44 : vector<1x128xf32> to vector<4x128xf32>
    %46 = arith.addf %43, %45 : vector<4x128xf32>
    %cst_23 = arith.constant 0.000000e+00 : f32
    %47 = vector.broadcast %cst_23 : f32 to vector<4x128xf32>
    %48 = arith.maximumf %46, %47 : vector<4x128xf32>
    %c0_24 = arith.constant 0 : index
    %c0_25 = arith.constant 0 : index
    %c0_26 = arith.constant 0 : index
    %49 = vector.load %arg3[%c0_24, %c0_25, %c0_26] : memref<1x8x128xbf16, #tpu.memory_space<vmem>>, vector<1x8x128xbf16>
    %50 = vector.shape_cast %49 : vector<1x8x128xbf16> to vector<8x128xbf16>
    %51 = arith.truncf %48 : vector<4x128xf32> to vector<4x128xbf16>
    %c0_27 = arith.constant 0 : index
    %c0_28 = arith.constant 0 : index
    %52 = vector.load %arg12[%c0_27, %c0_28] : memref<128x384xbf16, #tpu.memory_space<vmem>>, vector<128x384xbf16>
    %cst_29 = arith.constant dense<0.000000e+00> : vector<4x384xf32>
    %53 = tpu.matmul %51, %52, %cst_29 {dimension_numbers = #tpu.dot_dimension_numbers<[1], [0], [0], [1], [0, 0, 1, 1], [], []>} : vector<4x128xbf16>, vector<128x384xbf16>, vector<4x384xf32> -> vector<4x384xf32>
    %c0_30 = arith.constant 0 : index
    %c0_31 = arith.constant 0 : index
    %54 = vector.load %arg11[%c0_30, %c0_31] : memref<8x4xbf16, #tpu.memory_space<vmem>>, vector<8x4xbf16>
    %55 = arith.truncf %53 : vector<4x384xf32> to vector<4x384xbf16>
    %cst_32 = arith.constant dense<0.000000e+00> : vector<8x384xf32>
    %56 = tpu.matmul %54, %55, %cst_32 {dimension_numbers = #tpu.dot_dimension_numbers<[1], [0], [0], [1], [0, 0, 1, 1], [], []>} : vector<8x4xbf16>, vector<4x384xbf16>, vector<8x384xf32> -> vector<8x384xf32>
    %c0_33 = arith.constant 0 : index
    %c0_34 = arith.constant 0 : index
    %57 = vector.load %arg13[%c0_33, %c0_34] : memref<128x384xbf16, #tpu.memory_space<vmem>>, vector<128x384xbf16>
    %cst_35 = arith.constant dense<0.000000e+00> : vector<8x384xf32>
    %58 = tpu.matmul %50, %57, %cst_35 {dimension_numbers = #tpu.dot_dimension_numbers<[1], [0], [0], [1], [0, 0, 1, 1], [], []>} : vector<8x128xbf16>, vector<128x384xbf16>, vector<8x384xf32> -> vector<8x384xf32>
    %59 = arith.addf %56, %58 : vector<8x384xf32>
    %c0_36 = arith.constant 0 : index
    %c0_37 = arith.constant 0 : index
    %60 = vector.load %arg14[%c0_36, %c0_37] : memref<1x128xf32, #tpu.memory_space<vmem>>, vector<1x128xf32>
    %61 = vector.shape_cast %60 : vector<1x128xf32> to vector<128xf32>
    %62 = vector.extract_strided_slice %59 {offsets = [0, 0], sizes = [8, 128], strides = [1, 1]} : vector<8x384xf32> to vector<8x128xf32>
    %63 = vector.extract_strided_slice %59 {offsets = [0, 128], sizes = [8, 128], strides = [1, 1]} : vector<8x384xf32> to vector<8x128xf32>
    %64 = vector.extract_strided_slice %59 {offsets = [0, 256], sizes = [8, 128], strides = [1, 1]} : vector<8x384xf32> to vector<8x128xf32>
    %cst_38 = arith.constant 0.000000e+00 : f32
    %65 = vector.broadcast %cst_38 : f32 to vector<1x128xf32>
    %66 = vector.extract_strided_slice %62 {offsets = [0, 0], sizes = [7, 128], strides = [1, 1]} : vector<8x128xf32> to vector<7x128xf32>
    %67 = tpu.concatenate %65, %66 in 0 : vector<1x128xf32>, vector<7x128xf32> -> vector<8x128xf32>
    %68 = vector.extract_strided_slice %64 {offsets = [1, 0], sizes = [7, 128], strides = [1, 1]} : vector<8x128xf32> to vector<7x128xf32>
    %69 = tpu.concatenate %68, %65 in 0 : vector<7x128xf32>, vector<1x128xf32> -> vector<8x128xf32>
    %70 = arith.addf %63, %67 : vector<8x128xf32>
    %71 = arith.addf %70, %69 : vector<8x128xf32>
    %72 = vector.shape_cast %61 : vector<128xf32> to vector<1x128xf32>
    %73 = vector.broadcast %72 : vector<1x128xf32> to vector<8x128xf32>
    %74 = arith.addf %71, %73 : vector<8x128xf32>
    %cst_39 = arith.constant 0.000000e+00 : f32
    %75 = vector.broadcast %cst_39 : f32 to vector<8x128xf32>
    %76 = arith.maximumf %74, %75 : vector<8x128xf32>
    %77 = arith.truncf %76 : vector<8x128xf32> to vector<8x128xbf16>
    %c0_40 = arith.constant 0 : index
    %c0_41 = arith.constant 0 : index
    %78 = vector.load %arg15[%c0_40, %c0_41] : memref<128x384xbf16, #tpu.memory_space<vmem>>, vector<128x384xbf16>
    %cst_42 = arith.constant dense<0.000000e+00> : vector<8x384xf32>
    %79 = tpu.matmul %77, %78, %cst_42 {dimension_numbers = #tpu.dot_dimension_numbers<[1], [0], [0], [1], [0, 0, 1, 1], [], []>} : vector<8x128xbf16>, vector<128x384xbf16>, vector<8x384xf32> -> vector<8x384xf32>
    %c0_43 = arith.constant 0 : index
    %c0_44 = arith.constant 0 : index
    %80 = vector.load %arg16[%c0_43, %c0_44] : memref<1x128xf32, #tpu.memory_space<vmem>>, vector<1x128xf32>
    %81 = vector.shape_cast %80 : vector<1x128xf32> to vector<128xf32>
    %82 = vector.extract_strided_slice %79 {offsets = [0, 0], sizes = [8, 128], strides = [1, 1]} : vector<8x384xf32> to vector<8x128xf32>
    %83 = vector.extract_strided_slice %79 {offsets = [0, 128], sizes = [8, 128], strides = [1, 1]} : vector<8x384xf32> to vector<8x128xf32>
    %84 = vector.extract_strided_slice %79 {offsets = [0, 256], sizes = [8, 128], strides = [1, 1]} : vector<8x384xf32> to vector<8x128xf32>
    %cst_45 = arith.constant 0.000000e+00 : f32
    %85 = vector.broadcast %cst_45 : f32 to vector<1x128xf32>
    %86 = vector.extract_strided_slice %82 {offsets = [0, 0], sizes = [7, 128], strides = [1, 1]} : vector<8x128xf32> to vector<7x128xf32>
    %87 = tpu.concatenate %85, %86 in 0 : vector<1x128xf32>, vector<7x128xf32> -> vector<8x128xf32>
    %88 = vector.extract_strided_slice %84 {offsets = [1, 0], sizes = [7, 128], strides = [1, 1]} : vector<8x128xf32> to vector<7x128xf32>
    %89 = tpu.concatenate %88, %85 in 0 : vector<7x128xf32>, vector<1x128xf32> -> vector<8x128xf32>
    %90 = arith.addf %83, %87 : vector<8x128xf32>
    %91 = arith.addf %90, %89 : vector<8x128xf32>
    %92 = vector.shape_cast %81 : vector<128xf32> to vector<1x128xf32>
    %93 = vector.broadcast %92 : vector<1x128xf32> to vector<8x128xf32>
    %94 = arith.addf %91, %93 : vector<8x128xf32>
    %cst_46 = arith.constant 0.000000e+00 : f32
    %95 = vector.broadcast %cst_46 : f32 to vector<8x128xf32>
    %96 = arith.maximumf %94, %95 : vector<8x128xf32>
    %c0_47 = arith.constant 0 : index
    %c0_48 = arith.constant 0 : index
    %c0_49 = arith.constant 0 : index
    %97 = vector.load %arg4[%c0_47, %c0_48, %c0_49] : memref<1x16x128xbf16, #tpu.memory_space<vmem>>, vector<1x16x128xbf16>
    %98 = vector.shape_cast %97 : vector<1x16x128xbf16> to vector<16x128xbf16>
    %99 = arith.truncf %96 : vector<8x128xf32> to vector<8x128xbf16>
    %c0_50 = arith.constant 0 : index
    %c0_51 = arith.constant 0 : index
    %100 = vector.load %arg18[%c0_50, %c0_51] : memref<128x384xbf16, #tpu.memory_space<vmem>>, vector<128x384xbf16>
    %cst_52 = arith.constant dense<0.000000e+00> : vector<8x384xf32>
    %101 = tpu.matmul %99, %100, %cst_52 {dimension_numbers = #tpu.dot_dimension_numbers<[1], [0], [0], [1], [0, 0, 1, 1], [], []>} : vector<8x128xbf16>, vector<128x384xbf16>, vector<8x384xf32> -> vector<8x384xf32>
    %c0_53 = arith.constant 0 : index
    %c0_54 = arith.constant 0 : index
    %102 = vector.load %arg17[%c0_53, %c0_54] : memref<16x8xbf16, #tpu.memory_space<vmem>>, vector<16x8xbf16>
    %103 = arith.truncf %101 : vector<8x384xf32> to vector<8x384xbf16>
    %cst_55 = arith.constant dense<0.000000e+00> : vector<16x384xf32>
    %104 = tpu.matmul %102, %103, %cst_55 {dimension_numbers = #tpu.dot_dimension_numbers<[1], [0], [0], [1], [0, 0, 1, 1], [], []>} : vector<16x8xbf16>, vector<8x384xbf16>, vector<16x384xf32> -> vector<16x384xf32>
    %c0_56 = arith.constant 0 : index
    %c0_57 = arith.constant 0 : index
    %105 = vector.load %arg19[%c0_56, %c0_57] : memref<128x384xbf16, #tpu.memory_space<vmem>>, vector<128x384xbf16>
    %cst_58 = arith.constant dense<0.000000e+00> : vector<16x384xf32>
    %106 = tpu.matmul %98, %105, %cst_58 {dimension_numbers = #tpu.dot_dimension_numbers<[1], [0], [0], [1], [0, 0, 1, 1], [], []>} : vector<16x128xbf16>, vector<128x384xbf16>, vector<16x384xf32> -> vector<16x384xf32>
    %107 = arith.addf %104, %106 : vector<16x384xf32>
    %c0_59 = arith.constant 0 : index
    %c0_60 = arith.constant 0 : index
    %108 = vector.load %arg20[%c0_59, %c0_60] : memref<1x128xf32, #tpu.memory_space<vmem>>, vector<1x128xf32>
    %109 = vector.shape_cast %108 : vector<1x128xf32> to vector<128xf32>
    %110 = vector.extract_strided_slice %107 {offsets = [0, 0], sizes = [16, 128], strides = [1, 1]} : vector<16x384xf32> to vector<16x128xf32>
    %111 = vector.extract_strided_slice %107 {offsets = [0, 128], sizes = [16, 128], strides = [1, 1]} : vector<16x384xf32> to vector<16x128xf32>
    %112 = vector.extract_strided_slice %107 {offsets = [0, 256], sizes = [16, 128], strides = [1, 1]} : vector<16x384xf32> to vector<16x128xf32>
    %cst_61 = arith.constant 0.000000e+00 : f32
    %113 = vector.broadcast %cst_61 : f32 to vector<1x128xf32>
    %114 = vector.extract_strided_slice %110 {offsets = [0, 0], sizes = [15, 128], strides = [1, 1]} : vector<16x128xf32> to vector<15x128xf32>
    %115 = tpu.concatenate %113, %114 in 0 : vector<1x128xf32>, vector<15x128xf32> -> vector<16x128xf32>
    %116 = vector.extract_strided_slice %112 {offsets = [1, 0], sizes = [15, 128], strides = [1, 1]} : vector<16x128xf32> to vector<15x128xf32>
    %117 = tpu.concatenate %116, %113 in 0 : vector<15x128xf32>, vector<1x128xf32> -> vector<16x128xf32>
    %118 = arith.addf %111, %115 : vector<16x128xf32>
    %119 = arith.addf %118, %117 : vector<16x128xf32>
    %120 = vector.shape_cast %109 : vector<128xf32> to vector<1x128xf32>
    %121 = vector.broadcast %120 : vector<1x128xf32> to vector<16x128xf32>
    %122 = arith.addf %119, %121 : vector<16x128xf32>
    %cst_62 = arith.constant 0.000000e+00 : f32
    %123 = vector.broadcast %cst_62 : f32 to vector<16x128xf32>
    %124 = arith.maximumf %122, %123 : vector<16x128xf32>
    %125 = arith.truncf %124 : vector<16x128xf32> to vector<16x128xbf16>
    %c0_63 = arith.constant 0 : index
    %c0_64 = arith.constant 0 : index
    %126 = vector.load %arg21[%c0_63, %c0_64] : memref<128x384xbf16, #tpu.memory_space<vmem>>, vector<128x384xbf16>
    %cst_65 = arith.constant dense<0.000000e+00> : vector<16x384xf32>
    %127 = tpu.matmul %125, %126, %cst_65 {dimension_numbers = #tpu.dot_dimension_numbers<[1], [0], [0], [1], [0, 0, 1, 1], [], []>} : vector<16x128xbf16>, vector<128x384xbf16>, vector<16x384xf32> -> vector<16x384xf32>
    %c0_66 = arith.constant 0 : index
    %c0_67 = arith.constant 0 : index
    %128 = vector.load %arg22[%c0_66, %c0_67] : memref<1x128xf32, #tpu.memory_space<vmem>>, vector<1x128xf32>
    %129 = vector.shape_cast %128 : vector<1x128xf32> to vector<128xf32>
    %130 = vector.extract_strided_slice %127 {offsets = [0, 0], sizes = [16, 128], strides = [1, 1]} : vector<16x384xf32> to vector<16x128xf32>
    %131 = vector.extract_strided_slice %127 {offsets = [0, 128], sizes = [16, 128], strides = [1, 1]} : vector<16x384xf32> to vector<16x128xf32>
    %132 = vector.extract_strided_slice %127 {offsets = [0, 256], sizes = [16, 128], strides = [1, 1]} : vector<16x384xf32> to vector<16x128xf32>
    %cst_68 = arith.constant 0.000000e+00 : f32
    %133 = vector.broadcast %cst_68 : f32 to vector<1x128xf32>
    %134 = vector.extract_strided_slice %130 {offsets = [0, 0], sizes = [15, 128], strides = [1, 1]} : vector<16x128xf32> to vector<15x128xf32>
    %135 = tpu.concatenate %133, %134 in 0 : vector<1x128xf32>, vector<15x128xf32> -> vector<16x128xf32>
    %136 = vector.extract_strided_slice %132 {offsets = [1, 0], sizes = [15, 128], strides = [1, 1]} : vector<16x128xf32> to vector<15x128xf32>
    %137 = tpu.concatenate %136, %133 in 0 : vector<15x128xf32>, vector<1x128xf32> -> vector<16x128xf32>
    %138 = arith.addf %131, %135 : vector<16x128xf32>
    %139 = arith.addf %138, %137 : vector<16x128xf32>
    %140 = vector.shape_cast %129 : vector<128xf32> to vector<1x128xf32>
    %141 = vector.broadcast %140 : vector<1x128xf32> to vector<16x128xf32>
    %142 = arith.addf %139, %141 : vector<16x128xf32>
    %cst_69 = arith.constant 0.000000e+00 : f32
    %143 = vector.broadcast %cst_69 : f32 to vector<16x128xf32>
    %144 = arith.maximumf %142, %143 : vector<16x128xf32>
    %145 = arith.truncf %144 : vector<16x128xf32> to vector<16x128xbf16>
    %c0_70 = arith.constant 0 : index
    %c0_71 = arith.constant 0 : index
    %146 = vector.load %arg23[%c0_70, %c0_71] : memref<128x320xbf16, #tpu.memory_space<vmem>>, vector<128x320xbf16>
    %cst_72 = arith.constant dense<0.000000e+00> : vector<16x320xf32>
    %147 = tpu.matmul %145, %146, %cst_72 {dimension_numbers = #tpu.dot_dimension_numbers<[1], [0], [0], [1], [0, 0, 1, 1], [], []>} : vector<16x128xbf16>, vector<128x320xbf16>, vector<16x320xf32> -> vector<16x320xf32>
    %c0_73 = arith.constant 0 : index
    %c0_74 = arith.constant 0 : index
    %148 = vector.load %arg24[%c0_73, %c0_74] : memref<64x16xbf16, #tpu.memory_space<vmem>>, vector<64x16xbf16>
    %149 = arith.truncf %147 : vector<16x320xf32> to vector<16x320xbf16>
    %cst_75 = arith.constant dense<0.000000e+00> : vector<64x320xf32>
    %150 = tpu.matmul %148, %149, %cst_75 {dimension_numbers = #tpu.dot_dimension_numbers<[1], [0], [0], [1], [0, 0, 1, 1], [], []>} : vector<64x16xbf16>, vector<16x320xbf16>, vector<64x320xf32> -> vector<64x320xf32>
    %c0_76 = arith.constant 0 : index
    %c0_77 = arith.constant 0 : index
    %151 = vector.load %arg25[%c0_76, %c0_77] : memref<1x320xf32, #tpu.memory_space<vmem>>, vector<1x320xf32>
    %152 = vector.shape_cast %151 : vector<1x320xf32> to vector<320xf32>
    %153 = vector.shape_cast %152 : vector<320xf32> to vector<1x320xf32>
    %154 = vector.broadcast %153 : vector<1x320xf32> to vector<64x320xf32>
    %155 = arith.addf %150, %154 : vector<64x320xf32>
    %c0_78 = arith.constant 0 : index
    %c0_79 = arith.constant 0 : index
    %c0_80 = arith.constant 0 : index
    %156 = vector.load %arg26[%c0_78, %c0_79, %c0_80] : memref<1x64x320xf32, #tpu.memory_space<vmem>>, vector<1x64x320xf32>
    %157 = vector.shape_cast %156 : vector<1x64x320xf32> to vector<64x320xf32>
    %158 = vector.shape_cast %155 : vector<64x320xf32> to vector<1x64x320xf32>
    tpu.vector_store %arg26[%c0_78, %c0_79, %c0_80], %158 {strides = array<i32>} : memref<1x64x320xf32, #tpu.memory_space<vmem>>, vector<1x64x320xf32>,
    return
  }
  func.func @transform_0(%arg0: i32) -> (i32, i32, i32) {
    %c0_i32 = arith.constant 0 : i32
    %c0_i32_0 = arith.constant 0 : i32
    %c0_i32_1 = arith.constant 0 : i32
    return %arg0, %c0_i32, %c0_i32_0 : i32, i32, i32
  }
  func.func @transform_1(%arg0: i32) -> (i32, i32, i32) {
    %c0_i32 = arith.constant 0 : i32
    %c0_i32_0 = arith.constant 0 : i32
    %c0_i32_1 = arith.constant 0 : i32
    return %arg0, %c0_i32, %c0_i32_0 : i32, i32, i32
  }
  func.func @transform_2(%arg0: i32) -> (i32, i32, i32) {
    %c0_i32 = arith.constant 0 : i32
    %c0_i32_0 = arith.constant 0 : i32
    %c0_i32_1 = arith.constant 0 : i32
    return %arg0, %c0_i32, %c0_i32_0 : i32, i32, i32
  }
  func.func @transform_3(%arg0: i32) -> (i32, i32, i32) {
    %c0_i32 = arith.constant 0 : i32
    %c0_i32_0 = arith.constant 0 : i32
    %c0_i32_1 = arith.constant 0 : i32
    return %arg0, %c0_i32, %c0_i32_0 : i32, i32, i32
  }
  func.func @transform_4(%arg0: i32) -> (i32, i32) {
    %c0_i32 = arith.constant 0 : i32
    %c0_i32_0 = arith.constant 0 : i32
    %c0_i32_1 = arith.constant 0 : i32
    return %c0_i32, %c0_i32_0 : i32, i32
  }
  func.func @transform_5(%arg0: i32) -> (i32, i32) {
    %c0_i32 = arith.constant 0 : i32
    %c0_i32_0 = arith.constant 0 : i32
    %c0_i32_1 = arith.constant 0 : i32
    return %c0_i32, %c0_i32_0 : i32, i32
  }
  func.func @transform_6(%arg0: i32) -> (i32, i32) {
    %c0_i32 = arith.constant 0 : i32
    %c0_i32_0 = arith.constant 0 : i32
    %c0_i32_1 = arith.constant 0 : i32
    return %c0_i32, %c0_i32_0 : i32, i32
  }
  func.func @transform_7(%arg0: i32) -> (i32, i32) {
    %c0_i32 = arith.constant 0 : i32
    %c0_i32_0 = arith.constant 0 : i32
    %c0_i32_1 = arith.constant 0 : i32
    return %c0_i32, %c0_i32_0 : i32, i32
  }
  func.func @transform_8(%arg0: i32) -> (i32, i32) {
    %c0_i32 = arith.constant 0 : i32
    %c0_i32_0 = arith.constant 0 : i32
    %c0_i32_1 = arith.constant 0 : i32
    return %c0_i32, %c0_i32_0 : i32, i32
  }
  func.func @transform_9(%arg0: i32) -> (i32, i32) {
    %c0_i32 = arith.constant 0 : i32
    %c0_i32_0 = arith.constant 0 : i32
    %c0_i32_1 = arith.constant 0 : i32
    return %c0_i32, %c0_i32_0 : i32, i32
  }
  func.func @transform_10(%arg0: i32) -> (i32, i32) {
    %c0_i32 = arith.constant 0 : i32
    %c0_i32_0 = arith.constant 0 : i32
    %c0_i32_1 = arith.constant 0 : i32
    return %c0_i32, %c0_i32_0 : i32, i32
  }
  func.func @transform_11(%arg0: i32) -> (i32, i32) {
    %c0_i32 = arith.constant 0 : i32
    %c0_i32_0 = arith.constant 0 : i32
    %c0_i32_1 = arith.constant 0 : i32
    return %c0_i32, %c0_i32_0 : i32, i32
  }
  func.func @transform_12(%arg0: i32) -> (i32, i32) {
    %c0_i32 = arith.constant 0 : i32
    %c0_i32_0 = arith.constant 0 : i32
    %c0_i32_1 = arith.constant 0 : i32
    return %c0_i32, %c0_i32_0 : i32, i32
  }
  func.func @transform_13(%arg0: i32) -> (i32, i32) {
    %c0_i32 = arith.constant 0 : i32
    %c0_i32_0 = arith.constant 0 : i32
    %c0_i32_1 = arith.constant 0 : i32
    return %c0_i32, %c0_i32_0 : i32, i32
  }
  func.func @transform_14(%arg0: i32) -> (i32, i32) {
    %c0_i32 = arith.constant 0 : i32
    %c0_i32_0 = arith.constant 0 : i32
    %c0_i32_1 = arith.constant 0 : i32
    return %c0_i32, %c0_i32_0 : i32, i32
  }
  func.func @transform_15(%arg0: i32) -> (i32, i32) {
    %c0_i32 = arith.constant 0 : i32
    %c0_i32_0 = arith.constant 0 : i32
    %c0_i32_1 = arith.constant 0 : i32
    return %c0_i32, %c0_i32_0 : i32, i32
  }
  func.func @transform_16(%arg0: i32) -> (i32, i32) {
    %c0_i32 = arith.constant 0 : i32
    %c0_i32_0 = arith.constant 0 : i32
    %c0_i32_1 = arith.constant 0 : i32
    return %c0_i32, %c0_i32_0 : i32, i32
  }
  func.func @transform_17(%arg0: i32) -> (i32, i32) {
    %c0_i32 = arith.constant 0 : i32
    %c0_i32_0 = arith.constant 0 : i32
    %c0_i32_1 = arith.constant 0 : i32
    return %c0_i32, %c0_i32_0 : i32, i32
  }
  func.func @transform_18(%arg0: i32) -> (i32, i32) {
    %c0_i32 = arith.constant 0 : i32
    %c0_i32_0 = arith.constant 0 : i32
    %c0_i32_1 = arith.constant 0 : i32
    return %c0_i32, %c0_i32_0 : i32, i32
  }
  func.func @transform_19(%arg0: i32) -> (i32, i32) {
    %c0_i32 = arith.constant 0 : i32
    %c0_i32_0 = arith.constant 0 : i32
    %c0_i32_1 = arith.constant 0 : i32
    return %c0_i32, %c0_i32_0 : i32, i32
  }
  func.func @transform_20(%arg0: i32) -> (i32, i32) {
    %c0_i32 = arith.constant 0 : i32
    %c0_i32_0 = arith.constant 0 : i32
    %c0_i32_1 = arith.constant 0 : i32
    return %c0_i32, %c0_i32_0 : i32, i32
  }
  func.func @transform_21(%arg0: i32) -> (i32, i32) {
    %c0_i32 = arith.constant 0 : i32
    %c0_i32_0 = arith.constant 0 : i32
    %c0_i32_1 = arith.constant 0 : i32
    return %c0_i32, %c0_i32_0 : i32, i32
  }
  func.func @transform_22(%arg0: i32) -> (i32, i32) {
    %c0_i32 = arith.constant 0 : i32
    %c0_i32_0 = arith.constant 0 : i32
    %c0_i32_1 = arith.constant 0 : i32
    return %c0_i32, %c0_i32_0 : i32, i32
  }
  func.func @transform_23(%arg0: i32) -> (i32, i32) {
    %c0_i32 = arith.constant 0 : i32
    %c0_i32_0 = arith.constant 0 : i32
    %c0_i32_1 = arith.constant 0 : i32
    return %c0_i32, %c0_i32_0 : i32, i32
  }
  func.func @transform_24(%arg0: i32) -> (i32, i32) {
    %c0_i32 = arith.constant 0 : i32
    %c0_i32_0 = arith.constant 0 : i32
    %c0_i32_1 = arith.constant 0 : i32
    return %c0_i32, %c0_i32_0 : i32, i32
  }
  func.func @transform_25(%arg0: i32) -> (i32, i32, i32) {
    %c0_i32 = arith.constant 0 : i32
    %c0_i32_0 = arith.constant 0 : i32
    %c0_i32_1 = arith.constant 0 : i32
    return %arg0, %c0_i32, %c0_i32_0 : i32, i32, i32
  }
}

</mosaic_0001>

<bundles_post_ra>
// kernel: model_forward.5
= control target key start
LH: loop header
LB: loop body
LE: loop exit
PB: predicated region body
PF: predicated region fallthrough
CT: control target
= control target key end

     0   :  { %vm158_vm0 = vcmask 523264   ;;  %vm864_vm1 = vcmask 125952   ;;  %vm944_vm2 = vcmask 130048   ;;  %vm1650_vm3 = vcmask 60416   ;;  %s3218_s1 = inlined_call_operand.vmem [shape: bf16[64,16], index: 1, kind: input, shape index: {}]   ;;  %s3219_s0 = inlined_call_operand.vmem [shape: f32[512,64], index: 0, kind: input, shape index: {}]   ;;  %s3220_s3 = inlined_call_operand.vmem [shape: bf16[16,8], index: 3, kind: input, shape index: {}]   ;;  %s3221_s2 = inlined_call_operand.vmem [shape: f32[1,16], index: 2, kind: input, shape index: {}]   ;;  %s3222_s5 = inlined_call_operand.vmem [shape: bf16[512,16], index: 5, kind: output, shape index: {0}]   ;;  %s3223_s4 = inlined_call_operand.vmem [shape: f32[1,8], index: 4, kind: input, shape index: {}]   ;;  %s3224_s6 = inlined_call_operand.vmem [shape: bf16[512,8], index: 6, kind: output, shape index: {1}]  }
   0x1   :  { %v2257_v0 = vld [vmem:[%s3218_s1 + $0x18] sm:$0xff]   ;;  %v2258_v1 = vld [vmem:[%s3218_s1 + $0x10] sm:$0xff]   ;;  %v2259_v2 = vld [vmem:[%s3218_s1 + $0x8] sm:$0xff]  }
   0x2   :  { %2119 = vmatprep.subr.bf16.mxu0 %v2257_v0  ;;  %v23_v3 = vld [vmem:[%s3219_s0] sm:$0xff]  ;;  %v24_v4 = vld [vmem:[%s3219_s0 + $0x8] sm:$0xff]  ;;  %v25_v7 = vld [vmem:[%s3219_s0 + $0x10] sm:$0xff] }
   0x3   :  { %2120 = vmatpush3.bf16.msra.mxu0 %v2257_v0  ;;  %v87_v5 = vpack.c.bf16 %v24_v4, %v23_v3  ;;  %v2260_v6 = vld [vmem:[%s3218_s1] sm:$0xff]   ;;  %v26_v8 = vld [vmem:[%s3219_s0 + $0x18] sm:$0xff]  ;;  %v28_v10 = vld [vmem:[%s3219_s0 + $0x28] sm:$0xff] }
   0x4   :  { %2121 = vmatprep.subr.bf16.mxu0 %v2258_v1  ;;  %v27_v9 = vld [vmem:[%s3219_s0 + $0x20] sm:$0xff]  ;;  %v88_v11 = vpack.c.bf16 %v26_v8, %v25_v7  ;;  %v29_v13 = vld [vmem:[%s3219_s0 + $0x30] sm:$0xff]  ;;  %v30_v14 = vld [vmem:[%s3219_s0 + $0x38] sm:$0xff] }
   0x5   :  { %2127 = vmatprep.mubr.msk.bf16.mxu0 %vm158_vm0, %v87_v5  ;;  %v89_v12 = vpack.c.bf16 %v28_v10, %v27_v9  ;;  %v31_v15 = vld [vmem:[%s3219_s0 + $0x40] sm:$0xff]  ;;  %v32_v16 = vld [vmem:[%s3219_s0 + $0x48] sm:$0xff]  ;;  %v90_v17 = vpack.c.bf16 %v30_v14, %v29_v13  ;;  %v33_v19 = vld [vmem:[%s3219_s0 + $0x50] sm:$0xff] }
   0x6   :  { %v91_v18 = vpack.c.bf16 %v32_v16, %v31_v15  ;;  %v34_v20 = vld [vmem:[%s3219_s0 + $0x58] sm:$0xff]  ;;  %v35_v21 = vld [vmem:[%s3219_s0 + $0x60] sm:$0xff]  ;;  %v36_v22 = vld [vmem:[%s3219_s0 + $0x68] sm:$0xff] }
   0x7   :  { %2122 = vmatpush3.bf16.msra.mxu0 %v2258_v1  ;;  %v92_v23 = vpack.c.bf16 %v34_v20, %v33_v19  ;;  %v93_v24 = vpack.c.bf16 %v36_v22, %v35_v21  ;;  %v37_v25 = vld [vmem:[%s3219_s0 + $0x70] sm:$0xff]  ;;  %v38_v26 = vld [vmem:[%s3219_s0 + $0x78] sm:$0xff]  ;;  %v39_v27 = vld [vmem:[%s3219_s0 + $0x80] sm:$0xff] }
   0x8   :  { %2123 = vmatprep.subr.bf16.mxu0 %v2259_v2  ;;  %v40_v28 = vld [vmem:[%s3219_s0 + $0x88] sm:$0xff]  ;;  %v94_v29 = vpack.c.bf16 %v38_v26, %v37_v25  ;;  %v41_v31 = vld [vmem:[%s3219_s0 + $0x90] sm:$0xff]  ;;  %v42_v32 = vld [vmem:[%s3219_s0 + $0x98] sm:$0xff] }
   0x9   :  { %v95_v30 = vpack.c.bf16 %v40_v28, %v39_v27  ;;  %v43_v33 = vld [vmem:[%s3219_s0 + $0xa0] sm:$0xff]  ;;  %v44_v34 = vld [vmem:[%s3219_s0 + $0xa8] sm:$0xff]  ;;  %v96_v35 = vpack.c.bf16 %v42_v32, %v41_v31  ;;  %v45_v37 = vld [vmem:[%s3219_s0 + $0xb0] sm:$0xff] }
   0xa   :  { %v97_v36 = vpack.c.bf16 %v44_v34, %v43_v33  ;;  %v46_v38 = vld [vmem:[%s3219_s0 + $0xb8] sm:$0xff]  ;;  %v47_v39 = vld [vmem:[%s3219_s0 + $0xc0] sm:$0xff]  ;;  %v48_v40 = vld [vmem:[%s3219_s0 + $0xc8] sm:$0xff] }
   0xb   :  { %2124 = vmatpush3.bf16.msra.mxu0 %v2259_v2  ;;  %v98_v41 = vpack.c.bf16 %v46_v38, %v45_v37  ;;  %v99_v42 = vpack.c.bf16 %v48_v40, %v47_v39  ;;  %v49_v43 = vld [vmem:[%s3219_s0 + $0xd0] sm:$0xff]  ;;  %v50_v44 = vld [vmem:[%s3219_s0 + $0xd8] sm:$0xff]  ;;  %v51_v45 = vld [vmem:[%s3219_s0 + $0xe0] sm:$0xff] }
   0xc   :  { %2125 = vmatprep.subr.bf16.mxu0 %v2260_v6  ;;  %v52_v46 = vld [vmem:[%s3219_s0 + $0xe8] sm:$0xff]  ;;  %v100_v47 = vpack.c.bf16 %v50_v44, %v49_v43  ;;  %v53_v49 = vld [vmem:[%s3219_s0 + $0xf0] sm:$0xff]  ;;  %v54_v50 = vld [vmem:[%s3219_s0 + $0xf8] sm:$0xff] }
   0xd   :  { %v101_v48 = vpack.c.bf16 %v52_v46, %v51_v45  ;;  %v55_v51 = vld [vmem:[%s3219_s0 + $0x100] sm:$0xff]  ;;  %v56_v52 = vld [vmem:[%s3219_s0 + $0x108] sm:$0xff]  ;;  %v102_v53 = vpack.c.bf16 %v54_v50, %v53_v49  ;;  %v57_v55 = vld [vmem:[%s3219_s0 + $0x110] sm:$0xff] }
   0xe   :  { %v103_v54 = vpack.c.bf16 %v56_v52, %v55_v51  ;;  %v58_v56 = vld [vmem:[%s3219_s0 + $0x118] sm:$0xff]  ;;  %v59_v57 = vld [vmem:[%s3219_s0 + $0x120] sm:$0xff]  ;;  %v60_v58 = vld [vmem:[%s3219_s0 + $0x128] sm:$0xff] }
   0xf   :  { %2126 = vmatpush3.bf16.msra.mxu0 %v2260_v6  ;;  %v104_v59 = vpack.c.bf16 %v58_v56, %v57_v55  ;;  %v105_v60 = vpack.c.bf16 %v60_v58, %v59_v57  ;;  %v61_v61 = vld [vmem:[%s3219_s0 + $0x130] sm:$0xff]  ;;  %v62_v62 = vld [vmem:[%s3219_s0 + $0x138] sm:$0xff]  ;;  %v63_v63 = vld [vmem:[%s3219_s0 + $0x140] sm:$0xff] }
  0x10   :  { %v64_v0 = vld [vmem:[%s3219_s0 + $0x148] sm:$0xff]  ;;  %v106_v1 = vpack.c.bf16 %v62_v62, %v61_v61  ;;  %v2261_v3 = vld [vmem:[%s3220_s3] sm:$0xff]   ;;  %v65_v4 = vld [vmem:[%s3219_s0 + $0x150] sm:$0xff] }
  0x11   :  { %v107_v2 = vpack.c.bf16 %v64_v0, %v63_v63  ;;  %v66_v5 = vld [vmem:[%s3219_s0 + $0x158] sm:$0xff]  ;;  %v67_v6 = vld [vmem:[%s3219_s0 + $0x160] sm:$0xff]  ;;  %v68_v7 = vld [vmem:[%s3219_s0 + $0x168] sm:$0xff]  ;;  %2191 = vmatprep.subr.bf16.mxu1 %v2261_v3 }
  0x12   :  { %2128 = vmatmul.mubr.msk.bf16.vlgmr.msra.gmra.mxu0 %vm158_vm0, %v88_v11  ;;  %2192 = vmatpush3.bf16.msra.mxu1 %v2261_v3  ;;  %v108_v8 = vpack.c.bf16 %v66_v5, %v65_v4  ;;  %v109_v9 = vpack.c.bf16 %v68_v7, %v67_v6  ;;  %v69_v10 = vld [vmem:[%s3219_s0 + $0x170] sm:$0xff]  ;;  %v70_v11 = vld [vmem:[%s3219_s0 + $0x178] sm:$0xff]  ;;  %v72_v13 = vld [vmem:[%s3219_s0 + $0x188] sm:$0xff] }
  0x13   :  { %2131 = vmatprep.mubr.msk.bf16.mxu0 %vm158_vm0, %v89_v12  ;;  %v71_v12 = vld [vmem:[%s3219_s0 + $0x180] sm:$0xff]  ;;  %v110_v14 = vpack.c.bf16 %v70_v11, %v69_v10  ;;  %v73_v16 = vld [vmem:[%s3219_s0 + $0x190] sm:$0xff]  ;;  %v76_v19 = vld [vmem:[%s3219_s0 + $0x1a8] sm:$0xff] }
  0x14   :  { %v111_v15 = vpack.c.bf16 %v72_v13, %v71_v12  ;;  %v77_v22 = vld [vmem:[%s3219_s0 + $0x1b0] sm:$0xff]  ;;  %v80_v25 = vld [vmem:[%s3219_s0 + $0x1c8] sm:$0xff]  ;;  %v2539_v37 = vld [vmem:[%s3221_s2] ss:$0 sm:$0xff] }
  0x15   :  { %v81_v28 = vld [vmem:[%s3219_s0 + $0x1d0] sm:$0xff]  ;;  %v84_v31 = vld [vmem:[%s3219_s0 + $0x1e8] sm:$0xff] }
  0x16   :  { %v85_v34 = vld [vmem:[%s3219_s0 + $0x1f0] sm:$0xff] }
  0x1a   :  { %2132 = vmatmul.mubr.msk.bf16.gmra.mxu0 %vm158_vm0, %v90_v17  ;;  %v74_v17 = vld [vmem:[%s3219_s0 + $0x198] sm:$0xff] }
  0x1b   :  { %2135 = vmatprep.mubr.msk.bf16.mxu0 %vm158_vm0, %v91_v18  ;;  %v75_v18 = vld [vmem:[%s3219_s0 + $0x1a0] sm:$0xff]  ;;  %v112_v20 = vpack.c.bf16 %v74_v17, %v73_v16 }
  0x1c   :  { %v113_v21 = vpack.c.bf16 %v76_v19, %v75_v18 }
  0x22   :  { %2136 = vmatmul.mubr.msk.bf16.gmra.mxu0 %vm158_vm0, %v92_v23  ;;  %v78_v23 = vld [vmem:[%s3219_s0 + $0x1b8] sm:$0xff] }
  0x23   :  { %2139 = vmatprep.mubr.msk.bf16.mxu0 %vm158_vm0, %v93_v24  ;;  %v79_v24 = vld [vmem:[%s3219_s0 + $0x1c0] sm:$0xff]  ;;  %v114_v26 = vpack.c.bf16 %v78_v23, %v77_v22 }
  0x24   :  { %v115_v27 = vpack.c.bf16 %v80_v25, %v79_v24 }
  0x2a   :  { %2140 = vmatmul.mubr.msk.bf16.gmra.mxu0 %vm158_vm0, %v94_v29  ;;  %v82_v29 = vld [vmem:[%s3219_s0 + $0x1d8] sm:$0xff] }
  0x2b   :  { %2143 = vmatprep.mubr.msk.bf16.mxu0 %vm158_vm0, %v95_v30  ;;  %v83_v30 = vld [vmem:[%s3219_s0 + $0x1e0] sm:$0xff]  ;;  %v116_v32 = vpack.c.bf16 %v82_v29, %v81_v28 }
  0x2c   :  { %v117_v33 = vpack.c.bf16 %v84_v31, %v83_v30 }
  0x32   :  { %2144 = vmatmul.mubr.msk.bf16.gmra.mxu0 %vm158_vm0, %v96_v35  ;;  %v86_v35 = vld [vmem:[%s3219_s0 + $0x1f8] sm:$0xff] }
  0x33   :  { %2147 = vmatprep.mubr.msk.bf16.mxu0 %vm158_vm0, %v97_v36  ;;  %v118_v36 = vpack.c.bf16 %v86_v35, %v85_v34 }
  0x3a   :  { %2148 = vmatmul.mubr.msk.bf16.gmra.mxu0 %vm158_vm0, %v98_v41 }
  0x3b   :  { %2151 = vmatprep.mubr.msk.bf16.mxu0 %vm158_vm0, %v99_v42 }
  0x42   :  { %2152 = vmatmul.mubr.msk.bf16.gmra.mxu0 %vm158_vm0, %v100_v47 }
  0x43   :  { %2155 = vmatprep.mubr.msk.bf16.mxu0 %vm158_vm0, %v101_v48 }
  0x4a   :  { %2156 = vmatmul.mubr.msk.bf16.gmra.mxu0 %vm158_vm0, %v102_v53 }
  0x4b   :  { %2159 = vmatprep.mubr.msk.bf16.mxu0 %vm158_vm0, %v103_v54 }
  0x52   :  { %2160 = vmatmul.mubr.msk.bf16.gmra.mxu0 %vm158_vm0, %v104_v59 }
  0x53   :  { %2163 = vmatprep.mubr.msk.bf16.mxu0 %vm158_vm0, %v105_v60 }
  0x5a   :  { %2164 = vmatmul.mubr.msk.bf16.gmra.mxu0 %vm158_vm0, %v106_v1 }
  0x5b   :  { %2167 = vmatprep.mubr.msk.bf16.mxu0 %vm158_vm0, %v107_v2 }
  0x62   :  { %2168 = vmatmul.mubr.msk.bf16.gmra.mxu0 %vm158_vm0, %v108_v8 }
  0x63   :  { %2171 = vmatprep.mubr.msk.bf16.mxu0 %vm158_vm0, %v109_v9 }
  0x6a   :  { %2172 = vmatmul.mubr.msk.bf16.gmra.mxu0 %vm158_vm0, %v110_v14 }
  0x6b   :  { %2175 = vmatprep.mubr.msk.bf16.mxu0 %vm158_vm0, %v111_v15 }
  0x72   :  { %2176 = vmatmul.mubr.msk.bf16.gmra.mxu0 %vm158_vm0, %v112_v20 }
  0x73   :  { %2179 = vmatprep.mubr.msk.bf16.mxu0 %vm158_vm0, %v113_v21 }
  0x7a   :  { %2180 = vmatmul.mubr.msk.bf16.gmra.mxu0 %vm158_vm0, %v114_v26 }
  0x7b   :  { %2183 = vmatprep.mubr.msk.bf16.mxu0 %vm158_vm0, %v115_v27 }
  0x82   :  { %2184 = vmatmul.mubr.msk.bf16.gmra.mxu0 %vm158_vm0, %v116_v32 }
  0x83   :  { %2187 = vmatprep.mubr.msk.bf16.mxu0 %vm158_vm0, %v117_v33 }
  0x8a   :  { %2188 = vmatmul.mubr.msk.bf16.gmra.mxu0 %vm158_vm0, %v118_v36 }
  0xd2   :  { %v2129_v38 = vpop.f32.mrf.mxu0 }
  0xd3   :  { %v298_v39 = vadd.f32 %v2129_v38, %v2539_v37 }
  0xd4   :  { %v289_v40 = vpop.f32.mrf.mxu0 }
  0xd5   :  { %v546_v41 = vmax.f32 %v298_v39, 0.0  ;;  %v290_v42 = vadd.f32 %v2539_v37, %v289_v40 }
  0xd6   :  { %v2130_v43 = vpop.f32.mrf.mxu0 }
  0xd7   :  { %v1924_v44 = vpack.c.bf16 %v546_v41, %v546_v41  ;;  %v544_v45 = vmax.f32 %v290_v42, 0.0  ;;  %v301_v46 = vadd.f32 %v2130_v43, %v2539_v37 }
  0xd8   :  { %v292_v47 = vpop.f32.mrf.mxu0 }
  0xd9   :  { %867 = vst.msk [vmem:[%s3222_s5 + $0x8] sm:$0xf] %vm864_vm1, %v1924_v44  ;;  %v1922_v48 = vpack.c.bf16 %v544_v45, %v544_v45  ;;  %v547_v49 = vmax.f32 %v301_v46, 0.0  ;;  %v293_v50 = vadd.f32 %v2539_v37, %v292_v47 }
  0xda   :  { %v2133_v51 = vpop.f32.mrf.mxu0 }
  0xdb   :  { %865 = vst.msk [vmem:[%s3222_s5] sm:$0xf] %vm864_vm1, %v1922_v48  ;;  %v1925_v52 = vpack.c.bf16 %v547_v49, %v547_v49  ;;  %v545_v53 = vmax.f32 %v293_v50, 0.0  ;;  %v314_v54 = vadd.f32 %v2133_v51, %v2539_v37  ;;  %v609_v60 = vpack.c.bf16 %v547_v49, %v546_v41 }
  0xdc   :  { %v305_v55 = vpop.f32.mrf.mxu0 }
  0xdd   :  { %868 = vst.msk [vmem:[%s3222_s5 + $0xc] sm:$0xf] %vm864_vm1, %v1925_v52  ;;  %v1923_v56 = vpack.c.bf16 %v545_v53, %v545_v53  ;;  %v550_v57 = vmax.f32 %v314_v54, 0.0  ;;  %v306_v58 = vadd.f32 %v2539_v37, %v305_v55  ;;  %v608_v59 = vpack.c.bf16 %v545_v53, %v544_v45 }
  0xde   :  { %v2134_v61 = vpop.f32.mrf.mxu0 }
  0xdf   :  { %866 = vst.msk [vmem:[%s3222_s5 + $0x4] sm:$0xf] %vm864_vm1, %v1923_v56  ;;  %v1928_v62 = vpack.c.bf16 %v550_v57, %v550_v57  ;;  %v548_v63 = vmax.f32 %v306_v58, 0.0  ;;  %v317_v0 = vadd.f32 %v2134_v61, %v2539_v37  ;;  %2193 = vmatprep.mubr.msk.bf16.mxu1 %vm944_vm2, %v608_v59 }
  0xe0   :  { %v308_v1 = vpop.f32.mrf.mxu0  ;;  %2194 = vmatmul.mubr.msk.bf16.vlgmr.msra.gmra.mxu1 %vm944_vm2, %v609_v60 }
  0xe1   :  { %871 = vst.msk [vmem:[%s3222_s5 + $0x18] sm:$0xf] %vm864_vm1, %v1928_v62  ;;  %v1926_v2 = vpack.c.bf16 %v548_v63, %v548_v63  ;;  %v551_v3 = vmax.f32 %v317_v0, 0.0  ;;  %v309_v4 = vadd.f32 %v2539_v37, %v308_v1 }
  0xe2   :  { %v2137_v5 = vpop.f32.mrf.mxu0 }
  0xe3   :  { %869 = vst.msk [vmem:[%s3222_s5 + $0x10] sm:$0xf] %vm864_vm1, %v1926_v2  ;;  %v1929_v6 = vpack.c.bf16 %v551_v3, %v551_v3  ;;  %v549_v7 = vmax.f32 %v309_v4, 0.0  ;;  %v330_v8 = vadd.f32 %v2137_v5, %v2539_v37  ;;  %v611_v14 = vpack.c.bf16 %v551_v3, %v550_v57 }
  0xe4   :  { %v321_v9 = vpop.f32.mrf.mxu0 }
  0xe5   :  { %872 = vst.msk [vmem:[%s3222_s5 + $0x1c] sm:$0xf] %vm864_vm1, %v1929_v6  ;;  %v610_v10 = vpack.c.bf16 %v549_v7, %v548_v63  ;;  %v1927_v11 = vpack.c.bf16 %v549_v7, %v549_v7  ;;  %v554_v12 = vmax.f32 %v330_v8, 0.0  ;;  %v322_v13 = vadd.f32 %v2539_v37, %v321_v9 }
  0xe6   :  { %v2138_v15 = vpop.f32.mrf.mxu0 }
  0xe7   :  { %870 = vst.msk [vmem:[%s3222_s5 + $0x14] sm:$0xf] %vm864_vm1, %v1927_v11  ;;  %v1932_v16 = vpack.c.bf16 %v554_v12, %v554_v12  ;;  %v552_v17 = vmax.f32 %v322_v13, 0.0  ;;  %v333_v18 = vadd.f32 %v2138_v15, %v2539_v37  ;;  %2197 = vmatprep.mubr.msk.bf16.mxu1 %vm944_vm2, %v610_v10 }
  0xe8   :  { %v324_v19 = vpop.f32.mrf.mxu0  ;;  %2198 = vmatmul.mubr.msk.bf16.gmra.mxu1 %vm944_vm2, %v611_v14 }
  0xe9   :  { %875 = vst.msk [vmem:[%s3222_s5 + $0x28] sm:$0xf] %vm864_vm1, %v1932_v16  ;;  %v1930_v20 = vpack.c.bf16 %v552_v17, %v552_v17  ;;  %v555_v21 = vmax.f32 %v333_v18, 0.0  ;;  %v325_v22 = vadd.f32 %v2539_v37, %v324_v19 }
  0xea   :  { %v2141_v23 = vpop.f32.mrf.mxu0 }
  0xeb   :  { %873 = vst.msk [vmem:[%s3222_s5 + $0x20] sm:$0xf] %vm864_vm1, %v1930_v20  ;;  %v1933_v24 = vpack.c.bf16 %v555_v21, %v555_v21  ;;  %v553_v25 = vmax.f32 %v325_v22, 0.0  ;;  %v346_v26 = vadd.f32 %v2141_v23, %v2539_v37  ;;  %v613_v32 = vpack.c.bf16 %v555_v21, %v554_v12 }
  0xec   :  { %v337_v27 = vpop.f32.mrf.mxu0 }
  0xed   :  { %876 = vst.msk [vmem:[%s3222_s5 + $0x2c] sm:$0xf] %vm864_vm1, %v1933_v24  ;;  %v612_v28 = vpack.c.bf16 %v553_v25, %v552_v17  ;;  %v1931_v29 = vpack.c.bf16 %v553_v25, %v553_v25  ;;  %v558_v30 = vmax.f32 %v346_v26, 0.0  ;;  %v338_v31 = vadd.f32 %v2539_v37, %v337_v27 }
  0xee   :  { %v2142_v33 = vpop.f32.mrf.mxu0 }
  0xef   :  { %874 = vst.msk [vmem:[%s3222_s5 + $0x24] sm:$0xf] %vm864_vm1, %v1931_v29  ;;  %v1936_v34 = vpack.c.bf16 %v558_v30, %v558_v30  ;;  %v556_v35 = vmax.f32 %v338_v31, 0.0  ;;  %v349_v36 = vadd.f32 %v2142_v33, %v2539_v37  ;;  %2201 = vmatprep.mubr.msk.bf16.mxu1 %vm944_vm2, %v612_v28 }
  0xf0   :  { %v340_v38 = vpop.f32.mrf.mxu0  ;;  %2202 = vmatmul.mubr.msk.bf16.gmra.mxu1 %vm944_vm2, %v613_v32 }
  0xf1   :  { %879 = vst.msk [vmem:[%s3222_s5 + $0x38] sm:$0xf] %vm864_vm1, %v1936_v34  ;;  %v1934_v39 = vpack.c.bf16 %v556_v35, %v556_v35  ;;  %v559_v40 = vmax.f32 %v349_v36, 0.0  ;;  %v341_v41 = vadd.f32 %v2539_v37, %v340_v38 }
  0xf2   :  { %v2145_v42 = vpop.f32.mrf.mxu0 }
  0xf3   :  { %877 = vst.msk [vmem:[%s3222_s5 + $0x30] sm:$0xf] %vm864_vm1, %v1934_v39  ;;  %v1937_v43 = vpack.c.bf16 %v559_v40, %v559_v40  ;;  %v557_v44 = vmax.f32 %v341_v41, 0.0  ;;  %v362_v45 = vadd.f32 %v2145_v42, %v2539_v37  ;;  %v615_v51 = vpack.c.bf16 %v559_v40, %v558_v30 }
  0xf4   :  { %v353_v46 = vpop.f32.mrf.mxu0 }
  0xf5   :  { %880 = vst.msk [vmem:[%s3222_s5 + $0x3c] sm:$0xf] %vm864_vm1, %v1937_v43  ;;  %v614_v47 = vpack.c.bf16 %v557_v44, %v556_v35  ;;  %v1935_v48 = vpack.c.bf16 %v557_v44, %v557_v44  ;;  %v562_v49 = vmax.f32 %v362_v45, 0.0  ;;  %v354_v50 = vadd.f32 %v2539_v37, %v353_v46 }
  0xf6   :  { %v2146_v52 = vpop.f32.mrf.mxu0 }
  0xf7   :  { %878 = vst.msk [vmem:[%s3222_s5 + $0x34] sm:$0xf] %vm864_vm1, %v1935_v48  ;;  %v1940_v53 = vpack.c.bf16 %v562_v49, %v562_v49  ;;  %v560_v54 = vmax.f32 %v354_v50, 0.0  ;;  %v365_v55 = vadd.f32 %v2146_v52, %v2539_v37  ;;  %2205 = vmatprep.mubr.msk.bf16.mxu1 %vm944_vm2, %v614_v47 }
  0xf8   :  { %v356_v56 = vpop.f32.mrf.mxu0  ;;  %2206 = vmatmul.mubr.msk.bf16.gmra.mxu1 %vm944_vm2, %v615_v51 }
  0xf9   :  { %883 = vst.msk [vmem:[%s3222_s5 + $0x48] sm:$0xf] %vm864_vm1, %v1940_v53  ;;  %v1938_v57 = vpack.c.bf16 %v560_v54, %v560_v54  ;;  %v563_v58 = vmax.f32 %v365_v55, 0.0  ;;  %v357_v59 = vadd.f32 %v2539_v37, %v356_v56 }
  0xfa   :  { %v2149_v60 = vpop.f32.mrf.mxu0 }
  0xfb   :  { %881 = vst.msk [vmem:[%s3222_s5 + $0x40] sm:$0xf] %vm864_vm1, %v1938_v57  ;;  %v1941_v61 = vpack.c.bf16 %v563_v58, %v563_v58  ;;  %v561_v62 = vmax.f32 %v357_v59, 0.0  ;;  %v378_v63 = vadd.f32 %v2149_v60, %v2539_v37  ;;  %v617_v5 = vpack.c.bf16 %v563_v58, %v562_v49 }
  0xfc   :  { %v369_v0 = vpop.f32.mrf.mxu0 }
  0xfd   :  { %884 = vst.msk [vmem:[%s3222_s5 + $0x4c] sm:$0xf] %vm864_vm1, %v1941_v61  ;;  %v616_v1 = vpack.c.bf16 %v561_v62, %v560_v54  ;;  %v1939_v2 = vpack.c.bf16 %v561_v62, %v561_v62  ;;  %v566_v3 = vmax.f32 %v378_v63, 0.0  ;;  %v370_v4 = vadd.f32 %v2539_v37, %v369_v0 }
  0xfe   :  { %v2150_v6 = vpop.f32.mrf.mxu0 }
  0xff   :  { %882 = vst.msk [vmem:[%s3222_s5 + $0x44] sm:$0xf] %vm864_vm1, %v1939_v2  ;;  %v1944_v7 = vpack.c.bf16 %v566_v3, %v566_v3  ;;  %v564_v8 = vmax.f32 %v370_v4, 0.0  ;;  %v381_v9 = vadd.f32 %v2150_v6, %v2539_v37  ;;  %2209 = vmatprep.mubr.msk.bf16.mxu1 %vm944_vm2, %v616_v1 }
 0x100   :  { %v372_v10 = vpop.f32.mrf.mxu0  ;;  %2210 = vmatmul.mubr.msk.bf16.gmra.mxu1 %vm944_vm2, %v617_v5 }
 0x101   :  { %887 = vst.msk [vmem:[%s3222_s5 + $0x58] sm:$0xf] %vm864_vm1, %v1944_v7  ;;  %v1942_v11 = vpack.c.bf16 %v564_v8, %v564_v8  ;;  %v567_v12 = vmax.f32 %v381_v9, 0.0  ;;  %v373_v13 = vadd.f32 %v2539_v37, %v372_v10 }
 0x102   :  { %v2153_v14 = vpop.f32.mrf.mxu0 }
 0x103   :  { %885 = vst.msk [vmem:[%s3222_s5 + $0x50] sm:$0xf] %vm864_vm1, %v1942_v11  ;;  %v1945_v15 = vpack.c.bf16 %v567_v12, %v567_v12  ;;  %v565_v16 = vmax.f32 %v373_v13, 0.0  ;;  %v394_v17 = vadd.f32 %v2153_v14, %v2539_v37  ;;  %v619_v23 = vpack.c.bf16 %v567_v12, %v566_v3 }
 0x104   :  { %v385_v18 = vpop.f32.mrf.mxu0 }
 0x105   :  { %888 = vst.msk [vmem:[%s3222_s5 + $0x5c] sm:$0xf] %vm864_vm1, %v1945_v15  ;;  %v618_v19 = vpack.c.bf16 %v565_v16, %v564_v8  ;;  %v1943_v20 = vpack.c.bf16 %v565_v16, %v565_v16  ;;  %v570_v21 = vmax.f32 %v394_v17, 0.0  ;;  %v386_v22 = vadd.f32 %v2539_v37, %v385_v18 }
 0x106   :  { %v2154_v24 = vpop.f32.mrf.mxu0 }
 0x107   :  { %886 = vst.msk [vmem:[%s3222_s5 + $0x54] sm:$0xf] %vm864_vm1, %v1943_v20  ;;  %v1948_v25 = vpack.c.bf16 %v570_v21, %v570_v21  ;;  %v568_v26 = vmax.f32 %v386_v22, 0.0  ;;  %v397_v27 = vadd.f32 %v2154_v24, %v2539_v37  ;;  %2213 = vmatprep.mubr.msk.bf16.mxu1 %vm944_vm2, %v618_v19 }
 0x108   :  { %v388_v28 = vpop.f32.mrf.mxu0  ;;  %2214 = vmatmul.mubr.msk.bf16.gmra.mxu1 %vm944_vm2, %v619_v23 }
 0x109   :  { %891 = vst.msk [vmem:[%s3222_s5 + $0x68] sm:$0xf] %vm864_vm1, %v1948_v25  ;;  %v1946_v29 = vpack.c.bf16 %v568_v26, %v568_v26  ;;  %v571_v30 = vmax.f32 %v397_v27, 0.0  ;;  %v389_v31 = vadd.f32 %v2539_v37, %v388_v28 }
 0x10a   :  { %v2157_v32 = vpop.f32.mrf.mxu0 }
 0x10b   :  { %889 = vst.msk [vmem:[%s3222_s5 + $0x60] sm:$0xf] %vm864_vm1, %v1946_v29  ;;  %v1949_v33 = vpack.c.bf16 %v571_v30, %v571_v30  ;;  %v569_v34 = vmax.f32 %v389_v31, 0.0  ;;  %v410_v35 = vadd.f32 %v2157_v32, %v2539_v37  ;;  %v621_v42 = vpack.c.bf16 %v571_v30, %v570_v21 }
 0x10c   :  { %v401_v36 = vpop.f32.mrf.mxu0 }
 0x10d   :  { %892 = vst.msk [vmem:[%s3222_s5 + $0x6c] sm:$0xf] %vm864_vm1, %v1949_v33  ;;  %v620_v38 = vpack.c.bf16 %v569_v34, %v568_v26  ;;  %v1947_v39 = vpack.c.bf16 %v569_v34, %v569_v34  ;;  %v574_v40 = vmax.f32 %v410_v35, 0.0  ;;  %v402_v41 = vadd.f32 %v2539_v37, %v401_v36 }
 0x10e   :  { %v2158_v43 = vpop.f32.mrf.mxu0 }
 0x10f   :  { %890 = vst.msk [vmem:[%s3222_s5 + $0x64] sm:$0xf] %vm864_vm1, %v1947_v39  ;;  %v1952_v44 = vpack.c.bf16 %v574_v40, %v574_v40  ;;  %v572_v45 = vmax.f32 %v402_v41, 0.0  ;;  %v413_v46 = vadd.f32 %v2158_v43, %v2539_v37  ;;  %2217 = vmatprep.mubr.msk.bf16.mxu1 %vm944_vm2, %v620_v38 }
 0x110   :  { %v404_v47 = vpop.f32.mrf.mxu0  ;;  %2218 = vmatmul.mubr.msk.bf16.gmra.mxu1 %vm944_vm2, %v621_v42 }
 0x111   :  { %895 = vst.msk [vmem:[%s3222_s5 + $0x78] sm:$0xf] %vm864_vm1, %v1952_v44  ;;  %v1950_v48 = vpack.c.bf16 %v572_v45, %v572_v45  ;;  %v575_v49 = vmax.f32 %v413_v46, 0.0  ;;  %v405_v50 = vadd.f32 %v2539_v37, %v404_v47 }
 0x112   :  { %v2161_v51 = vpop.f32.mrf.mxu0 }
 0x113   :  { %893 = vst.msk [vmem:[%s3222_s5 + $0x70] sm:$0xf] %vm864_vm1, %v1950_v48  ;;  %v1953_v52 = vpack.c.bf16 %v575_v49, %v575_v49  ;;  %v573_v53 = vmax.f32 %v405_v50, 0.0  ;;  %v426_v54 = vadd.f32 %v2161_v51, %v2539_v37  ;;  %v623_v60 = vpack.c.bf16 %v575_v49, %v574_v40 }
 0x114   :  { %v417_v55 = vpop.f32.mrf.mxu0 }
 0x115   :  { %896 = vst.msk [vmem:[%s3222_s5 + $0x7c] sm:$0xf] %vm864_vm1, %v1953_v52  ;;  %v622_v56 = vpack.c.bf16 %v573_v53, %v572_v45  ;;  %v1951_v57 = vpack.c.bf16 %v573_v53, %v573_v53  ;;  %v578_v58 = vmax.f32 %v426_v54, 0.0  ;;  %v418_v59 = vadd.f32 %v2539_v37, %v417_v55 }
 0x116   :  { %v2162_v61 = vpop.f32.mrf.mxu0 }
 0x117   :  { %894 = vst.msk [vmem:[%s3222_s5 + $0x74] sm:$0xf] %vm864_vm1, %v1951_v57  ;;  %v1956_v62 = vpack.c.bf16 %v578_v58, %v578_v58  ;;  %v576_v63 = vmax.f32 %v418_v59, 0.0  ;;  %v429_v0 = vadd.f32 %v2162_v61, %v2539_v37  ;;  %2221 = vmatprep.mubr.msk.bf16.mxu1 %vm944_vm2, %v622_v56 }
 0x118   :  { %v420_v1 = vpop.f32.mrf.mxu0  ;;  %2222 = vmatmul.mubr.msk.bf16.gmra.mxu1 %vm944_vm2, %v623_v60 }
 0x119   :  { %899 = vst.msk [vmem:[%s3222_s5 + $0x88] sm:$0xf] %vm864_vm1, %v1956_v62  ;;  %v1954_v2 = vpack.c.bf16 %v576_v63, %v576_v63  ;;  %v579_v3 = vmax.f32 %v429_v0, 0.0  ;;  %v421_v4 = vadd.f32 %v2539_v37, %v420_v1 }
 0x11a   :  { %v2165_v5 = vpop.f32.mrf.mxu0 }
 0x11b   :  { %897 = vst.msk [vmem:[%s3222_s5 + $0x80] sm:$0xf] %vm864_vm1, %v1954_v2  ;;  %v1957_v6 = vpack.c.bf16 %v579_v3, %v579_v3  ;;  %v577_v7 = vmax.f32 %v421_v4, 0.0  ;;  %v442_v8 = vadd.f32 %v2165_v5, %v2539_v37  ;;  %v625_v14 = vpack.c.bf16 %v579_v3, %v578_v58 }
 0x11c   :  { %v433_v9 = vpop.f32.mrf.mxu0 }
 0x11d   :  { %900 = vst.msk [vmem:[%s3222_s5 + $0x8c] sm:$0xf] %vm864_vm1, %v1957_v6  ;;  %v624_v10 = vpack.c.bf16 %v577_v7, %v576_v63  ;;  %v1955_v11 = vpack.c.bf16 %v577_v7, %v577_v7  ;;  %v582_v12 = vmax.f32 %v442_v8, 0.0  ;;  %v434_v13 = vadd.f32 %v2539_v37, %v433_v9 }
 0x11e   :  { %v2166_v15 = vpop.f32.mrf.mxu0 }
 0x11f   :  { %898 = vst.msk [vmem:[%s3222_s5 + $0x84] sm:$0xf] %vm864_vm1, %v1955_v11  ;;  %v1960_v16 = vpack.c.bf16 %v582_v12, %v582_v12  ;;  %v580_v17 = vmax.f32 %v434_v13, 0.0  ;;  %v445_v18 = vadd.f32 %v2166_v15, %v2539_v37  ;;  %2225 = vmatprep.mubr.msk.bf16.mxu1 %vm944_vm2, %v624_v10 }
 0x120   :  { %v436_v19 = vpop.f32.mrf.mxu0  ;;  %2226 = vmatmul.mubr.msk.bf16.gmra.mxu1 %vm944_vm2, %v625_v14 }
 0x121   :  { %903 = vst.msk [vmem:[%s3222_s5 + $0x98] sm:$0xf] %vm864_vm1, %v1960_v16  ;;  %v1958_v20 = vpack.c.bf16 %v580_v17, %v580_v17  ;;  %v583_v21 = vmax.f32 %v445_v18, 0.0  ;;  %v437_v22 = vadd.f32 %v2539_v37, %v436_v19 }
 0x122   :  { %v2169_v23 = vpop.f32.mrf.mxu0 }
 0x123   :  { %901 = vst.msk [vmem:[%s3222_s5 + $0x90] sm:$0xf] %vm864_vm1, %v1958_v20  ;;  %v1961_v24 = vpack.c.bf16 %v583_v21, %v583_v21  ;;  %v581_v25 = vmax.f32 %v437_v22, 0.0  ;;  %v458_v26 = vadd.f32 %v2169_v23, %v2539_v37  ;;  %v627_v32 = vpack.c.bf16 %v583_v21, %v582_v12 }
 0x124   :  { %v449_v27 = vpop.f32.mrf.mxu0 }
 0x125   :  { %904 = vst.msk [vmem:[%s3222_s5 + $0x9c] sm:$0xf] %vm864_vm1, %v1961_v24  ;;  %v626_v28 = vpack.c.bf16 %v581_v25, %v580_v17  ;;  %v1959_v29 = vpack.c.bf16 %v581_v25, %v581_v25  ;;  %v586_v30 = vmax.f32 %v458_v26, 0.0  ;;  %v450_v31 = vadd.f32 %v2539_v37, %v449_v27 }
 0x126   :  { %v2170_v33 = vpop.f32.mrf.mxu0 }
 0x127   :  { %902 = vst.msk [vmem:[%s3222_s5 + $0x94] sm:$0xf] %vm864_vm1, %v1959_v29  ;;  %v1964_v34 = vpack.c.bf16 %v586_v30, %v586_v30  ;;  %v584_v35 = vmax.f32 %v450_v31, 0.0  ;;  %v461_v36 = vadd.f32 %v2170_v33, %v2539_v37  ;;  %2229 = vmatprep.mubr.msk.bf16.mxu1 %vm944_vm2, %v626_v28 }
 0x128   :  { %v452_v38 = vpop.f32.mrf.mxu0  ;;  %2230 = vmatmul.mubr.msk.bf16.gmra.mxu1 %vm944_vm2, %v627_v32 }
 0x129   :  { %907 = vst.msk [vmem:[%s3222_s5 + $0xa8] sm:$0xf] %vm864_vm1, %v1964_v34  ;;  %v1962_v39 = vpack.c.bf16 %v584_v35, %v584_v35  ;;  %v587_v40 = vmax.f32 %v461_v36, 0.0  ;;  %v453_v41 = vadd.f32 %v2539_v37, %v452_v38 }
 0x12a   :  { %v2173_v42 = vpop.f32.mrf.mxu0 }
 0x12b   :  { %905 = vst.msk [vmem:[%s3222_s5 + $0xa0] sm:$0xf] %vm864_vm1, %v1962_v39  ;;  %v1965_v43 = vpack.c.bf16 %v587_v40, %v587_v40  ;;  %v585_v44 = vmax.f32 %v453_v41, 0.0  ;;  %v474_v45 = vadd.f32 %v2173_v42, %v2539_v37  ;;  %v629_v51 = vpack.c.bf16 %v587_v40, %v586_v30 }
 0x12c   :  { %v465_v46 = vpop.f32.mrf.mxu0 }
 0x12d   :  { %908 = vst.msk [vmem:[%s3222_s5 + $0xac] sm:$0xf] %vm864_vm1, %v1965_v43  ;;  %v628_v47 = vpack.c.bf16 %v585_v44, %v584_v35  ;;  %v1963_v48 = vpack.c.bf16 %v585_v44, %v585_v44  ;;  %v590_v49 = vmax.f32 %v474_v45, 0.0  ;;  %v466_v50 = vadd.f32 %v2539_v37, %v465_v46 }
 0x12e   :  { %v2174_v52 = vpop.f32.mrf.mxu0 }
 0x12f   :  { %906 = vst.msk [vmem:[%s3222_s5 + $0xa4] sm:$0xf] %vm864_vm1, %v1963_v48  ;;  %v1968_v53 = vpack.c.bf16 %v590_v49, %v590_v49  ;;  %v588_v54 = vmax.f32 %v466_v50, 0.0  ;;  %v477_v55 = vadd.f32 %v2174_v52, %v2539_v37  ;;  %2233 = vmatprep.mubr.msk.bf16.mxu1 %vm944_vm2, %v628_v47 }
 0x130   :  { %v468_v56 = vpop.f32.mrf.mxu0  ;;  %2234 = vmatmul.mubr.msk.bf16.gmra.mxu1 %vm944_vm2, %v629_v51 }
 0x131   :  { %911 = vst.msk [vmem:[%s3222_s5 + $0xb8] sm:$0xf] %vm864_vm1, %v1968_v53  ;;  %v1966_v57 = vpack.c.bf16 %v588_v54, %v588_v54  ;;  %v591_v58 = vmax.f32 %v477_v55, 0.0  ;;  %v469_v59 = vadd.f32 %v2539_v37, %v468_v56 }
 0x132   :  { %v2177_v60 = vpop.f32.mrf.mxu0 }
 0x133   :  { %909 = vst.msk [vmem:[%s3222_s5 + $0xb0] sm:$0xf] %vm864_vm1, %v1966_v57  ;;  %v1969_v61 = vpack.c.bf16 %v591_v58, %v591_v58  ;;  %v589_v62 = vmax.f32 %v469_v59, 0.0  ;;  %v490_v63 = vadd.f32 %v2177_v60, %v2539_v37  ;;  %v631_v5 = vpack.c.bf16 %v591_v58, %v590_v49 }
 0x134   :  { %v481_v0 = vpop.f32.mrf.mxu0 }
 0x135   :  { %912 = vst.msk [vmem:[%s3222_s5 + $0xbc] sm:$0xf] %vm864_vm1, %v1969_v61  ;;  %v630_v1 = vpack.c.bf16 %v589_v62, %v588_v54  ;;  %v1967_v2 = vpack.c.bf16 %v589_v62, %v589_v62  ;;  %v594_v3 = vmax.f32 %v490_v63, 0.0  ;;  %v482_v4 = vadd.f32 %v2539_v37, %v481_v0 }
 0x136   :  { %v2178_v6 = vpop.f32.mrf.mxu0 }
 0x137   :  { %910 = vst.msk [vmem:[%s3222_s5 + $0xb4] sm:$0xf] %vm864_vm1, %v1967_v2  ;;  %v1972_v7 = vpack.c.bf16 %v594_v3, %v594_v3  ;;  %v592_v8 = vmax.f32 %v482_v4, 0.0  ;;  %v493_v9 = vadd.f32 %v2178_v6, %v2539_v37  ;;  %2237 = vmatprep.mubr.msk.bf16.mxu1 %vm944_vm2, %v630_v1 }
 0x138   :  { %v484_v10 = vpop.f32.mrf.mxu0  ;;  %2238 = vmatmul.mubr.msk.bf16.gmra.mxu1 %vm944_vm2, %v631_v5 }
 0x139   :  { %915 = vst.msk [vmem:[%s3222_s5 + $0xc8] sm:$0xf] %vm864_vm1, %v1972_v7  ;;  %v1970_v11 = vpack.c.bf16 %v592_v8, %v592_v8  ;;  %v595_v12 = vmax.f32 %v493_v9, 0.0  ;;  %v485_v13 = vadd.f32 %v2539_v37, %v484_v10 }
 0x13a   :  { %v2181_v14 = vpop.f32.mrf.mxu0 }
 0x13b   :  { %913 = vst.msk [vmem:[%s3222_s5 + $0xc0] sm:$0xf] %vm864_vm1, %v1970_v11  ;;  %v1973_v15 = vpack.c.bf16 %v595_v12, %v595_v12  ;;  %v593_v16 = vmax.f32 %v485_v13, 0.0  ;;  %v506_v17 = vadd.f32 %v2181_v14, %v2539_v37  ;;  %v633_v23 = vpack.c.bf16 %v595_v12, %v594_v3 }
 0x13c   :  { %v497_v18 = vpop.f32.mrf.mxu0 }
 0x13d   :  { %916 = vst.msk [vmem:[%s3222_s5 + $0xcc] sm:$0xf] %vm864_vm1, %v1973_v15  ;;  %v632_v19 = vpack.c.bf16 %v593_v16, %v592_v8  ;;  %v1971_v20 = vpack.c.bf16 %v593_v16, %v593_v16  ;;  %v598_v21 = vmax.f32 %v506_v17, 0.0  ;;  %v498_v22 = vadd.f32 %v2539_v37, %v497_v18 }
 0x13e   :  { %v2182_v24 = vpop.f32.mrf.mxu0 }
 0x13f   :  { %914 = vst.msk [vmem:[%s3222_s5 + $0xc4] sm:$0xf] %vm864_vm1, %v1971_v20  ;;  %v1976_v25 = vpack.c.bf16 %v598_v21, %v598_v21  ;;  %v596_v26 = vmax.f32 %v498_v22, 0.0  ;;  %v509_v27 = vadd.f32 %v2182_v24, %v2539_v37  ;;  %2241 = vmatprep.mubr.msk.bf16.mxu1 %vm944_vm2, %v632_v19 }
 0x140   :  { %v500_v28 = vpop.f32.mrf.mxu0  ;;  %2242 = vmatmul.mubr.msk.bf16.gmra.mxu1 %vm944_vm2, %v633_v23 }
 0x141   :  { %919 = vst.msk [vmem:[%s3222_s5 + $0xd8] sm:$0xf] %vm864_vm1, %v1976_v25  ;;  %v1974_v29 = vpack.c.bf16 %v596_v26, %v596_v26  ;;  %v599_v30 = vmax.f32 %v509_v27, 0.0  ;;  %v501_v31 = vadd.f32 %v2539_v37, %v500_v28 }
 0x142   :  { %v2185_v32 = vpop.f32.mrf.mxu0 }
 0x143   :  { %917 = vst.msk [vmem:[%s3222_s5 + $0xd0] sm:$0xf] %vm864_vm1, %v1974_v29  ;;  %v1977_v33 = vpack.c.bf16 %v599_v30, %v599_v30  ;;  %v597_v34 = vmax.f32 %v501_v31, 0.0  ;;  %v522_v35 = vadd.f32 %v2185_v32, %v2539_v37  ;;  %v635_v42 = vpack.c.bf16 %v599_v30, %v598_v21 }
 0x144   :  { %v513_v36 = vpop.f32.mrf.mxu0 }
 0x145   :  { %920 = vst.msk [vmem:[%s3222_s5 + $0xdc] sm:$0xf] %vm864_vm1, %v1977_v33  ;;  %v634_v38 = vpack.c.bf16 %v597_v34, %v596_v26  ;;  %v1975_v39 = vpack.c.bf16 %v597_v34, %v597_v34  ;;  %v602_v40 = vmax.f32 %v522_v35, 0.0  ;;  %v514_v41 = vadd.f32 %v2539_v37, %v513_v36 }
 0x146   :  { %v2186_v43 = vpop.f32.mrf.mxu0 }
 0x147   :  { %918 = vst.msk [vmem:[%s3222_s5 + $0xd4] sm:$0xf] %vm864_vm1, %v1975_v39  ;;  %v1980_v44 = vpack.c.bf16 %v602_v40, %v602_v40  ;;  %v600_v45 = vmax.f32 %v514_v41, 0.0  ;;  %v525_v46 = vadd.f32 %v2186_v43, %v2539_v37  ;;  %2245 = vmatprep.mubr.msk.bf16.mxu1 %vm944_vm2, %v634_v38 }
 0x148   :  { %v516_v47 = vpop.f32.mrf.mxu0  ;;  %2246 = vmatmul.mubr.msk.bf16.gmra.mxu1 %vm944_vm2, %v635_v42 }
 0x149   :  { %923 = vst.msk [vmem:[%s3222_s5 + $0xe8] sm:$0xf] %vm864_vm1, %v1980_v44  ;;  %v1978_v48 = vpack.c.bf16 %v600_v45, %v600_v45  ;;  %v603_v49 = vmax.f32 %v525_v46, 0.0  ;;  %v517_v50 = vadd.f32 %v2539_v37, %v516_v47 }
 0x14a   :  { %v2189_v51 = vpop.f32.mrf.mxu0 }
 0x14b   :  { %921 = vst.msk [vmem:[%s3222_s5 + $0xe0] sm:$0xf] %vm864_vm1, %v1978_v48  ;;  %v1981_v52 = vpack.c.bf16 %v603_v49, %v603_v49  ;;  %v601_v53 = vmax.f32 %v517_v50, 0.0  ;;  %v538_v54 = vadd.f32 %v2189_v51, %v2539_v37  ;;  %v637_v60 = vpack.c.bf16 %v603_v49, %v602_v40 }
 0x14c   :  { %v529_v55 = vpop.f32.mrf.mxu0 }
 0x14d   :  { %924 = vst.msk [vmem:[%s3222_s5 + $0xec] sm:$0xf] %vm864_vm1, %v1981_v52  ;;  %v636_v56 = vpack.c.bf16 %v601_v53, %v600_v45  ;;  %v1979_v57 = vpack.c.bf16 %v601_v53, %v601_v53  ;;  %v606_v58 = vmax.f32 %v538_v54, 0.0  ;;  %v530_v59 = vadd.f32 %v2539_v37, %v529_v55 }
 0x14e   :  { %v2190_v61 = vpop.f32.mrf.mxu0 }
 0x14f   :  { %922 = vst.msk [vmem:[%s3222_s5 + $0xe4] sm:$0xf] %vm864_vm1, %v1979_v57  ;;  %v1984_v62 = vpack.c.bf16 %v606_v58, %v606_v58  ;;  %v604_v63 = vmax.f32 %v530_v59, 0.0  ;;  %v541_v0 = vadd.f32 %v2190_v61, %v2539_v37  ;;  %2249 = vmatprep.mubr.msk.bf16.mxu1 %vm944_vm2, %v636_v56 }
 0x150   :  { %v532_v1 = vpop.f32.mrf.mxu0  ;;  %2250 = vmatmul.mubr.msk.bf16.gmra.mxu1 %vm944_vm2, %v637_v60 }
 0x151   :  { %927 = vst.msk [vmem:[%s3222_s5 + $0xf8] sm:$0xf] %vm864_vm1, %v1984_v62  ;;  %v1982_v2 = vpack.c.bf16 %v604_v63, %v604_v63  ;;  %v607_v3 = vmax.f32 %v541_v0, 0.0  ;;  %v533_v4 = vadd.f32 %v2539_v37, %v532_v1  ;;  %v2896_v37 = vld [vmem:[%s3223_s4] ss:$0 sm:$0xff] }
 0x153   :  { %925 = vst.msk [vmem:[%s3222_s5 + $0xf0] sm:$0xf] %vm864_vm1, %v1982_v2  ;;  %v1985_v5 = vpack.c.bf16 %v607_v3, %v607_v3  ;;  %v605_v6 = vmax.f32 %v533_v4, 0.0  ;;  %v639_v9 = vpack.c.bf16 %v607_v3, %v606_v58 }
 0x155   :  { %928 = vst.msk [vmem:[%s3222_s5 + $0xfc] sm:$0xf] %vm864_vm1, %v1985_v5  ;;  %v638_v7 = vpack.c.bf16 %v605_v6, %v604_v63  ;;  %v1983_v8 = vpack.c.bf16 %v605_v6, %v605_v6 }
 0x157   :  { %926 = vst.msk [vmem:[%s3222_s5 + $0xf4] sm:$0xf] %vm864_vm1, %v1983_v8  ;;  %2253 = vmatprep.mubr.msk.bf16.mxu1 %vm944_vm2, %v638_v7 }
 0x158   :  { %2254 = vmatmul.mubr.msk.bf16.gmra.mxu1 %vm944_vm2, %v639_v9 }
 0x1a0   :  { %v2195_v10 = vpop.f32.mrf.mxu1 }
 0x1a1   :  { %v1084_v11 = vadd.f32 %v2195_v10, %v2896_v37 }
 0x1a2   :  { %v1075_v12 = vpop.f32.mrf.mxu1 }
 0x1a3   :  { %v1332_v13 = vmax.f32 %v1084_v11, 0.0  ;;  %v1076_v14 = vadd.f32 %v2896_v37, %v1075_v12 }
 0x1a4   :  { %v2196_v15 = vpop.f32.mrf.mxu1 }
 0x1a5   :  { %v1988_v16 = vpack.c.bf16 %v1332_v13, %v1332_v13  ;;  %v1330_v17 = vmax.f32 %v1076_v14, 0.0  ;;  %v1087_v18 = vadd.f32 %v2196_v15, %v2896_v37 }
 0x1a6   :  { %v1078_v19 = vpop.f32.mrf.mxu1 }
 0x1a7   :  { %1653 = vst.msk [vmem:[%s3224_s6 + $0x8] sm:$0xf] %vm1650_vm3, %v1988_v16  ;;  %v1986_v20 = vpack.c.bf16 %v1330_v17, %v1330_v17  ;;  %v1333_v21 = vmax.f32 %v1087_v18, 0.0  ;;  %v1079_v22 = vadd.f32 %v2896_v37, %v1078_v19 }
 0x1a8   :  { %v2199_v23 = vpop.f32.mrf.mxu1 }
 0x1a9   :  { %1651 = vst.msk [vmem:[%s3224_s6] sm:$0xf] %vm1650_vm3, %v1986_v20  ;;  %v1989_v24 = vpack.c.bf16 %v1333_v21, %v1333_v21  ;;  %v1331_v25 = vmax.f32 %v1079_v22, 0.0  ;;  %v1100_v26 = vadd.f32 %v2199_v23, %v2896_v37 }
 0x1aa   :  { %v1091_v27 = vpop.f32.mrf.mxu1 }
 0x1ab   :  { %1654 = vst.msk [vmem:[%s3224_s6 + $0xc] sm:$0xf] %vm1650_vm3, %v1989_v24  ;;  %v1987_v28 = vpack.c.bf16 %v1331_v25, %v1331_v25  ;;  %v1336_v29 = vmax.f32 %v1100_v26, 0.0  ;;  %v1092_v30 = vadd.f32 %v2896_v37, %v1091_v27 }
 0x1ac   :  { %v2200_v31 = vpop.f32.mrf.mxu1 }
 0x1ad   :  { %1652 = vst.msk [vmem:[%s3224_s6 + $0x4] sm:$0xf] %vm1650_vm3, %v1987_v28  ;;  %v1992_v32 = vpack.c.bf16 %v1336_v29, %v1336_v29  ;;  %v1334_v33 = vmax.f32 %v1092_v30, 0.0  ;;  %v1103_v34 = vadd.f32 %v2200_v31, %v2896_v37 }
 0x1ae   :  { %v1094_v35 = vpop.f32.mrf.mxu1 }
 0x1af   :  { %1657 = vst.msk [vmem:[%s3224_s6 + $0x18] sm:$0xf] %vm1650_vm3, %v1992_v32  ;;  %v1990_v36 = vpack.c.bf16 %v1334_v33, %v1334_v33  ;;  %v1337_v38 = vmax.f32 %v1103_v34, 0.0  ;;  %v1095_v39 = vadd.f32 %v2896_v37, %v1094_v35 }
 0x1b0   :  { %v2203_v40 = vpop.f32.mrf.mxu1 }
 0x1b1   :  { %1655 = vst.msk [vmem:[%s3224_s6 + $0x10] sm:$0xf] %vm1650_vm3, %v1990_v36  ;;  %v1993_v41 = vpack.c.bf16 %v1337_v38, %v1337_v38  ;;  %v1335_v42 = vmax.f32 %v1095_v39, 0.0  ;;  %v1116_v43 = vadd.f32 %v2203_v40, %v2896_v37 }
 0x1b2   :  { %v1107_v44 = vpop.f32.mrf.mxu1 }
 0x1b3   :  { %1658 = vst.msk [vmem:[%s3224_s6 + $0x1c] sm:$0xf] %vm1650_vm3, %v1993_v41  ;;  %v1991_v45 = vpack.c.bf16 %v1335_v42, %v1335_v42  ;;  %v1340_v46 = vmax.f32 %v1116_v43, 0.0  ;;  %v1108_v47 = vadd.f32 %v2896_v37, %v1107_v44 }
 0x1b4   :  { %v2204_v48 = vpop.f32.mrf.mxu1 }
 0x1b5   :  { %1656 = vst.msk [vmem:[%s3224_s6 + $0x14] sm:$0xf] %vm1650_vm3, %v1991_v45  ;;  %v1996_v49 = vpack.c.bf16 %v1340_v46, %v1340_v46  ;;  %v1338_v50 = vmax.f32 %v1108_v47, 0.0  ;;  %v1119_v51 = vadd.f32 %v2204_v48, %v2896_v37 }
 0x1b6   :  { %v1110_v52 = vpop.f32.mrf.mxu1 }
 0x1b7   :  { %1661 = vst.msk [vmem:[%s3224_s6 + $0x28] sm:$0xf] %vm1650_vm3, %v1996_v49  ;;  %v1994_v53 = vpack.c.bf16 %v1338_v50, %v1338_v50  ;;  %v1341_v54 = vmax.f32 %v1119_v51, 0.0  ;;  %v1111_v55 = vadd.f32 %v2896_v37, %v1110_v52 }
 0x1b8   :  { %v2207_v56 = vpop.f32.mrf.mxu1 }
 0x1b9   :  { %1659 = vst.msk [vmem:[%s3224_s6 + $0x20] sm:$0xf] %vm1650_vm3, %v1994_v53  ;;  %v1997_v57 = vpack.c.bf16 %v1341_v54, %v1341_v54  ;;  %v1339_v58 = vmax.f32 %v1111_v55, 0.0  ;;  %v1132_v59 = vadd.f32 %v2207_v56, %v2896_v37 }
 0x1ba   :  { %v1123_v60 = vpop.f32.mrf.mxu1 }
 0x1bb   :  { %1662 = vst.msk [vmem:[%s3224_s6 + $0x2c] sm:$0xf] %vm1650_vm3, %v1997_v57  ;;  %v1995_v61 = vpack.c.bf16 %v1339_v58, %v1339_v58  ;;  %v1344_v62 = vmax.f32 %v1132_v59, 0.0  ;;  %v1124_v63 = vadd.f32 %v2896_v37, %v1123_v60 }
 0x1bc   :  { %v2208_v0 = vpop.f32.mrf.mxu1 }
 0x1bd   :  { %1660 = vst.msk [vmem:[%s3224_s6 + $0x24] sm:$0xf] %vm1650_vm3, %v1995_v61  ;;  %v2000_v1 = vpack.c.bf16 %v1344_v62, %v1344_v62  ;;  %v1342_v2 = vmax.f32 %v1124_v63, 0.0  ;;  %v1135_v3 = vadd.f32 %v2208_v0, %v2896_v37 }
 0x1be   :  { %v1126_v4 = vpop.f32.mrf.mxu1 }
 0x1bf   :  { %1665 = vst.msk [vmem:[%s3224_s6 + $0x38] sm:$0xf] %vm1650_vm3, %v2000_v1  ;;  %v1998_v5 = vpack.c.bf16 %v1342_v2, %v1342_v2  ;;  %v1345_v6 = vmax.f32 %v1135_v3, 0.0  ;;  %v1127_v7 = vadd.f32 %v2896_v37, %v1126_v4 }
 0x1c0   :  { %v2211_v8 = vpop.f32.mrf.mxu1 }
 0x1c1   :  { %1663 = vst.msk [vmem:[%s3224_s6 + $0x30] sm:$0xf] %vm1650_vm3, %v1998_v5  ;;  %v2001_v9 = vpack.c.bf16 %v1345_v6, %v1345_v6  ;;  %v1343_v10 = vmax.f32 %v1127_v7, 0.0  ;;  %v1148_v11 = vadd.f32 %v2211_v8, %v2896_v37 }
 0x1c2   :  { %v1139_v12 = vpop.f32.mrf.mxu1 }
 0x1c3   :  { %1666 = vst.msk [vmem:[%s3224_s6 + $0x3c] sm:$0xf] %vm1650_vm3, %v2001_v9  ;;  %v1999_v13 = vpack.c.bf16 %v1343_v10, %v1343_v10  ;;  %v1348_v14 = vmax.f32 %v1148_v11, 0.0  ;;  %v1140_v15 = vadd.f32 %v2896_v37, %v1139_v12 }
 0x1c4   :  { %v2212_v16 = vpop.f32.mrf.mxu1 }
 0x1c5   :  { %1664 = vst.msk [vmem:[%s3224_s6 + $0x34] sm:$0xf] %vm1650_vm3, %v1999_v13  ;;  %v2004_v17 = vpack.c.bf16 %v1348_v14, %v1348_v14  ;;  %v1346_v18 = vmax.f32 %v1140_v15, 0.0  ;;  %v1151_v19 = vadd.f32 %v2212_v16, %v2896_v37 }
 0x1c6   :  { %v1142_v20 = vpop.f32.mrf.mxu1 }
 0x1c7   :  { %1669 = vst.msk [vmem:[%s3224_s6 + $0x48] sm:$0xf] %vm1650_vm3, %v2004_v17  ;;  %v2002_v21 = vpack.c.bf16 %v1346_v18, %v1346_v18  ;;  %v1349_v22 = vmax.f32 %v1151_v19, 0.0  ;;  %v1143_v23 = vadd.f32 %v2896_v37, %v1142_v20 }
 0x1c8   :  { %v2215_v24 = vpop.f32.mrf.mxu1 }
 0x1c9   :  { %1667 = vst.msk [vmem:[%s3224_s6 + $0x40] sm:$0xf] %vm1650_vm3, %v2002_v21  ;;  %v2005_v25 = vpack.c.bf16 %v1349_v22, %v1349_v22  ;;  %v1347_v26 = vmax.f32 %v1143_v23, 0.0  ;;  %v1164_v27 = vadd.f32 %v2215_v24, %v2896_v37 }
 0x1ca   :  { %v1155_v28 = vpop.f32.mrf.mxu1 }
 0x1cb   :  { %1670 = vst.msk [vmem:[%s3224_s6 + $0x4c] sm:$0xf] %vm1650_vm3, %v2005_v25  ;;  %v2003_v29 = vpack.c.bf16 %v1347_v26, %v1347_v26  ;;  %v1352_v30 = vmax.f32 %v1164_v27, 0.0  ;;  %v1156_v31 = vadd.f32 %v2896_v37, %v1155_v28 }
 0x1cc   :  { %v2216_v32 = vpop.f32.mrf.mxu1 }
 0x1cd   :  { %1668 = vst.msk [vmem:[%s3224_s6 + $0x44] sm:$0xf] %vm1650_vm3, %v2003_v29  ;;  %v2008_v33 = vpack.c.bf16 %v1352_v30, %v1352_v30  ;;  %v1350_v34 = vmax.f32 %v1156_v31, 0.0  ;;  %v1167_v35 = vadd.f32 %v2216_v32, %v2896_v37 }
 0x1ce   :  { %v1158_v36 = vpop.f32.mrf.mxu1 }
 0x1cf   :  { %1673 = vst.msk [vmem:[%s3224_s6 + $0x58] sm:$0xf] %vm1650_vm3, %v2008_v33  ;;  %v2006_v38 = vpack.c.bf16 %v1350_v34, %v1350_v34  ;;  %v1353_v39 = vmax.f32 %v1167_v35, 0.0  ;;  %v1159_v40 = vadd.f32 %v2896_v37, %v1158_v36 }
 0x1d0   :  { %v2219_v41 = vpop.f32.mrf.mxu1 }
 0x1d1   :  { %1671 = vst.msk [vmem:[%s3224_s6 + $0x50] sm:$0xf] %vm1650_vm3, %v2006_v38  ;;  %v2009_v42 = vpack.c.bf16 %v1353_v39, %v1353_v39  ;;  %v1351_v43 = vmax.f32 %v1159_v40, 0.0  ;;  %v1180_v44 = vadd.f32 %v2219_v41, %v2896_v37 }
 0x1d2   :  { %v1171_v45 = vpop.f32.mrf.mxu1 }
 0x1d3   :  { %1674 = vst.msk [vmem:[%s3224_s6 + $0x5c] sm:$0xf] %vm1650_vm3, %v2009_v42  ;;  %v2007_v46 = vpack.c.bf16 %v1351_v43, %v1351_v43  ;;  %v1356_v47 = vmax.f32 %v1180_v44, 0.0  ;;  %v1172_v48 = vadd.f32 %v2896_v37, %v1171_v45 }
 0x1d4   :  { %v2220_v49 = vpop.f32.mrf.mxu1 }
 0x1d5   :  { %1672 = vst.msk [vmem:[%s3224_s6 + $0x54] sm:$0xf] %vm1650_vm3, %v2007_v46  ;;  %v2012_v50 = vpack.c.bf16 %v1356_v47, %v1356_v47  ;;  %v1354_v51 = vmax.f32 %v1172_v48, 0.0  ;;  %v1183_v52 = vadd.f32 %v2220_v49, %v2896_v37 }
 0x1d6   :  { %v1174_v53 = vpop.f32.mrf.mxu1 }
 0x1d7   :  { %1677 = vst.msk [vmem:[%s3224_s6 + $0x68] sm:$0xf] %vm1650_vm3, %v2012_v50  ;;  %v2010_v54 = vpack.c.bf16 %v1354_v51, %v1354_v51  ;;  %v1357_v55 = vmax.f32 %v1183_v52, 0.0  ;;  %v1175_v56 = vadd.f32 %v2896_v37, %v1174_v53 }
 0x1d8   :  { %v2223_v57 = vpop.f32.mrf.mxu1 }
 0x1d9   :  { %1675 = vst.msk [vmem:[%s3224_s6 + $0x60] sm:$0xf] %vm1650_vm3, %v2010_v54  ;;  %v2013_v58 = vpack.c.bf16 %v1357_v55, %v1357_v55  ;;  %v1355_v59 = vmax.f32 %v1175_v56, 0.0  ;;  %v1196_v60 = vadd.f32 %v2223_v57, %v2896_v37 }
 0x1da   :  { %v1187_v61 = vpop.f32.mrf.mxu1 }
 0x1db   :  { %1678 = vst.msk [vmem:[%s3224_s6 + $0x6c] sm:$0xf] %vm1650_vm3, %v2013_v58  ;;  %v2011_v62 = vpack.c.bf16 %v1355_v59, %v1355_v59  ;;  %v1360_v63 = vmax.f32 %v1196_v60, 0.0  ;;  %v1188_v0 = vadd.f32 %v2896_v37, %v1187_v61 }
 0x1dc   :  { %v2224_v1 = vpop.f32.mrf.mxu1 }
 0x1dd   :  { %1676 = vst.msk [vmem:[%s3224_s6 + $0x64] sm:$0xf] %vm1650_vm3, %v2011_v62  ;;  %v2016_v2 = vpack.c.bf16 %v1360_v63, %v1360_v63  ;;  %v1358_v3 = vmax.f32 %v1188_v0, 0.0  ;;  %v1199_v4 = vadd.f32 %v2224_v1, %v2896_v37 }
 0x1de   :  { %v1190_v5 = vpop.f32.mrf.mxu1 }
 0x1df   :  { %1681 = vst.msk [vmem:[%s3224_s6 + $0x78] sm:$0xf] %vm1650_vm3, %v2016_v2  ;;  %v2014_v6 = vpack.c.bf16 %v1358_v3, %v1358_v3  ;;  %v1361_v7 = vmax.f32 %v1199_v4, 0.0  ;;  %v1191_v8 = vadd.f32 %v2896_v37, %v1190_v5 }
 0x1e0   :  { %v2227_v9 = vpop.f32.mrf.mxu1 }
 0x1e1   :  { %1679 = vst.msk [vmem:[%s3224_s6 + $0x70] sm:$0xf] %vm1650_vm3, %v2014_v6  ;;  %v2017_v10 = vpack.c.bf16 %v1361_v7, %v1361_v7  ;;  %v1359_v11 = vmax.f32 %v1191_v8, 0.0  ;;  %v1212_v12 = vadd.f32 %v2227_v9, %v2896_v37 }
 0x1e2   :  { %v1203_v13 = vpop.f32.mrf.mxu1 }
 0x1e3   :  { %1682 = vst.msk [vmem:[%s3224_s6 + $0x7c] sm:$0xf] %vm1650_vm3, %v2017_v10  ;;  %v2015_v14 = vpack.c.bf16 %v1359_v11, %v1359_v11  ;;  %v1364_v15 = vmax.f32 %v1212_v12, 0.0  ;;  %v1204_v16 = vadd.f32 %v2896_v37, %v1203_v13 }
 0x1e4   :  { %v2228_v17 = vpop.f32.mrf.mxu1 }
 0x1e5   :  { %1680 = vst.msk [vmem:[%s3224_s6 + $0x74] sm:$0xf] %vm1650_vm3, %v2015_v14  ;;  %v2020_v18 = vpack.c.bf16 %v1364_v15, %v1364_v15  ;;  %v1362_v19 = vmax.f32 %v1204_v16, 0.0  ;;  %v1215_v20 = vadd.f32 %v2228_v17, %v2896_v37 }
 0x1e6   :  { %v1206_v21 = vpop.f32.mrf.mxu1 }
 0x1e7   :  { %1685 = vst.msk [vmem:[%s3224_s6 + $0x88] sm:$0xf] %vm1650_vm3, %v2020_v18  ;;  %v2018_v22 = vpack.c.bf16 %v1362_v19, %v1362_v19  ;;  %v1365_v23 = vmax.f32 %v1215_v20, 0.0  ;;  %v1207_v24 = vadd.f32 %v2896_v37, %v1206_v21 }
 0x1e8   :  { %v2231_v25 = vpop.f32.mrf.mxu1 }
 0x1e9   :  { %1683 = vst.msk [vmem:[%s3224_s6 + $0x80] sm:$0xf] %vm1650_vm3, %v2018_v22  ;;  %v2021_v26 = vpack.c.bf16 %v1365_v23, %v1365_v23  ;;  %v1363_v27 = vmax.f32 %v1207_v24, 0.0  ;;  %v1228_v28 = vadd.f32 %v2231_v25, %v2896_v37 }
 0x1ea   :  { %v1219_v29 = vpop.f32.mrf.mxu1 }
 0x1eb   :  { %1686 = vst.msk [vmem:[%s3224_s6 + $0x8c] sm:$0xf] %vm1650_vm3, %v2021_v26  ;;  %v2019_v30 = vpack.c.bf16 %v1363_v27, %v1363_v27  ;;  %v1368_v31 = vmax.f32 %v1228_v28, 0.0  ;;  %v1220_v32 = vadd.f32 %v2896_v37, %v1219_v29 }
 0x1ec   :  { %v2232_v33 = vpop.f32.mrf.mxu1 }
 0x1ed   :  { %1684 = vst.msk [vmem:[%s3224_s6 + $0x84] sm:$0xf] %vm1650_vm3, %v2019_v30  ;;  %v2024_v34 = vpack.c.bf16 %v1368_v31, %v1368_v31  ;;  %v1366_v35 = vmax.f32 %v1220_v32, 0.0  ;;  %v1231_v36 = vadd.f32 %v2232_v33, %v2896_v37 }
 0x1ee   :  { %v1222_v38 = vpop.f32.mrf.mxu1 }
 0x1ef   :  { %1689 = vst.msk [vmem:[%s3224_s6 + $0x98] sm:$0xf] %vm1650_vm3, %v2024_v34  ;;  %v2022_v39 = vpack.c.bf16 %v1366_v35, %v1366_v35  ;;  %v1369_v40 = vmax.f32 %v1231_v36, 0.0  ;;  %v1223_v41 = vadd.f32 %v2896_v37, %v1222_v38 }
 0x1f0   :  { %v2235_v42 = vpop.f32.mrf.mxu1 }
 0x1f1   :  { %1687 = vst.msk [vmem:[%s3224_s6 + $0x90] sm:$0xf] %vm1650_vm3, %v2022_v39  ;;  %v2025_v43 = vpack.c.bf16 %v1369_v40, %v1369_v40  ;;  %v1367_v44 = vmax.f32 %v1223_v41, 0.0  ;;  %v1244_v45 = vadd.f32 %v2235_v42, %v2896_v37 }
 0x1f2   :  { %v1235_v46 = vpop.f32.mrf.mxu1 }
 0x1f3   :  { %1690 = vst.msk [vmem:[%s3224_s6 + $0x9c] sm:$0xf] %vm1650_vm3, %v2025_v43  ;;  %v2023_v47 = vpack.c.bf16 %v1367_v44, %v1367_v44  ;;  %v1372_v48 = vmax.f32 %v1244_v45, 0.0  ;;  %v1236_v49 = vadd.f32 %v2896_v37, %v1235_v46 }
 0x1f4   :  { %v2236_v50 = vpop.f32.mrf.mxu1 }
 0x1f5   :  { %1688 = vst.msk [vmem:[%s3224_s6 + $0x94] sm:$0xf] %vm1650_vm3, %v2023_v47  ;;  %v2028_v51 = vpack.c.bf16 %v1372_v48, %v1372_v48  ;;  %v1370_v52 = vmax.f32 %v1236_v49, 0.0  ;;  %v1247_v53 = vadd.f32 %v2236_v50, %v2896_v37 }
 0x1f6   :  { %v1238_v54 = vpop.f32.mrf.mxu1 }
 0x1f7   :  { %1693 = vst.msk [vmem:[%s3224_s6 + $0xa8] sm:$0xf] %vm1650_vm3, %v2028_v51  ;;  %v2026_v55 = vpack.c.bf16 %v1370_v52, %v1370_v52  ;;  %v1373_v56 = vmax.f32 %v1247_v53, 0.0  ;;  %v1239_v57 = vadd.f32 %v2896_v37, %v1238_v54 }
 0x1f8   :  { %v2239_v58 = vpop.f32.mrf.mxu1 }
 0x1f9   :  { %1691 = vst.msk [vmem:[%s3224_s6 + $0xa0] sm:$0xf] %vm1650_vm3, %v2026_v55  ;;  %v2029_v59 = vpack.c.bf16 %v1373_v56, %v1373_v56  ;;  %v1371_v60 = vmax.f32 %v1239_v57, 0.0  ;;  %v1260_v61 = vadd.f32 %v2239_v58, %v2896_v37 }
 0x1fa   :  { %v1251_v62 = vpop.f32.mrf.mxu1 }
 0x1fb   :  { %1694 = vst.msk [vmem:[%s3224_s6 + $0xac] sm:$0xf] %vm1650_vm3, %v2029_v59  ;;  %v2027_v63 = vpack.c.bf16 %v1371_v60, %v1371_v60  ;;  %v1376_v0 = vmax.f32 %v1260_v61, 0.0  ;;  %v1252_v1 = vadd.f32 %v2896_v37, %v1251_v62 }
 0x1fc   :  { %v2240_v2 = vpop.f32.mrf.mxu1 }
 0x1fd   :  { %1692 = vst.msk [vmem:[%s3224_s6 + $0xa4] sm:$0xf] %vm1650_vm3, %v2027_v63  ;;  %v2032_v3 = vpack.c.bf16 %v1376_v0, %v1376_v0  ;;  %v1374_v4 = vmax.f32 %v1252_v1, 0.0  ;;  %v1263_v5 = vadd.f32 %v2240_v2, %v2896_v37 }
 0x1fe   :  { %v1254_v6 = vpop.f32.mrf.mxu1 }
 0x1ff   :  { %1697 = vst.msk [vmem:[%s3224_s6 + $0xb8] sm:$0xf] %vm1650_vm3, %v2032_v3  ;;  %v2030_v7 = vpack.c.bf16 %v1374_v4, %v1374_v4  ;;  %v1377_v8 = vmax.f32 %v1263_v5, 0.0  ;;  %v1255_v9 = vadd.f32 %v2896_v37, %v1254_v6 }
 0x200   :  { %v2243_v10 = vpop.f32.mrf.mxu1 }
 0x201   :  { %1695 = vst.msk [vmem:[%s3224_s6 + $0xb0] sm:$0xf] %vm1650_vm3, %v2030_v7  ;;  %v2033_v11 = vpack.c.bf16 %v1377_v8, %v1377_v8  ;;  %v1375_v12 = vmax.f32 %v1255_v9, 0.0  ;;  %v1276_v13 = vadd.f32 %v2243_v10, %v2896_v37 }
 0x202   :  { %v1267_v14 = vpop.f32.mrf.mxu1 }
 0x203   :  { %1698 = vst.msk [vmem:[%s3224_s6 + $0xbc] sm:$0xf] %vm1650_vm3, %v2033_v11  ;;  %v2031_v15 = vpack.c.bf16 %v1375_v12, %v1375_v12  ;;  %v1380_v16 = vmax.f32 %v1276_v13, 0.0  ;;  %v1268_v17 = vadd.f32 %v2896_v37, %v1267_v14 }
 0x204   :  { %v2244_v18 = vpop.f32.mrf.mxu1 }
 0x205   :  { %1696 = vst.msk [vmem:[%s3224_s6 + $0xb4] sm:$0xf] %vm1650_vm3, %v2031_v15  ;;  %v2036_v19 = vpack.c.bf16 %v1380_v16, %v1380_v16  ;;  %v1378_v20 = vmax.f32 %v1268_v17, 0.0  ;;  %v1279_v21 = vadd.f32 %v2244_v18, %v2896_v37 }
 0x206   :  { %v1270_v22 = vpop.f32.mrf.mxu1 }
 0x207   :  { %1701 = vst.msk [vmem:[%s3224_s6 + $0xc8] sm:$0xf] %vm1650_vm3, %v2036_v19  ;;  %v2034_v23 = vpack.c.bf16 %v1378_v20, %v1378_v20  ;;  %v1381_v24 = vmax.f32 %v1279_v21, 0.0  ;;  %v1271_v25 = vadd.f32 %v2896_v37, %v1270_v22 }
 0x208   :  { %v2247_v26 = vpop.f32.mrf.mxu1 }
 0x209   :  { %1699 = vst.msk [vmem:[%s3224_s6 + $0xc0] sm:$0xf] %vm1650_vm3, %v2034_v23  ;;  %v2037_v27 = vpack.c.bf16 %v1381_v24, %v1381_v24  ;;  %v1379_v28 = vmax.f32 %v1271_v25, 0.0  ;;  %v1292_v29 = vadd.f32 %v2247_v26, %v2896_v37 }
 0x20a   :  { %v1283_v30 = vpop.f32.mrf.mxu1 }
 0x20b   :  { %1702 = vst.msk [vmem:[%s3224_s6 + $0xcc] sm:$0xf] %vm1650_vm3, %v2037_v27  ;;  %v2035_v31 = vpack.c.bf16 %v1379_v28, %v1379_v28  ;;  %v1384_v32 = vmax.f32 %v1292_v29, 0.0  ;;  %v1284_v33 = vadd.f32 %v2896_v37, %v1283_v30 }
 0x20c   :  { %v2248_v34 = vpop.f32.mrf.mxu1 }
 0x20d   :  { %1700 = vst.msk [vmem:[%s3224_s6 + $0xc4] sm:$0xf] %vm1650_vm3, %v2035_v31  ;;  %v2040_v35 = vpack.c.bf16 %v1384_v32, %v1384_v32  ;;  %v1382_v36 = vmax.f32 %v1284_v33, 0.0  ;;  %v1295_v38 = vadd.f32 %v2248_v34, %v2896_v37 }
 0x20e   :  { %v1286_v39 = vpop.f32.mrf.mxu1 }
 0x20f   :  { %1705 = vst.msk [vmem:[%s3224_s6 + $0xd8] sm:$0xf] %vm1650_vm3, %v2040_v35  ;;  %v2038_v40 = vpack.c.bf16 %v1382_v36, %v1382_v36  ;;  %v1385_v41 = vmax.f32 %v1295_v38, 0.0  ;;  %v1287_v42 = vadd.f32 %v2896_v37, %v1286_v39 }
 0x210   :  { %v2251_v43 = vpop.f32.mrf.mxu1 }
 0x211   :  { %1703 = vst.msk [vmem:[%s3224_s6 + $0xd0] sm:$0xf] %vm1650_vm3, %v2038_v40  ;;  %v2041_v44 = vpack.c.bf16 %v1385_v41, %v1385_v41  ;;  %v1383_v45 = vmax.f32 %v1287_v42, 0.0  ;;  %v1308_v46 = vadd.f32 %v2251_v43, %v2896_v37 }
 0x212   :  { %v1299_v47 = vpop.f32.mrf.mxu1 }
 0x213   :  { %1706 = vst.msk [vmem:[%s3224_s6 + $0xdc] sm:$0xf] %vm1650_vm3, %v2041_v44  ;;  %v2039_v48 = vpack.c.bf16 %v1383_v45, %v1383_v45  ;;  %v1388_v49 = vmax.f32 %v1308_v46, 0.0  ;;  %v1300_v50 = vadd.f32 %v2896_v37, %v1299_v47 }
 0x214   :  { %v2252_v51 = vpop.f32.mrf.mxu1 }
 0x215   :  { %1704 = vst.msk [vmem:[%s3224_s6 + $0xd4] sm:$0xf] %vm1650_vm3, %v2039_v48  ;;  %v2044_v52 = vpack.c.bf16 %v1388_v49, %v1388_v49  ;;  %v1386_v53 = vmax.f32 %v1300_v50, 0.0  ;;  %v1311_v54 = vadd.f32 %v2252_v51, %v2896_v37 }
 0x216   :  { %v1302_v55 = vpop.f32.mrf.mxu1 }
 0x217   :  { %1709 = vst.msk [vmem:[%s3224_s6 + $0xe8] sm:$0xf] %vm1650_vm3, %v2044_v52  ;;  %v2042_v56 = vpack.c.bf16 %v1386_v53, %v1386_v53  ;;  %v1389_v57 = vmax.f32 %v1311_v54, 0.0  ;;  %v1303_v58 = vadd.f32 %v2896_v37, %v1302_v55 }
 0x218   :  { %v2255_v59 = vpop.f32.mrf.mxu1 }
 0x219   :  { %1707 = vst.msk [vmem:[%s3224_s6 + $0xe0] sm:$0xf] %vm1650_vm3, %v2042_v56  ;;  %v2045_v60 = vpack.c.bf16 %v1389_v57, %v1389_v57  ;;  %v1387_v61 = vmax.f32 %v1303_v58, 0.0  ;;  %v1324_v62 = vadd.f32 %v2255_v59, %v2896_v37 }
 0x21a   :  { %v1315_v63 = vpop.f32.mrf.mxu1 }
 0x21b   :  { %1710 = vst.msk [vmem:[%s3224_s6 + $0xec] sm:$0xf] %vm1650_vm3, %v2045_v60  ;;  %v2043_v0 = vpack.c.bf16 %v1387_v61, %v1387_v61  ;;  %v1392_v1 = vmax.f32 %v1324_v62, 0.0  ;;  %v1316_v2 = vadd.f32 %v2896_v37, %v1315_v63 }
 0x21c   :  { %v2256_v3 = vpop.f32.mrf.mxu1 }
 0x21d   :  { %1708 = vst.msk [vmem:[%s3224_s6 + $0xe4] sm:$0xf] %vm1650_vm3, %v2043_v0  ;;  %v2048_v4 = vpack.c.bf16 %v1392_v1, %v1392_v1  ;;  %v1390_v5 = vmax.f32 %v1316_v2, 0.0  ;;  %v1327_v6 = vadd.f32 %v2256_v3, %v2896_v37 }
 0x21e   :  { %v1318_v7 = vpop.f32.mrf.mxu1 }
 0x21f   :  { %1713 = vst.msk [vmem:[%s3224_s6 + $0xf8] sm:$0xf] %vm1650_vm3, %v2048_v4  ;;  %v2046_v8 = vpack.c.bf16 %v1390_v5, %v1390_v5  ;;  %v1393_v9 = vmax.f32 %v1327_v6, 0.0  ;;  %v1319_v10 = vadd.f32 %v2896_v37, %v1318_v7 }
 0x221   :  { %1711 = vst.msk [vmem:[%s3224_s6 + $0xf0] sm:$0xf] %vm1650_vm3, %v2046_v8  ;;  %v2049_v11 = vpack.c.bf16 %v1393_v9, %v1393_v9  ;;  %v1391_v12 = vmax.f32 %v1319_v10, 0.0 }
 0x223   :  { %1714 = vst.msk [vmem:[%s3224_s6 + $0xfc] sm:$0xf] %vm1650_vm3, %v2049_v11  ;;  %v2047_v13 = vpack.c.bf16 %v1391_v12, %v1391_v12 }
 0x225   :  { %1712 = vst.msk [vmem:[%s3224_s6 + $0xf4] sm:$0xf] %vm1650_vm3, %v2047_v13 }

// kernel: model_forward.6
= control target key start
LH: loop header
LB: loop body
LE: loop exit
PB: predicated region body
PF: predicated region fallthrough
CT: control target
= control target key end

     0   :  { %vm118_vm0 = vcmask 523264   ;;  %vm320_vm1 = vcmask 257024   ;;  %vm360_vm2 = vcmask 261120   ;;  %vm562_vm3 = vcmask 125952   ;;  %s1026_s1 = inlined_call_operand.vmem [shape: bf16[64,32], index: 1, kind: input, shape index: {}]   ;;  %s1027_s0 = inlined_call_operand.vmem [shape: bf16[128,64], index: 0, kind: input, shape index: {}]   ;;  %s1028_s3 = inlined_call_operand.vmem [shape: bf16[32,16], index: 3, kind: input, shape index: {}]   ;;  %s1029_s2 = inlined_call_operand.vmem [shape: f32[1,32], index: 2, kind: input, shape index: {}]   ;;  %s1030_s5 = inlined_call_operand.vmem [shape: bf16[128,32], index: 5, kind: output, shape index: {0}]   ;;  %s1031_s4 = inlined_call_operand.vmem [shape: f32[1,16], index: 4, kind: input, shape index: {}]   ;;  %s1032_s6 = inlined_call_operand.vmem [shape: bf16[128,16], index: 6, kind: output, shape index: {1}]  }
   0x1   :  { %v749_v0 = vld [vmem:[%s1026_s1 + $0x18] sm:$0xff]   ;;  %v750_v1 = vld [vmem:[%s1026_s1 + $0x10] sm:$0xff]   ;;  %v751_v2 = vld [vmem:[%s1026_s1 + $0x8] sm:$0xff]  }
   0x2   :  { %705 = vmatprep.subr.bf16.mxu0 %v749_v0  ;;  %v753_v3 = vld [vmem:[%s1027_s0] sm:$0xff]   ;;  %v754_v5 = vld [vmem:[%s1027_s0 + $0x8] sm:$0xff]   ;;  %v755_v6 = vld [vmem:[%s1027_s0 + $0x10] sm:$0xff]  }
   0x3   :  { %706 = vmatpush3.bf16.msra.mxu0 %v749_v0  ;;  %713 = vmatprep.mubr.msk.bf16.mxu0 %vm118_vm0, %v753_v3  ;;  %v752_v4 = vld [vmem:[%s1026_s1] sm:$0xff]   ;;  %v756_v7 = vld [vmem:[%s1027_s0 + $0x18] sm:$0xff]   ;;  %v758_v9 = vld [vmem:[%s1027_s0 + $0x28] sm:$0xff]  }
   0x4   :  { %707 = vmatprep.subr.bf16.mxu0 %v750_v1  ;;  %v757_v8 = vld [vmem:[%s1027_s0 + $0x20] sm:$0xff]   ;;  %v759_v10 = vld [vmem:[%s1027_s0 + $0x30] sm:$0xff]   ;;  %v760_v11 = vld [vmem:[%s1027_s0 + $0x38] sm:$0xff]  }
   0x5   :  { %v761_v12 = vld [vmem:[%s1028_s3 + $0x8] sm:$0xff]   ;;  %v762_v13 = vld [vmem:[%s1028_s3] sm:$0xff]  }
   0x6   :  { %729 = vmatprep.subr.bf16.mxu1 %v761_v12  ;;  %v851_v14 = vld [vmem:[%s1029_s2] ss:$0 sm:$0xff] }
   0x7   :  { %708 = vmatpush3.bf16.msra.mxu0 %v750_v1  ;;  %730 = vmatpush3.bf16.msra.mxu1 %v761_v12 }
   0x8   :  { %709 = vmatprep.subr.bf16.mxu0 %v751_v2  ;;  %731 = vmatprep.subr.bf16.mxu1 %v762_v13 }
   0xb   :  { %710 = vmatpush3.bf16.msra.mxu0 %v751_v2  ;;  %732 = vmatpush3.bf16.msra.mxu1 %v762_v13 }
   0xc   :  { %711 = vmatprep.subr.bf16.mxu0 %v752_v4 }
   0xf   :  { %712 = vmatpush3.bf16.msra.mxu0 %v752_v4 }
  0x12   :  { %714 = vmatmul.mubr.msk.bf16.vlgmr.msra.gmra.mxu0 %vm118_vm0, %v754_v5 }
  0x13   :  { %717 = vmatprep.mubr.msk.bf16.mxu0 %vm118_vm0, %v755_v6 }
  0x1a   :  { %718 = vmatmul.mubr.msk.bf16.gmra.mxu0 %vm118_vm0, %v756_v7 }
  0x1b   :  { %721 = vmatprep.mubr.msk.bf16.mxu0 %vm118_vm0, %v757_v8 }
  0x22   :  { %722 = vmatmul.mubr.msk.bf16.gmra.mxu0 %vm118_vm0, %v758_v9 }
  0x23   :  { %725 = vmatprep.mubr.msk.bf16.mxu0 %vm118_vm0, %v759_v10 }
  0x2a   :  { %726 = vmatmul.mubr.msk.bf16.gmra.mxu0 %vm118_vm0, %v760_v11 }
  0xd2   :  { %v715_v15 = vpop.f32.mrf.mxu0 }
  0xd3   :  { %v186_v16 = vadd.f32 %v715_v15, %v851_v14 }
  0xd4   :  { %v177_v17 = vpop.f32.mrf.mxu0 }
  0xd5   :  { %v242_v18 = vmax.f32 %v186_v16, 0.0  ;;  %v178_v19 = vadd.f32 %v851_v14, %v177_v17 }
  0xd6   :  { %v716_v20 = vpop.f32.mrf.mxu0 }
  0xd7   :  { %v653_v21 = vpack.c.bf16 %v242_v18, %v242_v18  ;;  %v240_v22 = vmax.f32 %v178_v19, 0.0  ;;  %v189_v23 = vadd.f32 %v716_v20, %v851_v14 }
  0xd8   :  { %v180_v24 = vpop.f32.mrf.mxu0 }
  0xd9   :  { %323 = vst.msk [vmem:[%s1030_s5 + $0x8] sm:$0xf] %vm320_vm1, %v653_v21  ;;  %v651_v25 = vpack.c.bf16 %v240_v22, %v240_v22  ;;  %v243_v26 = vmax.f32 %v189_v23, 0.0  ;;  %v181_v27 = vadd.f32 %v851_v14, %v180_v24 }
  0xda   :  { %v719_v28 = vpop.f32.mrf.mxu0 }
  0xdb   :  { %321 = vst.msk [vmem:[%s1030_s5] sm:$0xf] %vm320_vm1, %v651_v25  ;;  %v654_v29 = vpack.c.bf16 %v243_v26, %v243_v26  ;;  %v241_v30 = vmax.f32 %v181_v27, 0.0  ;;  %v202_v31 = vadd.f32 %v719_v28, %v851_v14  ;;  %v257_v37 = vpack.c.bf16 %v243_v26, %v242_v18 }
  0xdc   :  { %v193_v32 = vpop.f32.mrf.mxu0 }
  0xdd   :  { %324 = vst.msk [vmem:[%s1030_s5 + $0xc] sm:$0xf] %vm320_vm1, %v654_v29  ;;  %v652_v33 = vpack.c.bf16 %v241_v30, %v241_v30  ;;  %v246_v34 = vmax.f32 %v202_v31, 0.0  ;;  %v194_v35 = vadd.f32 %v851_v14, %v193_v32  ;;  %v256_v36 = vpack.c.bf16 %v241_v30, %v240_v22 }
  0xde   :  { %v720_v38 = vpop.f32.mrf.mxu0 }
  0xdf   :  { %322 = vst.msk [vmem:[%s1030_s5 + $0x4] sm:$0xf] %vm320_vm1, %v652_v33  ;;  %v657_v39 = vpack.c.bf16 %v246_v34, %v246_v34  ;;  %v244_v40 = vmax.f32 %v194_v35, 0.0  ;;  %v205_v41 = vadd.f32 %v720_v38, %v851_v14  ;;  %733 = vmatprep.mubr.msk.bf16.mxu1 %vm360_vm2, %v256_v36 }
  0xe0   :  { %v196_v42 = vpop.f32.mrf.mxu0  ;;  %734 = vmatmul.mubr.msk.bf16.vlgmr.msra.gmra.mxu1 %vm360_vm2, %v257_v37 }
  0xe1   :  { %327 = vst.msk [vmem:[%s1030_s5 + $0x18] sm:$0xf] %vm320_vm1, %v657_v39  ;;  %v655_v43 = vpack.c.bf16 %v244_v40, %v244_v40  ;;  %v247_v44 = vmax.f32 %v205_v41, 0.0  ;;  %v197_v45 = vadd.f32 %v851_v14, %v196_v42 }
  0xe2   :  { %v723_v46 = vpop.f32.mrf.mxu0 }
  0xe3   :  { %325 = vst.msk [vmem:[%s1030_s5 + $0x10] sm:$0xf] %vm320_vm1, %v655_v43  ;;  %v658_v47 = vpack.c.bf16 %v247_v44, %v247_v44  ;;  %v245_v48 = vmax.f32 %v197_v45, 0.0  ;;  %v218_v49 = vadd.f32 %v723_v46, %v851_v14  ;;  %v259_v55 = vpack.c.bf16 %v247_v44, %v246_v34 }
  0xe4   :  { %v209_v50 = vpop.f32.mrf.mxu0 }
  0xe5   :  { %328 = vst.msk [vmem:[%s1030_s5 + $0x1c] sm:$0xf] %vm320_vm1, %v658_v47  ;;  %v258_v51 = vpack.c.bf16 %v245_v48, %v244_v40  ;;  %v656_v52 = vpack.c.bf16 %v245_v48, %v245_v48  ;;  %v250_v53 = vmax.f32 %v218_v49, 0.0  ;;  %v210_v54 = vadd.f32 %v851_v14, %v209_v50 }
  0xe6   :  { %v724_v56 = vpop.f32.mrf.mxu0 }
  0xe7   :  { %326 = vst.msk [vmem:[%s1030_s5 + $0x14] sm:$0xf] %vm320_vm1, %v656_v52  ;;  %v661_v57 = vpack.c.bf16 %v250_v53, %v250_v53  ;;  %v248_v58 = vmax.f32 %v210_v54, 0.0  ;;  %v221_v59 = vadd.f32 %v724_v56, %v851_v14  ;;  %737 = vmatprep.mubr.msk.bf16.mxu1 %vm360_vm2, %v258_v51 }
  0xe8   :  { %v212_v60 = vpop.f32.mrf.mxu0  ;;  %738 = vmatmul.mubr.msk.bf16.gmra.mxu1 %vm360_vm2, %v259_v55 }
  0xe9   :  { %331 = vst.msk [vmem:[%s1030_s5 + $0x28] sm:$0xf] %vm320_vm1, %v661_v57  ;;  %v659_v61 = vpack.c.bf16 %v248_v58, %v248_v58  ;;  %v251_v62 = vmax.f32 %v221_v59, 0.0  ;;  %v213_v63 = vadd.f32 %v851_v14, %v212_v60 }
  0xea   :  { %v727_v0 = vpop.f32.mrf.mxu0 }
  0xeb   :  { %329 = vst.msk [vmem:[%s1030_s5 + $0x20] sm:$0xf] %vm320_vm1, %v659_v61  ;;  %v662_v1 = vpack.c.bf16 %v251_v62, %v251_v62  ;;  %v249_v2 = vmax.f32 %v213_v63, 0.0  ;;  %v234_v3 = vadd.f32 %v727_v0, %v851_v14  ;;  %v261_v9 = vpack.c.bf16 %v251_v62, %v250_v53 }
  0xec   :  { %v225_v4 = vpop.f32.mrf.mxu0 }
  0xed   :  { %332 = vst.msk [vmem:[%s1030_s5 + $0x2c] sm:$0xf] %vm320_vm1, %v662_v1  ;;  %v260_v5 = vpack.c.bf16 %v249_v2, %v248_v58  ;;  %v660_v6 = vpack.c.bf16 %v249_v2, %v249_v2  ;;  %v254_v7 = vmax.f32 %v234_v3, 0.0  ;;  %v226_v8 = vadd.f32 %v851_v14, %v225_v4 }
  0xee   :  { %v728_v10 = vpop.f32.mrf.mxu0 }
  0xef   :  { %330 = vst.msk [vmem:[%s1030_s5 + $0x24] sm:$0xf] %vm320_vm1, %v660_v6  ;;  %v665_v11 = vpack.c.bf16 %v254_v7, %v254_v7  ;;  %v252_v12 = vmax.f32 %v226_v8, 0.0  ;;  %v237_v13 = vadd.f32 %v728_v10, %v851_v14  ;;  %741 = vmatprep.mubr.msk.bf16.mxu1 %vm360_vm2, %v260_v5 }
  0xf0   :  { %v228_v15 = vpop.f32.mrf.mxu0  ;;  %742 = vmatmul.mubr.msk.bf16.gmra.mxu1 %vm360_vm2, %v261_v9 }
  0xf1   :  { %335 = vst.msk [vmem:[%s1030_s5 + $0x38] sm:$0xf] %vm320_vm1, %v665_v11  ;;  %v663_v16 = vpack.c.bf16 %v252_v12, %v252_v12  ;;  %v255_v17 = vmax.f32 %v237_v13, 0.0  ;;  %v229_v18 = vadd.f32 %v851_v14, %v228_v15  ;;  %v944_v14 = vld [vmem:[%s1031_s4] ss:$0 sm:$0xff] }
  0xf3   :  { %333 = vst.msk [vmem:[%s1030_s5 + $0x30] sm:$0xf] %vm320_vm1, %v663_v16  ;;  %v666_v19 = vpack.c.bf16 %v255_v17, %v255_v17  ;;  %v253_v20 = vmax.f32 %v229_v18, 0.0  ;;  %v263_v23 = vpack.c.bf16 %v255_v17, %v254_v7 }
  0xf5   :  { %336 = vst.msk [vmem:[%s1030_s5 + $0x3c] sm:$0xf] %vm320_vm1, %v666_v19  ;;  %v262_v21 = vpack.c.bf16 %v253_v20, %v252_v12  ;;  %v664_v22 = vpack.c.bf16 %v253_v20, %v253_v20 }
  0xf7   :  { %334 = vst.msk [vmem:[%s1030_s5 + $0x34] sm:$0xf] %vm320_vm1, %v664_v22  ;;  %745 = vmatprep.mubr.msk.bf16.mxu1 %vm360_vm2, %v262_v21 }
  0xf8   :  { %746 = vmatmul.mubr.msk.bf16.gmra.mxu1 %vm360_vm2, %v263_v23 }
 0x1a0   :  { %v735_v24 = vpop.f32.mrf.mxu1 }
 0x1a1   :  { %v428_v25 = vadd.f32 %v735_v24, %v944_v14 }
 0x1a2   :  { %v419_v26 = vpop.f32.mrf.mxu1 }
 0x1a3   :  { %v484_v27 = vmax.f32 %v428_v25, 0.0  ;;  %v420_v28 = vadd.f32 %v944_v14, %v419_v26 }
 0x1a4   :  { %v736_v29 = vpop.f32.mrf.mxu1 }
 0x1a5   :  { %v669_v30 = vpack.c.bf16 %v484_v27, %v484_v27  ;;  %v482_v31 = vmax.f32 %v420_v28, 0.0  ;;  %v431_v32 = vadd.f32 %v736_v29, %v944_v14 }
 0x1a6   :  { %v422_v33 = vpop.f32.mrf.mxu1 }
 0x1a7   :  { %565 = vst.msk [vmem:[%s1032_s6 + $0x8] sm:$0xf] %vm562_vm3, %v669_v30  ;;  %v667_v34 = vpack.c.bf16 %v482_v31, %v482_v31  ;;  %v485_v35 = vmax.f32 %v431_v32, 0.0  ;;  %v423_v36 = vadd.f32 %v944_v14, %v422_v33 }
 0x1a8   :  { %v739_v37 = vpop.f32.mrf.mxu1 }
 0x1a9   :  { %563 = vst.msk [vmem:[%s1032_s6] sm:$0xf] %vm562_vm3, %v667_v34  ;;  %v670_v38 = vpack.c.bf16 %v485_v35, %v485_v35  ;;  %v483_v39 = vmax.f32 %v423_v36, 0.0  ;;  %v444_v40 = vadd.f32 %v739_v37, %v944_v14 }
 0x1aa   :  { %v435_v41 = vpop.f32.mrf.mxu1 }
 0x1ab   :  { %566 = vst.msk [vmem:[%s1032_s6 + $0xc] sm:$0xf] %vm562_vm3, %v670_v38  ;;  %v668_v42 = vpack.c.bf16 %v483_v39, %v483_v39  ;;  %v488_v43 = vmax.f32 %v444_v40, 0.0  ;;  %v436_v44 = vadd.f32 %v944_v14, %v435_v41 }
 0x1ac   :  { %v740_v45 = vpop.f32.mrf.mxu1 }
 0x1ad   :  { %564 = vst.msk [vmem:[%s1032_s6 + $0x4] sm:$0xf] %vm562_vm3, %v668_v42  ;;  %v673_v46 = vpack.c.bf16 %v488_v43, %v488_v43  ;;  %v486_v47 = vmax.f32 %v436_v44, 0.0  ;;  %v447_v48 = vadd.f32 %v740_v45, %v944_v14 }
 0x1ae   :  { %v438_v49 = vpop.f32.mrf.mxu1 }
 0x1af   :  { %569 = vst.msk [vmem:[%s1032_s6 + $0x18] sm:$0xf] %vm562_vm3, %v673_v46  ;;  %v671_v50 = vpack.c.bf16 %v486_v47, %v486_v47  ;;  %v489_v51 = vmax.f32 %v447_v48, 0.0  ;;  %v439_v52 = vadd.f32 %v944_v14, %v438_v49 }
 0x1b0   :  { %v743_v53 = vpop.f32.mrf.mxu1 }
 0x1b1   :  { %567 = vst.msk [vmem:[%s1032_s6 + $0x10] sm:$0xf] %vm562_vm3, %v671_v50  ;;  %v674_v54 = vpack.c.bf16 %v489_v51, %v489_v51  ;;  %v487_v55 = vmax.f32 %v439_v52, 0.0  ;;  %v460_v56 = vadd.f32 %v743_v53, %v944_v14 }
 0x1b2   :  { %v451_v57 = vpop.f32.mrf.mxu1 }
 0x1b3   :  { %570 = vst.msk [vmem:[%s1032_s6 + $0x1c] sm:$0xf] %vm562_vm3, %v674_v54  ;;  %v672_v58 = vpack.c.bf16 %v487_v55, %v487_v55  ;;  %v492_v59 = vmax.f32 %v460_v56, 0.0  ;;  %v452_v60 = vadd.f32 %v944_v14, %v451_v57 }
 0x1b4   :  { %v744_v61 = vpop.f32.mrf.mxu1 }
 0x1b5   :  { %568 = vst.msk [vmem:[%s1032_s6 + $0x14] sm:$0xf] %vm562_vm3, %v672_v58  ;;  %v677_v62 = vpack.c.bf16 %v492_v59, %v492_v59  ;;  %v490_v63 = vmax.f32 %v452_v60, 0.0  ;;  %v463_v0 = vadd.f32 %v744_v61, %v944_v14 }
 0x1b6   :  { %v454_v1 = vpop.f32.mrf.mxu1 }
 0x1b7   :  { %573 = vst.msk [vmem:[%s1032_s6 + $0x28] sm:$0xf] %vm562_vm3, %v677_v62  ;;  %v675_v2 = vpack.c.bf16 %v490_v63, %v490_v63  ;;  %v493_v3 = vmax.f32 %v463_v0, 0.0  ;;  %v455_v4 = vadd.f32 %v944_v14, %v454_v1 }
 0x1b8   :  { %v747_v5 = vpop.f32.mrf.mxu1 }
 0x1b9   :  { %571 = vst.msk [vmem:[%s1032_s6 + $0x20] sm:$0xf] %vm562_vm3, %v675_v2  ;;  %v678_v6 = vpack.c.bf16 %v493_v3, %v493_v3  ;;  %v491_v7 = vmax.f32 %v455_v4, 0.0  ;;  %v476_v8 = vadd.f32 %v747_v5, %v944_v14 }
 0x1ba   :  { %v467_v9 = vpop.f32.mrf.mxu1 }
 0x1bb   :  { %574 = vst.msk [vmem:[%s1032_s6 + $0x2c] sm:$0xf] %vm562_vm3, %v678_v6  ;;  %v676_v10 = vpack.c.bf16 %v491_v7, %v491_v7  ;;  %v496_v11 = vmax.f32 %v476_v8, 0.0  ;;  %v468_v12 = vadd.f32 %v944_v14, %v467_v9 }
 0x1bc   :  { %v748_v13 = vpop.f32.mrf.mxu1 }
 0x1bd   :  { %572 = vst.msk [vmem:[%s1032_s6 + $0x24] sm:$0xf] %vm562_vm3, %v676_v10  ;;  %v681_v15 = vpack.c.bf16 %v496_v11, %v496_v11  ;;  %v494_v16 = vmax.f32 %v468_v12, 0.0  ;;  %v479_v17 = vadd.f32 %v748_v13, %v944_v14 }
 0x1be   :  { %v470_v18 = vpop.f32.mrf.mxu1 }
 0x1bf   :  { %577 = vst.msk [vmem:[%s1032_s6 + $0x38] sm:$0xf] %vm562_vm3, %v681_v15  ;;  %v679_v19 = vpack.c.bf16 %v494_v16, %v494_v16  ;;  %v497_v20 = vmax.f32 %v479_v17, 0.0  ;;  %v471_v21 = vadd.f32 %v944_v14, %v470_v18 }
 0x1c1   :  { %575 = vst.msk [vmem:[%s1032_s6 + $0x30] sm:$0xf] %vm562_vm3, %v679_v19  ;;  %v682_v22 = vpack.c.bf16 %v497_v20, %v497_v20  ;;  %v495_v23 = vmax.f32 %v471_v21, 0.0 }
 0x1c3   :  { %578 = vst.msk [vmem:[%s1032_s6 + $0x3c] sm:$0xf] %vm562_vm3, %v682_v22  ;;  %v680_v24 = vpack.c.bf16 %v495_v23, %v495_v23 }
 0x1c5   :  { %576 = vst.msk [vmem:[%s1032_s6 + $0x34] sm:$0xf] %vm562_vm3, %v680_v24 }

// kernel: model_forward.7
= control target key start
LH: loop header
LB: loop body
LE: loop exit
PB: predicated region body
PF: predicated region fallthrough
CT: control target
= control target key end

     0   :  { %vm179_vm0 = vcmask 519168   ;;  %vm223_vm1 = vcmask 523264   ;;  %vm299_vm2 = vcmask 257024   ;;  %s519_s1 = inlined_call_operand.vmem [shape: bf16[128,64], index: 1, kind: input, shape index: {}]   ;;  %s520_s0 = inlined_call_operand.vmem [shape: bf16[32,128], index: 0, kind: input, shape index: {}]   ;;  %s521_s3 = inlined_call_operand.vmem [shape: bf16[64,32], index: 3, kind: input, shape index: {}]   ;;  %s522_s2 = inlined_call_operand.vmem [shape: f32[1,64], index: 2, kind: input, shape index: {}]   ;;  %s523_s5 = inlined_call_operand.vmem [shape: bf16[32,64], index: 5, kind: output, shape index: {0}]   ;;  %s524_s4 = inlined_call_operand.vmem [shape: f32[1,32], index: 4, kind: input, shape index: {}]   ;;  %s525_s6 = inlined_call_operand.vmem [shape: bf16[32,32], index: 6, kind: output, shape index: {1}]  }
   0x1   :  { %v394_v0 = vld [vmem:[%s519_s1 + $0x38] sm:$0xff]   ;;  %v395_v1 = vld [vmem:[%s519_s1 + $0x30] sm:$0xff]   ;;  %v396_v2 = vld [vmem:[%s519_s1 + $0x28] sm:$0xff]  }
   0x2   :  { %362 = vmatprep.subr.bf16.mxu0 %v394_v0  ;;  %v397_v3 = vld [vmem:[%s519_s1 + $0x20] sm:$0xff]   ;;  %v398_v5 = vld [vmem:[%s519_s1 + $0x18] sm:$0xff]   ;;  %v399_v7 = vld [vmem:[%s519_s1 + $0x10] sm:$0xff]  }
   0x3   :  { %363 = vmatpush3.bf16.msra.mxu0 %v394_v0  ;;  %v402_v4 = vld [vmem:[%s520_s0] sm:$0xff]   ;;  %v404_v6 = vld [vmem:[%s521_s3 + $0x18] sm:$0xff]   ;;  %v400_v8 = vld [vmem:[%s519_s1 + $0x8] sm:$0xff]  }
   0x4   :  { %364 = vmatprep.subr.bf16.mxu0 %v395_v1  ;;  %378 = vmatprep.mubr.bf16.mxu0 %v402_v4  ;;  %v401_v9 = vld [vmem:[%s519_s1] sm:$0xff]   ;;  %v403_v10 = vld [vmem:[%s520_s0 + $0x8] sm:$0xff]   ;;  %v405_v11 = vld [vmem:[%s521_s3 + $0x10] sm:$0xff]  }
   0x5   :  { %382 = vmatprep.subr.bf16.mxu1 %v404_v6  ;;  %v406_v12 = vld [vmem:[%s521_s3 + $0x8] sm:$0xff]   ;;  %v407_v13 = vld [vmem:[%s521_s3] sm:$0xff]  }
   0x6   :  { %383 = vmatpush3.bf16.msra.mxu1 %v404_v6  ;;  %v312_v14 = vld [vmem:[%s522_s2] ss:$0 sm:$0xff] }
   0x7   :  { %365 = vmatpush3.bf16.msra.mxu0 %v395_v1  ;;  %384 = vmatprep.subr.bf16.mxu1 %v405_v11  ;;  %v327_v33 = vld [vmem:[%s524_s4] ss:$0 sm:$0xff] }
   0x8   :  { %366 = vmatprep.subr.bf16.mxu0 %v396_v2 }
   0xa   :  { %385 = vmatpush3.bf16.msra.mxu1 %v405_v11 }
   0xb   :  { %367 = vmatpush3.bf16.msra.mxu0 %v396_v2  ;;  %386 = vmatprep.subr.bf16.mxu1 %v406_v12 }
   0xc   :  { %368 = vmatprep.subr.bf16.mxu0 %v397_v3 }
   0xe   :  { %387 = vmatpush3.bf16.msra.mxu1 %v406_v12 }
   0xf   :  { %369 = vmatpush3.bf16.msra.mxu0 %v397_v3  ;;  %388 = vmatprep.subr.bf16.mxu1 %v407_v13 }
  0x10   :  { %370 = vmatprep.subr.bf16.mxu0 %v398_v5 }
  0x12   :  { %389 = vmatpush3.bf16.msra.mxu1 %v407_v13 }
  0x13   :  { %371 = vmatpush3.bf16.msra.mxu0 %v398_v5 }
  0x14   :  { %372 = vmatprep.subr.bf16.mxu0 %v399_v7 }
  0x17   :  { %373 = vmatpush3.bf16.msra.mxu0 %v399_v7 }
  0x18   :  { %374 = vmatprep.subr.bf16.mxu0 %v400_v8 }
  0x1b   :  { %375 = vmatpush3.bf16.msra.mxu0 %v400_v8 }
  0x1c   :  { %376 = vmatprep.subr.bf16.mxu0 %v401_v9 }
  0x1f   :  { %377 = vmatpush3.bf16.msra.mxu0 %v401_v9 }
  0x22   :  { %379 = vmatmul.mubr.bf16.vlgmr.msra.gmra.mxu0 %v403_v10 }
  0xe2   :  { %v380_v15 = vpop.f32.mrf.mxu0 }
  0xe3   :  { %v153_v16 = vadd.f32 %v380_v15, %v312_v14 }
  0xe4   :  { %v144_v17 = vpop.f32.mrf.mxu0 }
  0xe5   :  { %v161_v18 = vmax.f32 %v153_v16, 0.0  ;;  %v145_v19 = vadd.f32 %v312_v14, %v144_v17 }
  0xe6   :  { %v381_v20 = vpop.f32.mrf.mxu0 }
  0xe7   :  { %v340_v21 = vpack.c.bf16 %v161_v18, %v161_v18  ;;  %v159_v22 = vmax.f32 %v145_v19, 0.0  ;;  %v156_v23 = vadd.f32 %v381_v20, %v312_v14 }
  0xe8   :  { %v147_v24 = vpop.f32.mrf.mxu0 }
  0xe9   :  { %182 = vst.msk [vmem:[%s523_s5 + $0x8] sm:$0xf] %vm179_vm0, %v340_v21  ;;  %v338_v25 = vpack.c.bf16 %v159_v22, %v159_v22  ;;  %v162_v26 = vmax.f32 %v156_v23, 0.0  ;;  %v148_v27 = vadd.f32 %v312_v14, %v147_v24 }
  0xeb   :  { %180 = vst.msk [vmem:[%s523_s5] sm:$0xf] %vm179_vm0, %v338_v25  ;;  %v341_v28 = vpack.c.bf16 %v162_v26, %v162_v26  ;;  %v160_v29 = vmax.f32 %v148_v27, 0.0  ;;  %v164_v32 = vpack.c.bf16 %v162_v26, %v161_v18 }
  0xed   :  { %183 = vst.msk [vmem:[%s523_s5 + $0xc] sm:$0xf] %vm179_vm0, %v341_v28  ;;  %v339_v30 = vpack.c.bf16 %v160_v29, %v160_v29  ;;  %v163_v31 = vpack.c.bf16 %v160_v29, %v159_v22 }
  0xef   :  { %181 = vst.msk [vmem:[%s523_s5 + $0x4] sm:$0xf] %vm179_vm0, %v339_v30  ;;  %390 = vmatprep.mubr.msk.bf16.mxu1 %vm223_vm1, %v163_v31 }
  0xf0   :  { %391 = vmatmul.mubr.msk.bf16.vlgmr.msra.gmra.mxu1 %vm223_vm1, %v164_v32 }
 0x1b0   :  { %v392_v34 = vpop.f32.mrf.mxu1 }
 0x1b1   :  { %v273_v35 = vadd.f32 %v392_v34, %v327_v33 }
 0x1b2   :  { %v264_v36 = vpop.f32.mrf.mxu1 }
 0x1b3   :  { %v281_v37 = vmax.f32 %v273_v35, 0.0  ;;  %v265_v38 = vadd.f32 %v327_v33, %v264_v36 }
 0x1b4   :  { %v393_v39 = vpop.f32.mrf.mxu1 }
 0x1b5   :  { %v344_v40 = vpack.c.bf16 %v281_v37, %v281_v37  ;;  %v279_v41 = vmax.f32 %v265_v38, 0.0  ;;  %v276_v42 = vadd.f32 %v393_v39, %v327_v33 }
 0x1b6   :  { %v267_v43 = vpop.f32.mrf.mxu1 }
 0x1b7   :  { %302 = vst.msk [vmem:[%s525_s6 + $0x8] sm:$0xf] %vm299_vm2, %v344_v40  ;;  %v342_v44 = vpack.c.bf16 %v279_v41, %v279_v41  ;;  %v282_v45 = vmax.f32 %v276_v42, 0.0  ;;  %v268_v46 = vadd.f32 %v327_v33, %v267_v43 }
 0x1b9   :  { %300 = vst.msk [vmem:[%s525_s6] sm:$0xf] %vm299_vm2, %v342_v44  ;;  %v345_v47 = vpack.c.bf16 %v282_v45, %v282_v45  ;;  %v280_v48 = vmax.f32 %v268_v46, 0.0 }
 0x1bb   :  { %303 = vst.msk [vmem:[%s525_s6 + $0xc] sm:$0xf] %vm299_vm2, %v345_v47  ;;  %v343_v49 = vpack.c.bf16 %v280_v48, %v280_v48 }
 0x1bd   :  { %301 = vst.msk [vmem:[%s525_s6 + $0x4] sm:$0xf] %vm299_vm2, %v343_v49 }

// kernel: model_forward.8
= control target key start
LH: loop header
LB: loop body
LE: loop exit
PB: predicated region body
PF: predicated region fallthrough
CT: control target
= control target key end

     0   :  { %v473_v2 = vmov 0.0   ;;  %s598_s0 = inlined_call_operand.vmem [shape: bf16[8,256], index: 0, kind: input, shape index: {}]   ;;  %s599_s1 = inlined_call_operand.vmem [shape: bf16[256,128], index: 1, kind: input, shape index: {}]   ;;  %s600_s2 = inlined_call_operand.vmem [shape: f32[1,128], index: 2, kind: input, shape index: {}]   ;;  %s601_s3 = inlined_call_operand.vmem [shape: bf16[128,64], index: 3, kind: input, shape index: {}]   ;;  %s602_s4 = inlined_call_operand.vmem [shape: f32[1,64], index: 4, kind: input, shape index: {}]   ;;  %s603_s5 = inlined_call_operand.hbm [shape: bf16[8,128], index: 5, kind: output, shape index: {0}]   ;;  %s604_s6 = inlined_call_operand.vmem [shape: bf16[8,64], index: 6, kind: output, shape index: {1}]  }
   0x1   :  { %v425_v0 = vld [vmem:[%s599_s1 + $0x78] sm:$0xff]   ;;  %402 = vmatprep.subr.bf16.mxu1 %v473_v2  ;;  %v427_v3 = vld [vmem:[%s599_s1 + $0x70] sm:$0xff]   ;;  %v429_v5 = vld [vmem:[%s599_s1 + $0x68] sm:$0xff]  }
   0x2   :  { %v426_v1 = vld [vmem:[%s599_s1 + $0x38] sm:$0xff]   ;;  %371 = vmatprep.subr.bf16.mxu0 %v425_v0  ;;  %v428_v4 = vld [vmem:[%s599_s1 + $0x30] sm:$0xff]   ;;  %v430_v6 = vld [vmem:[%s599_s1 + $0x28] sm:$0xff]  }
   0x3   :  { %372 = vmatpush3.bf16.msra.mxu0 %v426_v1  ;;  %v431_v7 = vld [vmem:[%s599_s1 + $0x60] sm:$0xff]   ;;  %v433_v9 = vld [vmem:[%s599_s1 + $0x58] sm:$0xff]   ;;  %v435_v11 = vld [vmem:[%s599_s1 + $0x50] sm:$0xff]  }
   0x4   :  { %373 = vmatprep.subr.bf16.mxu0 %v427_v3  ;;  %v432_v8 = vld [vmem:[%s599_s1 + $0x20] sm:$0xff]   ;;  %v434_v10 = vld [vmem:[%s599_s1 + $0x18] sm:$0xff]   ;;  %v436_v15 = vld [vmem:[%s599_s1 + $0x10] sm:$0xff]  }
   0x5   :  { %v24_v12 = vld [vmem:[%s598_s0] sm:$0xff]  ;;  %v443_v14 = vld [vmem:[%s601_s3 + $0x38] sm:$0xff]   ;;  %v437_v16 = vld [vmem:[%s599_s1 + $0x48] sm:$0xff]  }
   0x6   :  { %v345_v13 = vcombine.high %v24_v12, %v24_v12  ;;  %403 = vmatpush3.bf16.msra.mxu1 %v443_v14  ;;  %v444_v17 = vld [vmem:[%s601_s3 + $0x30] sm:$0xff]   ;;  %v438_v18 = vld [vmem:[%s599_s1 + $0x8] sm:$0xff]  }
   0x7   :  { %374 = vmatpush3.bf16.msra.mxu0 %v428_v4  ;;  %404 = vmatprep.subr.bf16.mxu1 %v473_v2 }
   0x8   :  { %375 = vmatprep.subr.bf16.mxu0 %v429_v5  ;;  %199 = vmatprep.mubr.bf16.mxu0 %v345_v13 }
   0xb   :  { %376 = vmatpush3.bf16.msra.mxu0 %v430_v6 }
   0xc   :  { %377 = vmatprep.subr.bf16.mxu0 %v431_v7 }
   0xf   :  { %378 = vmatpush3.bf16.msra.mxu0 %v432_v8 }
  0x10   :  { %379 = vmatprep.subr.bf16.mxu0 %v433_v9 }
  0x13   :  { %380 = vmatpush3.bf16.msra.mxu0 %v434_v10 }
  0x14   :  { %381 = vmatprep.subr.bf16.mxu0 %v435_v11 }
  0x17   :  { %382 = vmatpush3.bf16.msra.mxu0 %v436_v15 }
  0x18   :  { %12 = vsyncpa [#allocation3], 0  ;;  %383 = vmatprep.subr.bf16.mxu0 %v437_v16  ;;  %v439_v19 = vld [vmem:[%s599_s1 + $0x40] sm:$0xff]   ;;  %405 = vmatpush3.bf16.msra.mxu1 %v444_v17  ;;  %v445_v20 = vld [vmem:[%s601_s3 + $0x28] sm:$0xff]   ;;  %v344_v23 = vcombine.low %v24_v12, %v24_v12  ;;  %vm474_vm0 = vmmov 0   ;;  %s475_s23 = smov [#allocation2]  }
  0x19   :  { %406 = vmatprep.subr.bf16.mxu1 %v473_v2  ;;  %v440_v21 = vld [vmem:[%s599_s1] sm:$0xff]   ;;  %v447_v24 = vld [vmem:[%s601_s3 + $0x18] sm:$0xff]   ;;  %v448_v25 = vld [vmem:[%s601_s3 + $0x10] sm:$0xff]   ;;  %418 = vmatprep.mubr.msk.bf16.mxu1 %vm474_vm0, %v473_v2  ;;  %s331_s24 = sshll.u32 %s475_s23, 4  ;;  %s332_s24 = int_to_ptr.vmem [resolvable:$true] %s331_s24 }
  0x1a   :  { %v446_v22 = vld [vmem:[%s601_s3 + $0x20] sm:$0xff]   ;;  %v449_v26 = vld [vmem:[%s601_s3 + $0x8] sm:$0xff]   ;;  %p456_p1 = scmp.lt.s32.totalorder %s332_s24, %s332_s24 }
  0x1b   :  { %384 = vmatpush3.bf16.msra.mxu0 %v438_v18  ;;  %v450_v27 = vld [vmem:[%s601_s3] sm:$0xff]   ;;  %s451_s3 = scalar_lea.vmem %s332_s24, 64 }
  0x1c   :  { %385 = vmatprep.subr.bf16.mxu0 %v439_v19  ;;  %407 = vmatpush3.bf16.msra.mxu1 %v445_v20  ;;  %v343_v29 = vld [vmem:[%s600_s2] ss:$0 sm:$0xff]  ;;  %p452_p0 = scmp.ne.s32.totalorder %s332_s24, %s451_s3  ;;  %p457_p2 = scmp.lt.s32.totalorder %s451_s3, %s451_s3 }
  0x1d   :  { %408 = vmatprep.subr.bf16.mxu1 %v473_v2 }
  0x1e   :  { %p458_p3 = por %p457_p2, %p456_p1 }
  0x1f   :  { %386 = vmatpush3.bf16.msra.mxu0 %v440_v21 }
  0x20   :  { %409 = vmatpush3.bf16.msra.mxu1 %v446_v22  ;;  %p459_p4 = pnand %p458_p3, %p452_p0 }
  0x21   :  { %410 = vmatprep.subr.bf16.mxu1 %v473_v2 }
  0x22   :  { %200 = vmatmul.mubr.bf16.vlgmr.msra.gmra.mxu0 %v344_v23 }
  0x24   :  { %411 = vmatpush3.bf16.msra.mxu1 %v447_v24 }
  0x25   :  { %412 = vmatprep.subr.bf16.mxu1 %v473_v2 }
  0x28   :  { %413 = vmatpush3.bf16.msra.mxu1 %v448_v25 }
  0x29   :  { %414 = vmatprep.subr.bf16.mxu1 %v473_v2 }
  0x2c   :  { %415 = vmatpush3.bf16.msra.mxu1 %v449_v26 }
  0x2d   :  { %416 = vmatprep.subr.bf16.mxu1 %v473_v2 }
  0x30   :  { %417 = vmatpush3.bf16.msra.mxu1 %v450_v27 }
  0xe2   :  { %v387_v28 = vpop.f32.mrf.mxu0 }
  0xe4   :  { %v388_v30 = vpop.f32.mrf.mxu0 }
  0xe5   :  { %v389_v31 = vadd.f32 %v388_v30, %v387_v28 }
  0xe6   :  { %v390_v32 = vpop.f32.mrf.mxu0 }
  0xe7   :  { %v202_v33 = vadd.f32 %v389_v31, %v343_v29 }
  0xe8   :  { %v391_v34 = vpop.f32.mrf.mxu0 }
  0xe9   :  { %v207_v35 = vmax.f32 %v202_v33, 0.0 }
  0xeb   :  { %v208_v36 = vpack.c.bf16 %v207_v35, %v207_v35 }
  0xed   :  { %209 = vst [vmem:[#allocation2] sm:$0xf] %v208_v36  ;;  %419 = vmatmul.mubr.bf16.vlgmr.msra.gmra.mxu1 %v208_v36 }
  0xee   :  { %462 = shalt.err (!%p459_p4)
}
  0xef   :  { %334 = dma.vmem_to_hbm [thread:$0]  %s332_s24, 64, %s603_s5, [#allocation3]   ;;  %v362_v37 = vld [vmem:[%s602_s4] ss:$0 sm:$0xff]  ;;  %vm323_vm1 = vcmask 519168  }
 0x1ad   :  { %v315_v38 = vpop.f32.mrf.mxu1 }
 0x1ae   :  { %v316_v39 = vadd.f32 %v362_v37, %v315_v38 }
 0x1af   :  { %v420_v40 = vpop.f32.mrf.mxu1 }
 0x1b0   :  { %v321_v41 = vmax.f32 %v316_v39, 0.0 }
 0x1b1   :  { %v318_v42 = vpop.f32.mrf.mxu1 }
 0x1b2   :  { %v322_v43 = vpack.c.bf16 %v321_v41, %v321_v41 }
 0x1b3   :  { %v421_v44 = vpop.f32.mrf.mxu1 }
 0x1b4   :  { %324 = vst.msk [vmem:[%s604_s6] sm:$0xf] %vm323_vm1, %v322_v43 }
 0x1b5   :  { %471 = dma.done.wait [#allocation3], 64  }
 0x1b6   :  { %472 = vsyncadd [#allocation3], 4294967232 }
 0x1b7   :  { %342 = vsyncpa [#allocation3], 1 }

// kernel: model_forward.9
= control target key start
LH: loop header
LB: loop body
LE: loop exit
PB: predicated region body
PF: predicated region fallthrough
CT: control target
= control target key end

     0   :  { %s5098_s29 = smov 0   ;;  %s6113_s0 = inlined_call_operand.vmem [shape: bf16[2,2,128], index: 0, kind: input, shape index: {}]   ;;  %s6114_s1 = inlined_call_operand.vmem [shape: bf16[2,4,128], index: 1, kind: input, shape index: {}]   ;;  %s6115_s2 = inlined_call_operand.vmem [shape: bf16[2,8,128], index: 2, kind: input, shape index: {}]   ;;  %s6116_s3 = inlined_call_operand.vmem [shape: bf16[2,16,128], index: 3, kind: input, shape index: {}]   ;;  %s6117_s4 = inlined_call_operand.vmem [shape: bf16[4,2], index: 4, kind: input, shape index: {}]   ;;  %s6118_s5 = inlined_call_operand.vmem [shape: bf16[128,384], index: 5, kind: input, shape index: {}]   ;;  %s6119_s6 = inlined_call_operand.vmem [shape: bf16[128,384], index: 6, kind: input, shape index: {}]   ;;  %s6120_s7 = inlined_call_operand.vmem [shape: f32[1,128], index: 7, kind: input, shape index: {}]   ;;  %s6121_s8 = inlined_call_operand.vmem [shape: bf16[128,384], index: 8, kind: input, shape index: {}]   ;;  %s6122_s9 = inlined_call_operand.vmem [shape: f32[1,128], index: 9, kind: input, shape index: {}]   ;;  %s6123_s10 = inlined_call_operand.vmem [shape: bf16[8,4], index: 10, kind: input, shape index: {}]   ;;  %s6124_s11 = inlined_call_operand.vmem [shape: bf16[128,384], index: 11, kind: input, shape index: {}]   ;;  %s6125_s12 = inlined_call_operand.vmem [shape: bf16[128,384], index: 12, kind: input, shape index: {}]   ;;  %s6126_s13 = inlined_call_operand.vmem [shape: f32[1,128], index: 13, kind: input, shape index: {}]   ;;  %s6127_s14 = inlined_call_operand.vmem [shape: bf16[128,384], index: 14, kind: input, shape index: {}]   ;;  %s6128_s15 = inlined_call_operand.vmem [shape: f32[1,128], index: 15, kind: input, shape index: {}]   ;;  %s6129_s16 = inlined_call_operand.vmem [shape: bf16[16,8], index: 16, kind: input, shape index: {}]   ;;  %s6130_s17 = inlined_call_operand.vmem [shape: bf16[128,384], index: 17, kind: input, shape index: {}]   ;;  %s6131_s18 = inlined_call_operand.vmem [shape: bf16[128,384], index: 18, kind: input, shape index: {}]   ;;  %s6132_s19 = inlined_call_operand.vmem [shape: f32[1,128], index: 19, kind: input, shape index: {}]   ;;  %s6133_s20 = inlined_call_operand.vmem [shape: bf16[128,384], index: 20, kind: input, shape index: {}]   ;;  %s6134_s21 = inlined_call_operand.vmem [shape: f32[1,128], index: 21, kind: input, shape index: {}]   ;;  %s6135_s22 = inlined_call_operand.vmem [shape: bf16[128,320], index: 22, kind: input, shape index: {}]   ;;  %s6136_s23 = inlined_call_operand.vmem [shape: bf16[64,16], index: 23, kind: input, shape index: {}]   ;;  %s6137_s24 = inlined_call_operand.vmem [shape: f32[1,320], index: 24, kind: input, shape index: {}]   ;;  %s6138_s25 = inlined_call_operand.vmem [shape: f32[2,64,320], index: 25, kind: output, shape index: {}]  }
   0x1   :  { %6143 = sst [smem:[#allocation2_spill]] %s6113_s0 }
   0x2   :  { %6144 = sst [smem:[#allocation3_spill]] %s6114_s1 }
   0x3   :  { %6145 = sst [smem:[#allocation4_spill]] %s6115_s2 }
   0x4   :  { %6146 = sst [smem:[#allocation5_spill]] %s6116_s3 }
   0x5   :  { %6147 = sst [smem:[#allocation6_spill]] %s6117_s4 }
   0x6   :  { %6148 = sst [smem:[#allocation7_spill]] %s6118_s5 }
   0x7   :  { %6149 = sst [smem:[#allocation8_spill]] %s6119_s6 }
   0x8   :  { %6150 = sst [smem:[#allocation9_spill]] %s6120_s7 }
   0x9   :  { %6151 = sst [smem:[#allocation10_spill]] %s6121_s8 }
   0xa   :  { %6152 = sst [smem:[#allocation11_spill]] %s6122_s9 }
   0xb LB: > { %s4008_s2 = sadd.s32 4294967295, %s4963_s29   ;;  %p4012_p0 = scmp.ge.s32.totalorder %s4963_s29, 1  ;;  %s4963_s29 = sphi %s5098_s29, %s35_s29  }
   0xc   : > { %p713_p1 = scmp.lt.s32.totalorder %s4963_s29, 3 }
   0xe   : > { %p714_p2 = pnand %p4012_p0, %p713_p1 }
   0xf   : > { %s6153_s7 = sld [smem:[#allocation7_spill]] (!%p714_p2)  ;;  %p792_p3 = scmp.lt.s32.totalorder (!%p714_p2), %s4008_s2, 1 }
  0x10   : > { %717 = sbr.rel (%p714_p2) target bundleno = 2345 (0x929), region = 120  ;;  %s6154_s6 = sld [smem:[#allocation2_spill]] (!%p714_p2) }
  0x11   : > { %s6155_s1 = sld [smem:[#allocation8_spill]] (!%p714_p2) }
  0x12   : > { %s6156_s26 = sld [smem:[#allocation3_spill]] (!%p714_p2) }
  0x13   : > { %s6158_s28 = sld [smem:[#allocation6_spill]] (!%p714_p2) }
  0x14   : > { %s6159_s9 = sld [smem:[#allocation9_spill]] (!%p714_p2) }
  0x15   : > { %v4631_v0 = vld [vmem:[%s6153_s7 + $0xac] ss:$12 sps:$4 sm:$0xff]   ;;  %v4633_v1 = vld [vmem:[%s6153_s7 + $0xa8] ss:$12 sps:$4 sm:$0xff]   ;;  %v4965_v2 = vmov 0.0   ;;  %v4966_v3 = vmov 0  }
  0x16   : > { %4391 = vmatprep.subr.bf16.mxu1 %v4965_v2  ;;  %1008 = vmatprep.mubr.bf16.mxu0 %v4966_v3  ;;  %v4634_v4 = vld [vmem:[%s6153_s7 + $0x94] ss:$12 sps:$4 sm:$0xff]   ;;  %v4636_v5 = vld [vmem:[%s6153_s7 + $0x90] ss:$12 sps:$4 sm:$0xff]   ;;  %vm4967_vm0 = vmmov 0   ;;  %s6164_s2 = smov (!%p792_p3, %s4008_s2), 1 }
  0x17   : > { %976 = vmatprep.subr.bf16.mxu0 %v4631_v0  ;;  %4407 = vmatprep.mubr.msk.bf16.mxu1 %vm4967_vm0, %v4965_v2  ;;  %v4637_v6 = vld [vmem:[%s6153_s7 + $0xb0] ss:$12 sps:$4 sm:$0xff]   ;;  %v4641_v8 = vld [vmem:[%s6153_s7 + $0x98] ss:$12 sps:$4 sm:$0xff]   ;;  %v4645_v11 = vld [vmem:[%s6153_s7 + $0x80] ss:$12 sps:$4 sm:$0xff]   ;;  %s794_s30 = scalar_lea.vmem %s6154_s6, %s6164_s2 }
  0x18   : > { %977 = vmatpush1.bf16.msra.mxu0 %v4633_v1  ;;  %v4638_v7 = vld [vmem:[%s6153_s7 + $0x7c] ss:$12 sps:$4 sm:$0xff]   ;;  %4392 = vmatpush3.bf16.msra.mxu1 %v4637_v6  ;;  %v4640_v9 = vld [vmem:[%s6153_s7 + $0x78] ss:$12 sps:$4 sm:$0xff]   ;;  %v4644_v12 = vld [vmem:[%s6153_s7 + $0x60] ss:$12 sps:$4 sm:$0xff]  }
  0x19   : > { %978 = vmatprep.subr.bf16.mxu0 %v4634_v4  ;;  %4393 = vmatprep.subr.bf16.mxu1 %v4965_v2  ;;  %v4642_v10 = vld [vmem:[%s6153_s7 + $0x64] ss:$12 sps:$4 sm:$0xff]   ;;  %v4646_v13 = vld [vmem:[%s6153_s7 + $0x4c] ss:$12 sps:$4 sm:$0xff]   ;;  %v4649_v14 = vld [vmem:[%s6153_s7 + $0x68] ss:$12 sps:$4 sm:$0xff]  }
  0x1a   : > { %v4648_v15 = vld [vmem:[%s6153_s7 + $0x48] ss:$12 sps:$4 sm:$0xff]   ;;  %v4653_v17 = vld [vmem:[%s6153_s7 + $0x50] ss:$12 sps:$4 sm:$0xff]   ;;  %v4657_v20 = vld [vmem:[%s6153_s7 + $0x38] ss:$12 sps:$4 sm:$0xff]  }
  0x1b   : > { %v4650_v16 = vld [vmem:[%s6153_s7 + $0x34] ss:$12 sps:$4 sm:$0xff]   ;;  %v4652_v18 = vld [vmem:[%s6153_s7 + $0x30] ss:$12 sps:$4 sm:$0xff]   ;;  %v4656_v21 = vld [vmem:[%s6153_s7 + $0x18] ss:$12 sps:$4 sm:$0xff]  }
  0x1c   : > { %979 = vmatpush1.bf16.msra.mxu0 %v4636_v5  ;;  %4394 = vmatpush3.bf16.msra.mxu1 %v4641_v8  ;;  %v4654_v19 = vld [vmem:[%s6153_s7 + $0x1c] ss:$12 sps:$4 sm:$0xff]   ;;  %v4658_v22 = vld [vmem:[%s6153_s7 + $0x4] ss:$12 sps:$4 sm:$0xff]   ;;  %v4661_v23 = vld [vmem:[%s6153_s7 + $0x20] ss:$12 sps:$4 sm:$0xff]  }
  0x1d   : > { %980 = vmatprep.subr.bf16.mxu0 %v4638_v7  ;;  %4395 = vmatprep.subr.bf16.mxu1 %v4965_v2  ;;  %v4660_v24 = vld [vmem:[%s6153_s7] ss:$12 sps:$4 sm:$0xff]   ;;  %v4662_v26 = vld [vmem:[%s6153_s7 + $0x8] ss:$12 sps:$4 sm:$0xff]   ;;  %v4663_v30 = vld [vmem:[%s6155_s1 + $0xb0] ss:$12 sps:$4 sm:$0xff]  }
  0x1e   : > { %v4669_v25 = vld [vmem:[%s6155_s1 + $0xac] ss:$12 sps:$4 sm:$0xff]   ;;  %v814_v27 = vld [vmem:[%s794_s30] sm:$0x1]  ;;  %v4667_v28 = vld [vmem:[%s6155_s1 + $0xa8] ss:$12 sps:$4 sm:$0xff]  }
  0x1f   : > { %v4673_v29 = vld [vmem:[%s6155_s1 + $0x94] ss:$12 sps:$4 sm:$0xff]   ;;  %v4671_v31 = vld [vmem:[%s6155_s1 + $0x90] ss:$12 sps:$4 sm:$0xff]   ;;  %v4664_v32 = vld [vmem:[%s6155_s1 + $0x98] ss:$12 sps:$4 sm:$0xff]  }
  0x20   : > { %981 = vmatpush1.bf16.msra.mxu0 %v4640_v9  ;;  %4396 = vmatpush3.bf16.msra.mxu1 %v4645_v11  ;;  %v4677_v33 = vld [vmem:[%s6155_s1 + $0x7c] ss:$12 sps:$4 sm:$0xff]   ;;  %v4675_v34 = vld [vmem:[%s6155_s1 + $0x78] ss:$12 sps:$4 sm:$0xff]   ;;  %v4665_v36 = vld [vmem:[%s6155_s1 + $0x80] ss:$12 sps:$4 sm:$0xff]  }
  0x21   : > { %982 = vmatprep.subr.bf16.mxu0 %v4642_v10  ;;  %4397 = vmatprep.subr.bf16.mxu1 %v4965_v2  ;;  %v4681_v35 = vld [vmem:[%s6155_s1 + $0x64] ss:$12 sps:$4 sm:$0xff]   ;;  %v4679_v37 = vld [vmem:[%s6155_s1 + $0x60] ss:$12 sps:$4 sm:$0xff]   ;;  %v4666_v39 = vld [vmem:[%s6155_s1 + $0x68] ss:$12 sps:$4 sm:$0xff]  }
  0x22   : > { %v4685_v38 = vld [vmem:[%s6155_s1 + $0x4c] ss:$12 sps:$4 sm:$0xff]   ;;  %v4683_v40 = vld [vmem:[%s6155_s1 + $0x48] ss:$12 sps:$4 sm:$0xff]   ;;  %v4670_v42 = vld [vmem:[%s6155_s1 + $0x50] ss:$12 sps:$4 sm:$0xff]  }
  0x23   : > { %v4688_v41 = vld [vmem:[%s6155_s1 + $0x34] ss:$12 sps:$4 sm:$0xff]   ;;  %v4686_v43 = vld [vmem:[%s6155_s1 + $0x30] ss:$12 sps:$4 sm:$0xff]   ;;  %v4674_v44 = vld [vmem:[%s6155_s1 + $0x38] ss:$12 sps:$4 sm:$0xff]  }
  0x24   : > { %983 = vmatpush1.bf16.msra.mxu0 %v4644_v12  ;;  %4398 = vmatpush3.bf16.msra.mxu1 %v4649_v14  ;;  %v4678_v45 = vld [vmem:[%s6155_s1 + $0x20] ss:$12 sps:$4 sm:$0xff]   ;;  %s4013_s5 = sshll.u32 %s6164_s2, 1  ;;  %v4682_v46 = vld [vmem:[%s6155_s1 + $0x8] ss:$12 sps:$4 sm:$0xff]   ;;  %vm1306_vm1 = vcmask 1040384  }
  0x25   : > { %984 = vmatprep.subr.bf16.mxu0 %v4646_v13  ;;  %4399 = vmatprep.subr.bf16.mxu1 %v4965_v2  ;;  %s798_s8 = scalar_lea.vmem %s6156_s26, %s4013_s5  ;;  %v4691_v48 = vld [vmem:[%s6155_s1 + $0x1c] ss:$12 sps:$4 sm:$0xff]   ;;  %v4689_v49 = vld [vmem:[%s6155_s1 + $0x18] ss:$12 sps:$4 sm:$0xff]   ;;  %v4692_v51 = vld [vmem:[%s6155_s1] ss:$12 sps:$4 sm:$0xff]  }
  0x26   : > { %v815_v47 = vld [vmem:[%s798_s8] sm:$0x3]  ;;  %v4694_v50 = vld [vmem:[%s6155_s1 + $0x4] ss:$12 sps:$4 sm:$0xff]   ;;  %s6157_s8 = sld [smem:[#allocation10_spill]]  ;;  %vm1302_vm2 = vcmask 15360  }
  0x27   : > { %v1057_v7 = vld [vmem:[%s6158_s28] sm:$0x3]  ;;  %vm1405_vm3 = vcmask 1042432   ;;  %s6160_s0 = sld [smem:[#allocation11_spill]]  ;;  %s4014_s30 = sshll.u32 %s6164_s2, 2  ;;  %vm2170_vm4 = vcmask 1041408  }
  0x28   : > { %985 = vmatpush1.bf16.msra.mxu0 %v4648_v15  ;;  %4400 = vmatpush3.bf16.msra.mxu1 %v4653_v17  ;;  %vm2166_vm5 = vcmask 31744   ;;  %vm2269_vm6 = vcmask 1046528   ;;  %s6162_s27 = sld [smem:[#allocation5_spill]]  ;;  %vm3050_vm7 = vcmask 1043456   ;;  %vm3046_vm8 = vcmask 64512  }
  0x29   : > { %986 = vmatprep.subr.bf16.mxu0 %v4650_v16  ;;  %4401 = vmatprep.subr.bf16.mxu1 %v4965_v2  ;;  %vm3744_vm9 = vcmask 130048   ;;  %vm3897_vm10 = vcmask 523264  }
  0x2c   : > { %987 = vmatpush1.bf16.msra.mxu0 %v4652_v18  ;;  %4402 = vmatpush3.bf16.msra.mxu1 %v4657_v20  ;;  %v4695_v52 = vld [vmem:[%s6157_s8 + $0xa8] ss:$12 sps:$4 sm:$0xff]   ;;  %v4697_v53 = vld [vmem:[%s6157_s8 + $0xac] ss:$12 sps:$4 sm:$0xff]   ;;  %v4699_v55 = vld [vmem:[%s6157_s8 + $0x90] ss:$12 sps:$4 sm:$0xff]  }
  0x2d   : > { %988 = vmatprep.subr.bf16.mxu0 %v4654_v19  ;;  %4403 = vmatprep.subr.bf16.mxu1 %v4965_v2  ;;  %v4701_v54 = vld [vmem:[%s6157_s8 + $0x94] ss:$12 sps:$4 sm:$0xff]   ;;  %v4705_v56 = vld [vmem:[%s6157_s8 + $0x7c] ss:$12 sps:$4 sm:$0xff]   ;;  %v4703_v57 = vld [vmem:[%s6157_s8 + $0x78] ss:$12 sps:$4 sm:$0xff]  }
  0x2e   : > { %v4698_v10 = vld [vmem:[%s6157_s8 + $0xb0] ss:$12 sps:$4 sm:$0xff]   ;;  %v4702_v11 = vld [vmem:[%s6157_s8 + $0x98] ss:$12 sps:$4 sm:$0xff]   ;;  %v4706_v12 = vld [vmem:[%s6157_s8 + $0x80] ss:$12 sps:$4 sm:$0xff]  }
  0x2f   : > { %v4709_v18 = vld [vmem:[%s6157_s8 + $0x64] ss:$12 sps:$4 sm:$0xff]   ;;  %v4707_v19 = vld [vmem:[%s6157_s8 + $0x60] ss:$12 sps:$4 sm:$0xff]   ;;  %v4710_v20 = vld [vmem:[%s6157_s8 + $0x68] ss:$12 sps:$4 sm:$0xff]  }
  0x30   : > { %989 = vmatpush1.bf16.msra.mxu0 %v4656_v21  ;;  %4404 = vmatpush3.bf16.msra.mxu1 %v4661_v23  ;;  %v4713_v23 = vld [vmem:[%s6157_s8 + $0x4c] ss:$12 sps:$4 sm:$0xff]  }
  0x31   : > { %990 = vmatprep.subr.bf16.mxu0 %v4658_v22  ;;  %4405 = vmatprep.subr.bf16.mxu1 %v4965_v2 }
  0x34   : > { %991 = vmatpush1.bf16.msra.mxu0 %v4660_v24  ;;  %4406 = vmatpush3.bf16.msra.mxu1 %v4662_v26  ;;  %v4711_v24 = vld [vmem:[%s6157_s8 + $0x48] ss:$12 sps:$4 sm:$0xff]  }
  0x35   : > { %1221 = vmatprep.subr.bf16.mxu0 %v4669_v25  ;;  %4411 = vmatprep.subr.bf16.mxu1 %v4965_v2  ;;  %v4714_v25 = vld [vmem:[%s6157_s8 + $0x50] ss:$12 sps:$4 sm:$0xff]  }
  0x37   : > { %1009 = vmatmul.mubr.bf16.vlgmr.msra.gmra.mxu0 %v814_v27  ;;  %4408 = vmatmul.mubr.bf16.vlgmr.msra.gmra.mxu1 %v814_v27  ;;  %v4717_v27 = vld [vmem:[%s6157_s8 + $0x34] ss:$12 sps:$4 sm:$0xff]  }
  0x38   : > { %1222 = vmatpush1.bf16.msra.mxu0 %v4667_v28  ;;  %1253 = vmatprep.mubr.bf16.mxu0 %v4966_v3  ;;  %v4715_v28 = vld [vmem:[%s6157_s8 + $0x30] ss:$12 sps:$4 sm:$0xff]  }
  0x39   : > { %1223 = vmatprep.subr.bf16.mxu0 %v4673_v29  ;;  %4412 = vmatpush3.bf16.msra.mxu1 %v4663_v30  ;;  %v4718_v29 = vld [vmem:[%s6157_s8 + $0x38] ss:$12 sps:$4 sm:$0xff]   ;;  %v4721_v30 = vld [vmem:[%s6157_s8 + $0x1c] ss:$12 sps:$4 sm:$0xff]  }
  0x3a   : > { %4427 = vmatprep.mubr.msk.bf16.mxu1 %vm4967_vm0, %v4965_v2  ;;  %4413 = vmatprep.subr.bf16.mxu1 %v4965_v2 }
  0x3c   : > { %1224 = vmatpush1.bf16.msra.mxu0 %v4671_v31  ;;  %v4719_v31 = vld [vmem:[%s6157_s8 + $0x18] ss:$12 sps:$4 sm:$0xff]  }
  0x3d   : > { %1225 = vmatprep.subr.bf16.mxu0 %v4677_v33  ;;  %4414 = vmatpush3.bf16.msra.mxu1 %v4664_v32  ;;  %v4722_v32 = vld [vmem:[%s6157_s8 + $0x20] ss:$12 sps:$4 sm:$0xff]   ;;  %v4725_v33 = vld [vmem:[%s6157_s8 + $0x4] ss:$12 sps:$4 sm:$0xff]  }
  0x3e   : > { %4415 = vmatprep.subr.bf16.mxu1 %v4965_v2 }
  0x40   : > { %1226 = vmatpush1.bf16.msra.mxu0 %v4675_v34  ;;  %v4723_v34 = vld [vmem:[%s6157_s8] ss:$12 sps:$4 sm:$0xff]  }
  0x41   : > { %1227 = vmatprep.subr.bf16.mxu0 %v4681_v35  ;;  %4416 = vmatpush3.bf16.msra.mxu1 %v4665_v36  ;;  %v4726_v35 = vld [vmem:[%s6157_s8 + $0x8] ss:$12 sps:$4 sm:$0xff]   ;;  %v4729_v36 = vld [vmem:[%s6124_s11 + $0xac] ss:$12 sps:$4 sm:$0xff]  }
  0x42   : > { %4417 = vmatprep.subr.bf16.mxu1 %v4965_v2 }
  0x44   : > { %1228 = vmatpush1.bf16.msra.mxu0 %v4679_v37 }
  0x45   : > { %1229 = vmatprep.subr.bf16.mxu0 %v4685_v38  ;;  %4418 = vmatpush3.bf16.msra.mxu1 %v4666_v39 }
  0x46   : > { %4419 = vmatprep.subr.bf16.mxu1 %v4965_v2 }
  0x48   : > { %1230 = vmatpush1.bf16.msra.mxu0 %v4683_v40 }
  0x49   : > { %1231 = vmatprep.subr.bf16.mxu0 %v4688_v41  ;;  %4420 = vmatpush3.bf16.msra.mxu1 %v4670_v42 }
  0x4a   : > { %4421 = vmatprep.subr.bf16.mxu1 %v4965_v2 }
  0x4c   : > { %1232 = vmatpush1.bf16.msra.mxu0 %v4686_v43 }
  0x4d   : > { %4422 = vmatpush3.bf16.msra.mxu1 %v4674_v44  ;;  %1233 = vmatprep.subr.bf16.mxu0 %v4691_v48 }
  0x4e   : > { %4423 = vmatprep.subr.bf16.mxu1 %v4965_v2 }
  0x50   : > { %1234 = vmatpush1.bf16.msra.mxu0 %v4689_v49 }
  0x51   : > { %4424 = vmatpush3.bf16.msra.mxu1 %v4678_v45  ;;  %1235 = vmatprep.subr.bf16.mxu0 %v4694_v50 }
  0x52   : > { %4425 = vmatprep.subr.bf16.mxu1 %v4965_v2 }
  0x54   : > { %1236 = vmatpush1.bf16.msra.mxu0 %v4692_v51  ;;  %v4069_v51 = vld [vmem:[%s6159_s9] ss:$0 sm:$0xff] }
  0x55   : > { %4426 = vmatpush3.bf16.msra.mxu1 %v4682_v46  ;;  %1578 = vmatprep.subr.bf16.mxu0 %v4697_v53 }
  0x57   : > { %1254 = vmatmul.mubr.bf16.vlgmr.msra.gmra.mxu0 %v815_v47 }
  0x58   : > { %4428 = vmatmul.mubr.bf16.vlgmr.msra.gmra.mxu1 %v815_v47  ;;  %1610 = vmatprep.mubr.bf16.mxu0 %v4966_v3 }
  0x59   : > { %1348 = vmatprep.mubr.bf16.mxu1 %v4966_v3  ;;  %1579 = vmatpush1.bf16.msra.mxu0 %v4695_v52 }
  0x5a   : > { %1580 = vmatprep.subr.bf16.mxu0 %v4701_v54 }
  0x5d   : > { %1581 = vmatpush1.bf16.msra.mxu0 %v4699_v55 }
  0x5e   : > { %1582 = vmatprep.subr.bf16.mxu0 %v4705_v56 }
  0x61   : > { %1583 = vmatpush1.bf16.msra.mxu0 %v4703_v57  ;;  %v4727_v57 = vld [vmem:[%s6124_s11 + $0xa8] ss:$12 sps:$4 sm:$0xff]  }
  0x62   : > { %1584 = vmatprep.subr.bf16.mxu0 %v4709_v18  ;;  %v4758_v18 = vld [vmem:[%s6124_s11 + $0x8] ss:$12 sps:$4 sm:$0xff]  }
  0x65   : > { %1585 = vmatpush1.bf16.msra.mxu0 %v4707_v19  ;;  %v4761_v19 = vld [vmem:[%s6125_s12 + $0xac] ss:$12 sps:$4 sm:$0xff]  }
  0x66   : > { %1586 = vmatprep.subr.bf16.mxu0 %v4713_v23 }
  0x69   : > { %1587 = vmatpush1.bf16.msra.mxu0 %v4711_v24 }
  0x6a   : > { %1588 = vmatprep.subr.bf16.mxu0 %v4717_v27 }
  0x6d   : > { %1589 = vmatpush1.bf16.msra.mxu0 %v4715_v28 }
  0x6e   : > { %1590 = vmatprep.subr.bf16.mxu0 %v4721_v30 }
  0x71   : > { %1591 = vmatpush1.bf16.msra.mxu0 %v4719_v31  ;;  %v4094_v31 = vld [vmem:[%s6160_s0] ss:$0 sm:$0xff]  ;;  %s6161_s0 = sld [smem:[#allocation4_spill]] }
  0x72   : > { %1592 = vmatprep.subr.bf16.mxu0 %v4725_v33 }
  0x75   : > { %1593 = vmatpush1.bf16.msra.mxu0 %v4723_v34 }
  0x76   : > { %1840 = vmatprep.subr.bf16.mxu0 %v4729_v36 }
  0x77   : > { %s802_s1 = scalar_lea.vmem %s6161_s0, %s4014_s30  ;;  %s4289_s30 = sshll.u32 %s6164_s2, 3 }
  0x78   : > { %s5748_s4 = scalar_lea.vmem %s6162_s27, %s4289_s30  ;;  %s4619_s27 = smul.u32 192, %s6164_s2 }
  0x7a   : > { %s6060_s0 = scalar_lea.vmem %s6138_s25, %s4619_s27 }
  0xf7   : > { %v1010_v58 = vpop.f32.mrf.mxu0  ;;  %v1051_v61 = vpop.f32.mrf.mxu1 }
  0xf8   : > { %v1058_v59 = vpack.c.bf16 %v1010_v58, %v1010_v58  ;;  %v1060_v63 = vpack.c.bf16 %v1051_v61, %v1051_v61  ;;  %v4730_v58 = vld [vmem:[%s6124_s11 + $0xb0] ss:$12 sps:$4 sm:$0xff]  }
  0xf9   : > { %v1012_v60 = vpop.f32.mrf.mxu0  ;;  %v4409_v1 = vpop.f32.mrf.mxu1  ;;  %v4731_v61 = vld [vmem:[%s6124_s11 + $0x90] ss:$12 sps:$4 sm:$0xff]  }
  0xfa   : > { %v1059_v62 = vpack.c.bf16 %v1012_v60, %v1012_v60  ;;  %v1308_v4 = vsel %vm1306_vm1, %v1058_v59, 0  ;;  %v1314_v8 = vsel %vm1306_vm1, %v1060_v63, 0  ;;  %v4733_v60 = vld [vmem:[%s6124_s11 + $0x94] ss:$12 sps:$4 sm:$0xff]   ;;  %v4737_v63 = vld [vmem:[%s6124_s11 + $0x7c] ss:$12 sps:$4 sm:$0xff]  }
  0xfb   : > { %v1014_v0 = vpop.f32.mrf.mxu0  ;;  %v1054_v6 = vpop.f32.mrf.mxu1  ;;  %v4738_v1 = vld [vmem:[%s6124_s11 + $0x80] ss:$12 sps:$4 sm:$0xff]  }
  0xfc   : > { %4066 = vmatprep.subr.msk.bf16.mxu1 %vm1306_vm1, %v1059_v62  ;;  %v4734_v62 = vld [vmem:[%s6124_s11 + $0x98] ss:$12 sps:$4 sm:$0xff]   ;;  %v4742_v6 = vld [vmem:[%s6124_s11 + $0x68] ss:$12 sps:$4 sm:$0xff]  }
  0xfd   : > { %v1015_v5 = vpop.f32.mrf.mxu0  ;;  %1331 = vmatpush1.bf16.msra.mxu1 %v1308_v4  ;;  %v4410_v9 = vpop.f32.mrf.mxu1  ;;  %v4735_v0 = vld [vmem:[%s6124_s11 + $0x78] ss:$12 sps:$4 sm:$0xff]  }
  0xfe   : > { %4431 = vmatprep.subr.bf16.mxu1 %v4965_v2  ;;  %v4741_v4 = vld [vmem:[%s6124_s11 + $0x64] ss:$12 sps:$4 sm:$0xff]   ;;  %v4739_v5 = vld [vmem:[%s6124_s11 + $0x60] ss:$12 sps:$4 sm:$0xff]  }
  0xff   : > { %v4746_v9 = vld [vmem:[%s6124_s11 + $0x50] ss:$12 sps:$4 sm:$0xff]  }
 0x100   : > { %4067 = vmatmul.mubr.msk.bf16.vlgmr.msra.gmra.mxu1 %vm1302_vm2, %v1057_v7 }
 0x101   : > { %4432 = vmatpush3.bf16.msra.mxu1 %v1314_v8  ;;  %4433 = vmatprep.mubr.msk.bf16.mxu1 %vm4967_vm0, %v4965_v2  ;;  %v4743_v8 = vld [vmem:[%s6124_s11 + $0x48] ss:$12 sps:$4 sm:$0xff]  }
 0x102   : > { %4437 = vmatprep.subr.bf16.mxu1 %v4965_v2 }
 0x108   : > { %4434 = vmatmul.mubr.msk.bf16.vlgmr.msra.gmra.mxu1 %vm1302_vm2, %v1057_v7  ;;  %v4745_v7 = vld [vmem:[%s6124_s11 + $0x4c] ss:$12 sps:$4 sm:$0xff]  }
 0x109   : > { %4438 = vmatpush3.bf16.msra.mxu1 %v4698_v10  ;;  %4453 = vmatprep.mubr.msk.bf16.mxu1 %vm4967_vm0, %v4965_v2  ;;  %v4749_v10 = vld [vmem:[%s6124_s11 + $0x34] ss:$12 sps:$4 sm:$0xff]  }
 0x10a   : > { %4439 = vmatprep.subr.bf16.mxu1 %v4965_v2 }
 0x10d   : > { %4440 = vmatpush3.bf16.msra.mxu1 %v4702_v11  ;;  %v4747_v11 = vld [vmem:[%s6124_s11 + $0x30] ss:$12 sps:$4 sm:$0xff]  }
 0x10e   : > { %4441 = vmatprep.subr.bf16.mxu1 %v4965_v2 }
 0x111   : > { %4442 = vmatpush3.bf16.msra.mxu1 %v4706_v12  ;;  %v4750_v12 = vld [vmem:[%s6124_s11 + $0x38] ss:$12 sps:$4 sm:$0xff]  }
 0x112   : > { %4443 = vmatprep.subr.bf16.mxu1 %v4965_v2 }
 0x115   : > { %4444 = vmatpush3.bf16.msra.mxu1 %v4710_v20 }
 0x116   : > { %4445 = vmatprep.subr.bf16.mxu1 %v4965_v2 }
 0x117   : > { %v1255_v17 = vpop.f32.mrf.mxu0 }
 0x118   : > { %v1296_v13 = vpop.f32.mrf.mxu1 }
 0x119   : > { %v1257_v21 = vpop.f32.mrf.mxu0  ;;  %4446 = vmatpush3.bf16.msra.mxu1 %v4714_v25 }
 0x11a   : > { %v4429_v14 = vpop.f32.mrf.mxu1  ;;  %4447 = vmatprep.subr.bf16.mxu1 %v4965_v2 }
 0x11b   : > { %v1259_v22 = vpop.f32.mrf.mxu0  ;;  %v4751_v14 = vld [vmem:[%s6124_s11 + $0x18] ss:$12 sps:$4 sm:$0xff]  }
 0x11c   : > { %v1299_v15 = vpop.f32.mrf.mxu1 }
 0x11d   : > { %v1260_v26 = vpop.f32.mrf.mxu0  ;;  %4448 = vmatpush3.bf16.msra.mxu1 %v4718_v29  ;;  %v4754_v15 = vld [vmem:[%s6124_s11 + $0x20] ss:$12 sps:$4 sm:$0xff]  }
 0x11e   : > { %v4430_v16 = vpop.f32.mrf.mxu1  ;;  %4449 = vmatprep.subr.bf16.mxu1 %v4965_v2 }
 0x11f   : > { %v4757_v16 = vld [vmem:[%s6124_s11 + $0x4] ss:$12 sps:$4 sm:$0xff]  }
 0x121   : > { %4450 = vmatpush3.bf16.msra.mxu1 %v4722_v32 }
 0x122   : > { %4451 = vmatprep.subr.bf16.mxu1 %v4965_v2 }
 0x125   : > { %4452 = vmatpush3.bf16.msra.mxu1 %v4726_v35 }
 0x126   : > { %4457 = vmatprep.subr.bf16.mxu1 %v4965_v2 }
 0x1c0   : > { %v1350_v37 = vpop.f32.mrf.mxu1 }
 0x1c1   : > { %v1351_v38 = vadd.f32 %v1350_v37, %v1255_v17  ;;  %v4755_v17 = vld [vmem:[%s6124_s11] ss:$12 sps:$4 sm:$0xff]   ;;  %v4759_v37 = vld [vmem:[%s6125_s12 + $0xa8] ss:$12 sps:$4 sm:$0xff]  }
 0x1c2   : > { %v1352_v39 = vpop.f32.mrf.mxu1 }
 0x1c3   : > { %v1399_v41 = vrot.slane %v1351_v38, 7  ;;  %v1353_v43 = vadd.f32 %v1352_v39, %v1257_v21  ;;  %v4762_v38 = vld [vmem:[%s6125_s12 + $0xb0] ss:$12 sps:$4 sm:$0xff]  }
 0x1c4   : > { %v1354_v40 = vpop.f32.mrf.mxu1 }
 0x1c5   : > { %v1401_v45 = vsel %vm1306_vm1, 0.0, %v1399_v41  ;;  %v4765_v40 = vld [vmem:[%s6125_s12 + $0x94] ss:$12 sps:$4 sm:$0xff]   ;;  %v4763_v41 = vld [vmem:[%s6125_s12 + $0x90] ss:$12 sps:$4 sm:$0xff]  }
 0x1c6   : > { %v1355_v42 = vpop.f32.mrf.mxu1  ;;  %v1407_v49 = vadd.f32 %v1401_v45, %v1353_v43  ;;  %v4769_v43 = vld [vmem:[%s6125_s12 + $0x7c] ss:$12 sps:$4 sm:$0xff]   ;;  %v4770_v45 = vld [vmem:[%s6125_s12 + $0x80] ss:$12 sps:$4 sm:$0xff]  }
 0x1c7   : > { %v4766_v42 = vld [vmem:[%s6125_s12 + $0x98] ss:$12 sps:$4 sm:$0xff]  }
 0x1c8   : > { %v1391_v44 = vpop.f32.mrf.mxu1 }
 0x1c9   : > { %v1392_v46 = vadd.f32 %v1391_v44, %v1296_v13  ;;  %v4753_v13 = vld [vmem:[%s6124_s11 + $0x1c] ss:$12 sps:$4 sm:$0xff]   ;;  %v4767_v44 = vld [vmem:[%s6125_s12 + $0x78] ss:$12 sps:$4 sm:$0xff]  }
 0x1ca   : > { %v4435_v47 = vpop.f32.mrf.mxu1 }
 0x1cb   : > { %v1403_v48 = vrot.slane %v1392_v46, 1  ;;  %v4773_v46 = vld [vmem:[%s6125_s12 + $0x64] ss:$12 sps:$4 sm:$0xff]   ;;  %v4771_v47 = vld [vmem:[%s6125_s12 + $0x60] ss:$12 sps:$4 sm:$0xff]  }
 0x1cc   : > { %v1394_v50 = vpop.f32.mrf.mxu1 }
 0x1cd   : > { %v1406_v52 = vsel %vm1405_vm3, %v1403_v48, 0.0  ;;  %v4774_v48 = vld [vmem:[%s6125_s12 + $0x68] ss:$12 sps:$4 sm:$0xff]  }
 0x1ce   : > { %v1408_v53 = vadd.f32 %v1407_v49, %v1406_v52  ;;  %v4436_v54 = vpop.f32.mrf.mxu1  ;;  %v4777_v49 = vld [vmem:[%s6125_s12 + $0x4c] ss:$12 sps:$4 sm:$0xff]   ;;  %v4775_v50 = vld [vmem:[%s6125_s12 + $0x48] ss:$12 sps:$4 sm:$0xff]  }
 0x1cf   : > { %v4781_v52 = vld [vmem:[%s6125_s12 + $0x34] ss:$12 sps:$4 sm:$0xff]   ;;  %v4782_v54 = vld [vmem:[%s6125_s12 + $0x38] ss:$12 sps:$4 sm:$0xff]  }
 0x1d0   : > { %v1415_v55 = vadd.f32 %v4069_v51, %v1408_v53  ;;  %v4778_v51 = vld [vmem:[%s6125_s12 + $0x50] ss:$12 sps:$4 sm:$0xff]  }
 0x1d1   : > { %v4779_v53 = vld [vmem:[%s6125_s12 + $0x30] ss:$12 sps:$4 sm:$0xff]  }
 0x1d2   : > { %v1416_v56 = vmax.f32 %v1415_v55, 0.0  ;;  %v4785_v55 = vld [vmem:[%s6125_s12 + $0x1c] ss:$12 sps:$4 sm:$0xff]  }
 0x1d4   : > { %v1417_v59 = vpack.c.bf16 %v1416_v56, %v1416_v56  ;;  %v4783_v56 = vld [vmem:[%s6125_s12 + $0x18] ss:$12 sps:$4 sm:$0xff]  }
 0x1d6   : > { %1611 = vmatmul.mubr.bf16.vlgmr.msra.gmra.mxu0 %v1417_v59  ;;  %4454 = vmatmul.mubr.bf16.vlgmr.msra.gmra.mxu1 %v1417_v59  ;;  %v4787_v59 = vld [vmem:[%s6125_s12] ss:$12 sps:$4 sm:$0xff]  }
 0x1d7   : > { %1841 = vmatpush1.bf16.msra.mxu0 %v4727_v57  ;;  %4458 = vmatpush3.bf16.msra.mxu1 %v4730_v58  ;;  %v4786_v57 = vld [vmem:[%s6125_s12 + $0x20] ss:$12 sps:$4 sm:$0xff]   ;;  %v4789_v58 = vld [vmem:[%s6125_s12 + $0x4] ss:$12 sps:$4 sm:$0xff]  }
 0x1d8   : > { %1842 = vmatprep.subr.bf16.mxu0 %v4733_v60  ;;  %4459 = vmatprep.subr.bf16.mxu1 %v4965_v2  ;;  %v4790_v60 = vld [vmem:[%s6125_s12 + $0x8] ss:$12 sps:$4 sm:$0xff]  }
 0x1d9   : > { %1872 = vmatprep.mubr.bf16.mxu0 %v4966_v3  ;;  %4473 = vmatprep.mubr.msk.bf16.mxu1 %vm4967_vm0, %v4965_v2 }
 0x1db   : > { %1843 = vmatpush1.bf16.msra.mxu0 %v4731_v61  ;;  %4460 = vmatpush3.bf16.msra.mxu1 %v4734_v62  ;;  %v1678_v61 = vld [vmem:[%s802_s1] sm:$0xf] }
 0x1dc   : > { %1844 = vmatprep.subr.bf16.mxu0 %v4737_v63  ;;  %4461 = vmatprep.subr.bf16.mxu1 %v4965_v2 }
 0x1df   : > { %1845 = vmatpush1.bf16.msra.mxu0 %v4735_v0  ;;  %4462 = vmatpush3.bf16.msra.mxu1 %v4738_v1 }
 0x1e0   : > { %1846 = vmatprep.subr.bf16.mxu0 %v4741_v4  ;;  %4463 = vmatprep.subr.bf16.mxu1 %v4965_v2 }
 0x1e3   : > { %1847 = vmatpush1.bf16.msra.mxu0 %v4739_v5  ;;  %4464 = vmatpush3.bf16.msra.mxu1 %v4742_v6 }
 0x1e4   : > { %1848 = vmatprep.subr.bf16.mxu0 %v4745_v7  ;;  %4465 = vmatprep.subr.bf16.mxu1 %v4965_v2 }
 0x1e7   : > { %1849 = vmatpush1.bf16.msra.mxu0 %v4743_v8  ;;  %4466 = vmatpush3.bf16.msra.mxu1 %v4746_v9  ;;  %v4793_v8 = vld [vmem:[%s6127_s14 + $0xac] ss:$12 sps:$4 sm:$0xff]  }
 0x1e8   : > { %4467 = vmatprep.subr.bf16.mxu1 %v4965_v2  ;;  %1850 = vmatprep.subr.bf16.mxu0 %v4749_v10 }
 0x1eb   : > { %1851 = vmatpush1.bf16.msra.mxu0 %v4747_v11  ;;  %4468 = vmatpush3.bf16.msra.mxu1 %v4750_v12  ;;  %v1921_v11 = vld [vmem:[%s6123_s10] sm:$0xf]  ;;  %v4794_v12 = vld [vmem:[%s6127_s14 + $0xb0] ss:$12 sps:$4 sm:$0xff]  }
 0x1ec   : > { %4469 = vmatprep.subr.bf16.mxu1 %v4965_v2  ;;  %1852 = vmatprep.subr.bf16.mxu0 %v4753_v13 }
 0x1ef   : > { %1853 = vmatpush1.bf16.msra.mxu0 %v4751_v14  ;;  %4470 = vmatpush3.bf16.msra.mxu1 %v4754_v15 }
 0x1f0   : > { %4471 = vmatprep.subr.bf16.mxu1 %v4965_v2  ;;  %1854 = vmatprep.subr.bf16.mxu0 %v4757_v16  ;;  %v4791_v16 = vld [vmem:[%s6127_s14 + $0xa8] ss:$12 sps:$4 sm:$0xff]  }
 0x1f3   : > { %1855 = vmatpush1.bf16.msra.mxu0 %v4755_v17  ;;  %4472 = vmatpush3.bf16.msra.mxu1 %v4758_v18  ;;  %v4797_v17 = vld [vmem:[%s6127_s14 + $0x94] ss:$12 sps:$4 sm:$0xff]   ;;  %v4798_v18 = vld [vmem:[%s6127_s14 + $0x98] ss:$12 sps:$4 sm:$0xff]  }
 0x1f4   : > { %4477 = vmatprep.subr.bf16.mxu1 %v4965_v2  ;;  %2085 = vmatprep.subr.bf16.mxu0 %v4761_v19  ;;  %v4795_v19 = vld [vmem:[%s6127_s14 + $0x90] ss:$12 sps:$4 sm:$0xff]  }
 0x296   : > { %v1612_v20 = vpop.f32.mrf.mxu0  ;;  %v1653_v21 = vpop.f32.mrf.mxu1 }
 0x297   : > { %v1661_v22 = vrot.slane %v1612_v20, 7  ;;  %v1665_v23 = vrot.slane %v1653_v21, 1  ;;  %v4801_v20 = vld [vmem:[%s6127_s14 + $0x7c] ss:$12 sps:$4 sm:$0xff]   ;;  %v4802_v21 = vld [vmem:[%s6127_s14 + $0x80] ss:$12 sps:$4 sm:$0xff]  }
 0x298   : > { %v1614_v24 = vpop.f32.mrf.mxu0  ;;  %v4455_v25 = vpop.f32.mrf.mxu1 }
 0x299   : > { %v1663_v26 = vsel %vm1306_vm1, 0.0, %v1661_v22  ;;  %v1667_v30 = vsel %vm1405_vm3, %v1665_v23, 0.0  ;;  %v4799_v22 = vld [vmem:[%s6127_s14 + $0x78] ss:$12 sps:$4 sm:$0xff]   ;;  %v4803_v25 = vld [vmem:[%s6127_s14 + $0x60] ss:$12 sps:$4 sm:$0xff]  }
 0x29a   : > { %v1668_v27 = vadd.f32 %v1663_v26, %v1614_v24  ;;  %v1616_v28 = vpop.f32.mrf.mxu0  ;;  %v1656_v29 = vpop.f32.mrf.mxu1  ;;  %v4805_v23 = vld [vmem:[%s6127_s14 + $0x64] ss:$12 sps:$4 sm:$0xff]   ;;  %v4806_v24 = vld [vmem:[%s6127_s14 + $0x68] ss:$12 sps:$4 sm:$0xff]  }
 0x29c   : > { %v1669_v32 = vadd.f32 %v1668_v27, %v1667_v30  ;;  %v1617_v33 = vpop.f32.mrf.mxu0  ;;  %v4456_v34 = vpop.f32.mrf.mxu1 }
 0x29d   : > { %v4809_v34 = vld [vmem:[%s6127_s14 + $0x4c] ss:$12 sps:$4 sm:$0xff]  }
 0x29e   : > { %v1676_v35 = vadd.f32 %v4094_v31, %v1669_v32 }
 0x2a0   : > { %v1677_v36 = vmax.f32 %v1676_v35, 0.0  ;;  %v4807_v35 = vld [vmem:[%s6127_s14 + $0x48] ss:$12 sps:$4 sm:$0xff]  }
 0x2a2   : > { %v1679_v39 = vpack.c.bf16 %v1677_v36, %v1677_v36  ;;  %v4810_v36 = vld [vmem:[%s6127_s14 + $0x50] ss:$12 sps:$4 sm:$0xff]  }
 0x2a4   : > { %1873 = vmatmul.mubr.bf16.vlgmr.msra.gmra.mxu0 %v1679_v39  ;;  %4474 = vmatmul.mubr.bf16.vlgmr.msra.gmra.mxu1 %v1679_v39  ;;  %v4814_v39 = vld [vmem:[%s6127_s14 + $0x38] ss:$12 sps:$4 sm:$0xff]  }
 0x2a5   : > { %2086 = vmatpush1.bf16.msra.mxu0 %v4759_v37  ;;  %4478 = vmatpush3.bf16.msra.mxu1 %v4762_v38  ;;  %v4813_v37 = vld [vmem:[%s6127_s14 + $0x34] ss:$12 sps:$4 sm:$0xff]   ;;  %v4811_v38 = vld [vmem:[%s6127_s14 + $0x30] ss:$12 sps:$4 sm:$0xff]  }
 0x2a6   : > { %2087 = vmatprep.subr.bf16.mxu0 %v4765_v40  ;;  %4479 = vmatprep.subr.bf16.mxu1 %v4965_v2  ;;  %v4817_v40 = vld [vmem:[%s6127_s14 + $0x1c] ss:$12 sps:$4 sm:$0xff]  }
 0x2a7   : > { %2117 = vmatprep.mubr.bf16.mxu0 %v4966_v3  ;;  %4493 = vmatprep.mubr.msk.bf16.mxu1 %vm4967_vm0, %v4965_v2 }
 0x2a9   : > { %2088 = vmatpush1.bf16.msra.mxu0 %v4763_v41  ;;  %4480 = vmatpush3.bf16.msra.mxu1 %v4766_v42  ;;  %v4815_v41 = vld [vmem:[%s6127_s14 + $0x18] ss:$12 sps:$4 sm:$0xff]   ;;  %v4818_v42 = vld [vmem:[%s6127_s14 + $0x20] ss:$12 sps:$4 sm:$0xff]  }
 0x2aa   : > { %2089 = vmatprep.subr.bf16.mxu0 %v4769_v43  ;;  %4481 = vmatprep.subr.bf16.mxu1 %v4965_v2  ;;  %v4821_v43 = vld [vmem:[%s6127_s14 + $0x4] ss:$12 sps:$4 sm:$0xff]  }
 0x2ad   : > { %2090 = vmatpush1.bf16.msra.mxu0 %v4767_v44  ;;  %4482 = vmatpush3.bf16.msra.mxu1 %v4770_v45  ;;  %v4819_v44 = vld [vmem:[%s6127_s14] ss:$12 sps:$4 sm:$0xff]   ;;  %v4822_v45 = vld [vmem:[%s6127_s14 + $0x8] ss:$12 sps:$4 sm:$0xff]  }
 0x2ae   : > { %2091 = vmatprep.subr.bf16.mxu0 %v4773_v46  ;;  %4483 = vmatprep.subr.bf16.mxu1 %v4965_v2  ;;  %v4825_v46 = vld [vmem:[%s6130_s17 + $0xac] ss:$12 sps:$4 sm:$0xff]  }
 0x2b1   : > { %2092 = vmatpush1.bf16.msra.mxu0 %v4771_v47  ;;  %4484 = vmatpush3.bf16.msra.mxu1 %v4774_v48 }
 0x2b2   : > { %2093 = vmatprep.subr.bf16.mxu0 %v4777_v49  ;;  %4485 = vmatprep.subr.bf16.mxu1 %v4965_v2 }
 0x2b5   : > { %2094 = vmatpush1.bf16.msra.mxu0 %v4775_v50  ;;  %4486 = vmatpush3.bf16.msra.mxu1 %v4778_v51 }
 0x2b6   : > { %2095 = vmatprep.subr.bf16.mxu0 %v4781_v52  ;;  %4487 = vmatprep.subr.bf16.mxu1 %v4965_v2 }
 0x2b9   : > { %2096 = vmatpush1.bf16.msra.mxu0 %v4779_v53  ;;  %4488 = vmatpush3.bf16.msra.mxu1 %v4782_v54 }
 0x2ba   : > { %2097 = vmatprep.subr.bf16.mxu0 %v4785_v55  ;;  %4489 = vmatprep.subr.bf16.mxu1 %v4965_v2 }
 0x2bd   : > { %2098 = vmatpush1.bf16.msra.mxu0 %v4783_v56  ;;  %4490 = vmatpush3.bf16.msra.mxu1 %v4786_v57 }
 0x2be   : > { %2099 = vmatprep.subr.bf16.mxu0 %v4789_v58  ;;  %4491 = vmatprep.subr.bf16.mxu1 %v4965_v2 }
 0x2c1   : > { %2100 = vmatpush1.bf16.msra.mxu0 %v4787_v59  ;;  %4492 = vmatpush3.bf16.msra.mxu1 %v4790_v60 }
 0x2c2   : > { %4497 = vmatprep.subr.bf16.mxu1 %v4965_v2 }
 0x2c4   : > { %2118 = vmatmul.mubr.bf16.vlgmr.msra.gmra.mxu0 %v1678_v61  ;;  %4494 = vmatmul.mubr.bf16.vlgmr.msra.gmra.mxu1 %v1678_v61 }
 0x2c5   : > { %4499 = vmatprep.mubr.msk.bf16.mxu1 %vm4967_vm0, %v4965_v2  ;;  %2212 = vmatprep.mubr.bf16.mxu0 %v4966_v3 }
 0x364   : > { %v1874_v62 = vpop.f32.mrf.mxu0  ;;  %v1915_v63 = vpop.f32.mrf.mxu1 }
 0x365   : > { %v1922_v0 = vpack.c.bf16 %v1874_v62, %v1874_v62  ;;  %v1924_v1 = vpack.c.bf16 %v1915_v63, %v1915_v63  ;;  %v4146_v63 = vld [vmem:[%s6126_s13] ss:$0 sm:$0xff] }
 0x366   : > { %v1876_v4 = vpop.f32.mrf.mxu0  ;;  %v4475_v5 = vpop.f32.mrf.mxu1 }
 0x367   : > { %v2178_v6 = vsel %vm2170_vm4, %v1924_v1, 0  ;;  %v1923_v7 = vpack.c.bf16 %v1876_v4, %v1876_v4  ;;  %v2172_v13 = vsel %vm2170_vm4, %v1922_v0, 0  ;;  %v4823_v5 = vld [vmem:[%s6130_s17 + $0xa8] ss:$12 sps:$4 sm:$0xff]  }
 0x368   : > { %v1878_v9 = vpop.f32.mrf.mxu0  ;;  %v1918_v10 = vpop.f32.mrf.mxu1  ;;  %4498 = vmatpush3.bf16.msra.mxu1 %v2178_v6  ;;  %v4826_v6 = vld [vmem:[%s6130_s17 + $0xb0] ss:$12 sps:$4 sm:$0xff]  }
 0x369   : > { %4143 = vmatprep.subr.msk.bf16.mxu0 %vm2170_vm4, %v1923_v7  ;;  %4503 = vmatprep.subr.bf16.mxu1 %v4965_v2  ;;  %v4827_v9 = vld [vmem:[%s6130_s17 + $0x90] ss:$12 sps:$4 sm:$0xff]   ;;  %v4830_v10 = vld [vmem:[%s6130_s17 + $0x98] ss:$12 sps:$4 sm:$0xff]  }
 0x36a   : > { %v1879_v14 = vpop.f32.mrf.mxu0  ;;  %v4476_v15 = vpop.f32.mrf.mxu1  ;;  %2195 = vmatpush1.bf16.msra.mxu0 %v2172_v13  ;;  %v4834_v13 = vld [vmem:[%s6130_s17 + $0x80] ss:$12 sps:$4 sm:$0xff]  }
 0x36b   : > { %4500 = vmatmul.mubr.msk.bf16.vlgmr.msra.gmra.mxu1 %vm2166_vm5, %v1921_v11  ;;  %2442 = vmatprep.subr.bf16.mxu0 %v4793_v8  ;;  %v4829_v8 = vld [vmem:[%s6130_s17 + $0x94] ss:$12 sps:$4 sm:$0xff]   ;;  %v4837_v14 = vld [vmem:[%s6130_s17 + $0x64] ss:$12 sps:$4 sm:$0xff]  }
 0x36c   : > { %4504 = vmatpush3.bf16.msra.mxu1 %v4794_v12  ;;  %4519 = vmatprep.mubr.msk.bf16.mxu1 %vm4967_vm0, %v4965_v2  ;;  %v4831_v12 = vld [vmem:[%s6130_s17 + $0x78] ss:$12 sps:$4 sm:$0xff]   ;;  %v4835_v15 = vld [vmem:[%s6130_s17 + $0x60] ss:$12 sps:$4 sm:$0xff]  }
 0x36d   : > { %4144 = vmatmul.mubr.msk.bf16.vlgmr.msra.gmra.mxu0 %vm2166_vm5, %v1921_v11  ;;  %4505 = vmatprep.subr.bf16.mxu1 %v4965_v2  ;;  %v4833_v11 = vld [vmem:[%s6130_s17 + $0x7c] ss:$12 sps:$4 sm:$0xff]  }
 0x36e   : > { %2443 = vmatpush1.bf16.msra.mxu0 %v4791_v16  ;;  %2474 = vmatprep.mubr.bf16.mxu0 %v4966_v3  ;;  %v4838_v16 = vld [vmem:[%s6130_s17 + $0x68] ss:$12 sps:$4 sm:$0xff]  }
 0x36f   : > { %2444 = vmatprep.subr.bf16.mxu0 %v4797_v17  ;;  %v4841_v17 = vld [vmem:[%s6130_s17 + $0x4c] ss:$12 sps:$4 sm:$0xff]  }
 0x370   : > { %4506 = vmatpush3.bf16.msra.mxu1 %v4798_v18  ;;  %v4839_v18 = vld [vmem:[%s6130_s17 + $0x48] ss:$12 sps:$4 sm:$0xff]  }
 0x371   : > { %4507 = vmatprep.subr.bf16.mxu1 %v4965_v2 }
 0x372   : > { %2445 = vmatpush1.bf16.msra.mxu0 %v4795_v19  ;;  %v4842_v19 = vld [vmem:[%s6130_s17 + $0x50] ss:$12 sps:$4 sm:$0xff]  }
 0x373   : > { %2446 = vmatprep.subr.bf16.mxu0 %v4801_v20  ;;  %v4845_v20 = vld [vmem:[%s6130_s17 + $0x34] ss:$12 sps:$4 sm:$0xff]  }
 0x374   : > { %4508 = vmatpush3.bf16.msra.mxu1 %v4802_v21  ;;  %v4843_v21 = vld [vmem:[%s6130_s17 + $0x30] ss:$12 sps:$4 sm:$0xff]  }
 0x375   : > { %4509 = vmatprep.subr.bf16.mxu1 %v4965_v2 }
 0x376   : > { %2447 = vmatpush1.bf16.msra.mxu0 %v4799_v22  ;;  %v4846_v22 = vld [vmem:[%s6130_s17 + $0x38] ss:$12 sps:$4 sm:$0xff]  }
 0x377   : > { %2448 = vmatprep.subr.bf16.mxu0 %v4805_v23  ;;  %v4849_v23 = vld [vmem:[%s6130_s17 + $0x1c] ss:$12 sps:$4 sm:$0xff]  }
 0x378   : > { %4510 = vmatpush3.bf16.msra.mxu1 %v4806_v24  ;;  %v4847_v24 = vld [vmem:[%s6130_s17 + $0x18] ss:$12 sps:$4 sm:$0xff]  }
 0x379   : > { %4511 = vmatprep.subr.bf16.mxu1 %v4965_v2 }
 0x37a   : > { %2449 = vmatpush1.bf16.msra.mxu0 %v4803_v25  ;;  %v4850_v25 = vld [vmem:[%s6130_s17 + $0x20] ss:$12 sps:$4 sm:$0xff]  }
 0x37b   : > { %2450 = vmatprep.subr.bf16.mxu0 %v4809_v34 }
 0x37c   : > { %4512 = vmatpush3.bf16.msra.mxu1 %v4810_v36 }
 0x37d   : > { %4513 = vmatprep.subr.bf16.mxu1 %v4965_v2 }
 0x37e   : > { %2451 = vmatpush1.bf16.msra.mxu0 %v4807_v35 }
 0x37f   : > { %2452 = vmatprep.subr.bf16.mxu0 %v4813_v37 }
 0x380   : > { %4514 = vmatpush3.bf16.msra.mxu1 %v4814_v39 }
 0x381   : > { %4515 = vmatprep.subr.bf16.mxu1 %v4965_v2 }
 0x382   : > { %2453 = vmatpush1.bf16.msra.mxu0 %v4811_v38 }
 0x383   : > { %2454 = vmatprep.subr.bf16.mxu0 %v4817_v40 }
 0x384   : > { %v2119_v26 = vpop.f32.mrf.mxu0  ;;  %v2160_v27 = vpop.f32.mrf.mxu1  ;;  %4516 = vmatpush3.bf16.msra.mxu1 %v4818_v42 }
 0x385   : > { %4517 = vmatprep.subr.bf16.mxu1 %v4965_v2 }
 0x386   : > { %v2121_v28 = vpop.f32.mrf.mxu0  ;;  %v4495_v29 = vpop.f32.mrf.mxu1  ;;  %2455 = vmatpush1.bf16.msra.mxu0 %v4815_v41  ;;  %v4171_v41 = vld [vmem:[%s6128_s15] ss:$0 sm:$0xff] }
 0x387   : > { %2456 = vmatprep.subr.bf16.mxu0 %v4821_v43  ;;  %v4857_v29 = vld [vmem:[%s6131_s18 + $0xac] ss:$12 sps:$4 sm:$0xff]  }
 0x388   : > { %v2123_v30 = vpop.f32.mrf.mxu0  ;;  %v2163_v31 = vpop.f32.mrf.mxu1  ;;  %4518 = vmatpush3.bf16.msra.mxu1 %v4822_v45 }
 0x389   : > { %4523 = vmatprep.subr.bf16.mxu1 %v4965_v2 }
 0x38a   : > { %v2124_v32 = vpop.f32.mrf.mxu0  ;;  %v4496_v33 = vpop.f32.mrf.mxu1  ;;  %2457 = vmatpush1.bf16.msra.mxu0 %v4819_v44 }
 0x38b   : > { %2705 = vmatprep.subr.bf16.mxu0 %v4825_v46 }
 0x42b   : > { %v2255_v47 = vpop.f32.mrf.mxu1 }
 0x42c   : > { %v2256_v48 = vadd.f32 %v2255_v47, %v2160_v27  ;;  %v4851_v27 = vld [vmem:[%s6130_s17] ss:$12 sps:$4 sm:$0xff]   ;;  %v4855_v47 = vld [vmem:[%s6131_s18 + $0xa8] ss:$12 sps:$4 sm:$0xff]  }
 0x42d   : > { %v2214_v49 = vpop.f32.mrf.mxu0  ;;  %v4501_v50 = vpop.f32.mrf.mxu1 }
 0x42e   : > { %v2215_v51 = vadd.f32 %v2214_v49, %v2119_v26  ;;  %v2267_v54 = vrot.slane %v2256_v48, 1  ;;  %v4853_v26 = vld [vmem:[%s6130_s17 + $0x4] ss:$12 sps:$4 sm:$0xff]   ;;  %v4861_v50 = vld [vmem:[%s6131_s18 + $0x94] ss:$12 sps:$4 sm:$0xff]  }
 0x42f   : > { %v2216_v52 = vpop.f32.mrf.mxu0  ;;  %v2258_v53 = vpop.f32.mrf.mxu1  ;;  %v4858_v48 = vld [vmem:[%s6131_s18 + $0xb0] ss:$12 sps:$4 sm:$0xff]  }
 0x430   : > { %v2263_v55 = vrot.slane %v2215_v51, 7  ;;  %v2217_v56 = vadd.f32 %v2216_v52, %v2121_v28  ;;  %v2270_v62 = vsel %vm2269_vm6, %v2267_v54, 0.0  ;;  %v4854_v28 = vld [vmem:[%s6130_s17 + $0x8] ss:$12 sps:$4 sm:$0xff]   ;;  %v4859_v51 = vld [vmem:[%s6131_s18 + $0x90] ss:$12 sps:$4 sm:$0xff]  }
 0x431   : > { %v2218_v57 = vpop.f32.mrf.mxu0  ;;  %v4502_v58 = vpop.f32.mrf.mxu1  ;;  %v4862_v52 = vld [vmem:[%s6131_s18 + $0x98] ss:$12 sps:$4 sm:$0xff]   ;;  %v4865_v53 = vld [vmem:[%s6131_s18 + $0x7c] ss:$12 sps:$4 sm:$0xff]  }
 0x432   : > { %v2265_v59 = vsel %vm1306_vm1, 0.0, %v2263_v55  ;;  %v4863_v54 = vld [vmem:[%s6131_s18 + $0x78] ss:$12 sps:$4 sm:$0xff]   ;;  %v4866_v55 = vld [vmem:[%s6131_s18 + $0x80] ss:$12 sps:$4 sm:$0xff]  }
 0x433   : > { %v2271_v60 = vadd.f32 %v2265_v59, %v2217_v56  ;;  %v2219_v61 = vpop.f32.mrf.mxu0  ;;  %v4869_v56 = vld [vmem:[%s6131_s18 + $0x64] ss:$12 sps:$4 sm:$0xff]   ;;  %v4867_v57 = vld [vmem:[%s6131_s18 + $0x60] ss:$12 sps:$4 sm:$0xff]   ;;  %v4870_v58 = vld [vmem:[%s6131_s18 + $0x68] ss:$12 sps:$4 sm:$0xff]  }
 0x434   : > { %v4873_v59 = vld [vmem:[%s6131_s18 + $0x4c] ss:$12 sps:$4 sm:$0xff]   ;;  %v4874_v61 = vld [vmem:[%s6131_s18 + $0x50] ss:$12 sps:$4 sm:$0xff]  }
 0x435   : > { %v2272_v0 = vadd.f32 %v2271_v60, %v2270_v62  ;;  %v4871_v60 = vld [vmem:[%s6131_s18 + $0x48] ss:$12 sps:$4 sm:$0xff]  }
 0x436   : > { %v4877_v62 = vld [vmem:[%s6131_s18 + $0x34] ss:$12 sps:$4 sm:$0xff]  }
 0x437   : > { %v2279_v1 = vadd.f32 %v4146_v63, %v2272_v0  ;;  %v4875_v63 = vld [vmem:[%s6131_s18 + $0x30] ss:$12 sps:$4 sm:$0xff]   ;;  %v4878_v0 = vld [vmem:[%s6131_s18 + $0x38] ss:$12 sps:$4 sm:$0xff]  }
 0x439   : > { %v2280_v4 = vmax.f32 %v2279_v1, 0.0  ;;  %v4881_v1 = vld [vmem:[%s6131_s18 + $0x1c] ss:$12 sps:$4 sm:$0xff]  }
 0x43b   : > { %v2281_v7 = vpack.c.bf16 %v2280_v4, %v2280_v4  ;;  %v4879_v4 = vld [vmem:[%s6131_s18 + $0x18] ss:$12 sps:$4 sm:$0xff]  }
 0x43d   : > { %2475 = vmatmul.mubr.bf16.vlgmr.msra.gmra.mxu0 %v2281_v7  ;;  %4520 = vmatmul.mubr.bf16.vlgmr.msra.gmra.mxu1 %v2281_v7  ;;  %v4883_v7 = vld [vmem:[%s6131_s18] ss:$12 sps:$4 sm:$0xff]  }
 0x43e   : > { %2706 = vmatpush1.bf16.msra.mxu0 %v4823_v5  ;;  %4524 = vmatpush3.bf16.msra.mxu1 %v4826_v6  ;;  %v4882_v5 = vld [vmem:[%s6131_s18 + $0x20] ss:$12 sps:$4 sm:$0xff]   ;;  %v4885_v6 = vld [vmem:[%s6131_s18 + $0x4] ss:$12 sps:$4 sm:$0xff]  }
 0x43f   : > { %2707 = vmatprep.subr.bf16.mxu0 %v4829_v8  ;;  %4525 = vmatprep.subr.bf16.mxu1 %v4965_v2  ;;  %v4886_v8 = vld [vmem:[%s6131_s18 + $0x8] ss:$12 sps:$4 sm:$0xff]  }
 0x440   : > { %2737 = vmatprep.mubr.bf16.mxu0 %v4966_v3  ;;  %4539 = vmatprep.mubr.msk.bf16.mxu1 %vm4967_vm0, %v4965_v2 }
 0x442   : > { %2708 = vmatpush1.bf16.msra.mxu0 %v4827_v9  ;;  %4526 = vmatpush3.bf16.msra.mxu1 %v4830_v10  ;;  %v4887_v9 = vld [vmem:[%s5748_s4] sm:$0xff]  }
 0x443   : > { %2709 = vmatprep.subr.bf16.mxu0 %v4833_v11  ;;  %4527 = vmatprep.subr.bf16.mxu1 %v4965_v2 }
 0x446   : > { %2710 = vmatpush1.bf16.msra.mxu0 %v4831_v12  ;;  %4528 = vmatpush3.bf16.msra.mxu1 %v4834_v13 }
 0x447   : > { %2711 = vmatprep.subr.bf16.mxu0 %v4837_v14  ;;  %4529 = vmatprep.subr.bf16.mxu1 %v4965_v2 }
 0x44a   : > { %2712 = vmatpush1.bf16.msra.mxu0 %v4835_v15  ;;  %4530 = vmatpush3.bf16.msra.mxu1 %v4838_v16 }
 0x44b   : > { %2713 = vmatprep.subr.bf16.mxu0 %v4841_v17  ;;  %4531 = vmatprep.subr.bf16.mxu1 %v4965_v2 }
 0x44e   : > { %2714 = vmatpush1.bf16.msra.mxu0 %v4839_v18  ;;  %4532 = vmatpush3.bf16.msra.mxu1 %v4842_v19  ;;  %v4888_v18 = vld [vmem:[%s6129_s16] sm:$0xff]   ;;  %v4891_v19 = vld [vmem:[%s6133_s20 + $0xac] ss:$12 sps:$4 sm:$0xff]  }
 0x44f   : > { %4533 = vmatprep.subr.bf16.mxu1 %v4965_v2  ;;  %2715 = vmatprep.subr.bf16.mxu0 %v4845_v20 }
 0x452   : > { %2716 = vmatpush1.bf16.msra.mxu0 %v4843_v21  ;;  %4534 = vmatpush3.bf16.msra.mxu1 %v4846_v22  ;;  %v4892_v22 = vld [vmem:[%s6133_s20 + $0xb0] ss:$12 sps:$4 sm:$0xff]  }
 0x453   : > { %4535 = vmatprep.subr.bf16.mxu1 %v4965_v2  ;;  %2717 = vmatprep.subr.bf16.mxu0 %v4849_v23 }
 0x456   : > { %2718 = vmatpush1.bf16.msra.mxu0 %v4847_v24  ;;  %4536 = vmatpush3.bf16.msra.mxu1 %v4850_v25 }
 0x457   : > { %4537 = vmatprep.subr.bf16.mxu1 %v4965_v2  ;;  %2719 = vmatprep.subr.bf16.mxu0 %v4853_v26  ;;  %v4889_v26 = vld [vmem:[%s6133_s20 + $0xa8] ss:$12 sps:$4 sm:$0xff]  }
 0x45a   : > { %2720 = vmatpush1.bf16.msra.mxu0 %v4851_v27  ;;  %4538 = vmatpush3.bf16.msra.mxu1 %v4854_v28  ;;  %v4895_v27 = vld [vmem:[%s6133_s20 + $0x94] ss:$12 sps:$4 sm:$0xff]   ;;  %v4896_v28 = vld [vmem:[%s6133_s20 + $0x98] ss:$12 sps:$4 sm:$0xff]  }
 0x45b   : > { %4543 = vmatprep.subr.bf16.mxu1 %v4965_v2  ;;  %2957 = vmatprep.subr.bf16.mxu0 %v4857_v29  ;;  %v4893_v29 = vld [vmem:[%s6133_s20 + $0x90] ss:$12 sps:$4 sm:$0xff]  }
 0x4fd   : > { %v2476_v30 = vpop.f32.mrf.mxu0  ;;  %v2517_v31 = vpop.f32.mrf.mxu1 }
 0x4fe   : > { %v2525_v32 = vrot.slane %v2476_v30, 7  ;;  %v2529_v33 = vrot.slane %v2517_v31, 1  ;;  %v4899_v30 = vld [vmem:[%s6133_s20 + $0x7c] ss:$12 sps:$4 sm:$0xff]   ;;  %v4900_v31 = vld [vmem:[%s6133_s20 + $0x80] ss:$12 sps:$4 sm:$0xff]  }
 0x4ff   : > { %v2478_v34 = vpop.f32.mrf.mxu0  ;;  %v4521_v35 = vpop.f32.mrf.mxu1 }
 0x500   : > { %v2527_v36 = vsel %vm1306_vm1, 0.0, %v2525_v32  ;;  %v2531_v40 = vsel %vm2269_vm6, %v2529_v33, 0.0  ;;  %v4897_v32 = vld [vmem:[%s6133_s20 + $0x78] ss:$12 sps:$4 sm:$0xff]  }
 0x501   : > { %v2532_v37 = vadd.f32 %v2527_v36, %v2478_v34  ;;  %v2480_v38 = vpop.f32.mrf.mxu0  ;;  %v2520_v39 = vpop.f32.mrf.mxu1 }
 0x502   : > { %v4901_v38 = vld [vmem:[%s6133_s20 + $0x60] ss:$12 sps:$4 sm:$0xff]   ;;  %v4904_v39 = vld [vmem:[%s6133_s20 + $0x68] ss:$12 sps:$4 sm:$0xff]  }
 0x503   : > { %v2533_v42 = vadd.f32 %v2532_v37, %v2531_v40  ;;  %v2481_v43 = vpop.f32.mrf.mxu0  ;;  %v4522_v44 = vpop.f32.mrf.mxu1  ;;  %v4903_v37 = vld [vmem:[%s6133_s20 + $0x64] ss:$12 sps:$4 sm:$0xff]   ;;  %v4907_v40 = vld [vmem:[%s6133_s20 + $0x4c] ss:$12 sps:$4 sm:$0xff]  }
 0x504   : > { %v4911_v43 = vld [vmem:[%s6133_s20 + $0x34] ss:$12 sps:$4 sm:$0xff]   ;;  %v4909_v44 = vld [vmem:[%s6133_s20 + $0x30] ss:$12 sps:$4 sm:$0xff]  }
 0x505   : > { %v2540_v45 = vadd.f32 %v4171_v41, %v2533_v42  ;;  %v4905_v41 = vld [vmem:[%s6133_s20 + $0x48] ss:$12 sps:$4 sm:$0xff]   ;;  %v4908_v42 = vld [vmem:[%s6133_s20 + $0x50] ss:$12 sps:$4 sm:$0xff]  }
 0x507   : > { %v2541_v46 = vmax.f32 %v2540_v45, 0.0  ;;  %v4912_v45 = vld [vmem:[%s6133_s20 + $0x38] ss:$12 sps:$4 sm:$0xff]  }
 0x509   : > { %v2544_v49 = vpack.c.bf16 %v2541_v46, %v2541_v46  ;;  %v4915_v46 = vld [vmem:[%s6133_s20 + $0x1c] ss:$12 sps:$4 sm:$0xff]  }
 0x50b   : > { %2738 = vmatmul.mubr.bf16.vlgmr.msra.gmra.mxu0 %v2544_v49  ;;  %4540 = vmatmul.mubr.bf16.vlgmr.msra.gmra.mxu1 %v2544_v49  ;;  %v4919_v49 = vld [vmem:[%s6133_s20 + $0x4] ss:$12 sps:$4 sm:$0xff]  }
 0x50c   : > { %2958 = vmatpush1.bf16.msra.mxu0 %v4855_v47  ;;  %4544 = vmatpush3.bf16.msra.mxu1 %v4858_v48  ;;  %v4913_v47 = vld [vmem:[%s6133_s20 + $0x18] ss:$12 sps:$4 sm:$0xff]   ;;  %v4916_v48 = vld [vmem:[%s6133_s20 + $0x20] ss:$12 sps:$4 sm:$0xff]  }
 0x50d   : > { %2959 = vmatprep.subr.bf16.mxu0 %v4861_v50  ;;  %4545 = vmatprep.subr.bf16.mxu1 %v4965_v2  ;;  %v4917_v50 = vld [vmem:[%s6133_s20] ss:$12 sps:$4 sm:$0xff]  }
 0x50e   : > { %2989 = vmatprep.mubr.bf16.mxu0 %v4966_v3  ;;  %4559 = vmatprep.mubr.msk.bf16.mxu1 %vm4967_vm0, %v4965_v2 }
 0x510   : > { %2960 = vmatpush1.bf16.msra.mxu0 %v4859_v51  ;;  %4546 = vmatpush3.bf16.msra.mxu1 %v4862_v52  ;;  %v4920_v51 = vld [vmem:[%s6133_s20 + $0x8] ss:$12 sps:$4 sm:$0xff]   ;;  %v4923_v52 = vld [vmem:[%s6135_s22 + $0xac] ss:$12 sps:$4 sm:$0xff]  }
 0x511   : > { %2961 = vmatprep.subr.bf16.mxu0 %v4865_v53  ;;  %4547 = vmatprep.subr.bf16.mxu1 %v4965_v2 }
 0x514   : > { %2962 = vmatpush1.bf16.msra.mxu0 %v4863_v54  ;;  %4548 = vmatpush3.bf16.msra.mxu1 %v4866_v55 }
 0x515   : > { %2963 = vmatprep.subr.bf16.mxu0 %v4869_v56  ;;  %4549 = vmatprep.subr.bf16.mxu1 %v4965_v2 }
 0x518   : > { %2964 = vmatpush1.bf16.msra.mxu0 %v4867_v57  ;;  %4550 = vmatpush3.bf16.msra.mxu1 %v4870_v58 }
 0x519   : > { %2965 = vmatprep.subr.bf16.mxu0 %v4873_v59  ;;  %4551 = vmatprep.subr.bf16.mxu1 %v4965_v2 }
 0x51c   : > { %2966 = vmatpush1.bf16.msra.mxu0 %v4871_v60  ;;  %4552 = vmatpush3.bf16.msra.mxu1 %v4874_v61 }
 0x51d   : > { %2967 = vmatprep.subr.bf16.mxu0 %v4877_v62  ;;  %4553 = vmatprep.subr.bf16.mxu1 %v4965_v2 }
 0x520   : > { %2968 = vmatpush1.bf16.msra.mxu0 %v4875_v63  ;;  %4554 = vmatpush3.bf16.msra.mxu1 %v4878_v0 }
 0x521   : > { %2969 = vmatprep.subr.bf16.mxu0 %v4881_v1  ;;  %4555 = vmatprep.subr.bf16.mxu1 %v4965_v2 }
 0x524   : > { %2970 = vmatpush1.bf16.msra.mxu0 %v4879_v4  ;;  %4556 = vmatpush3.bf16.msra.mxu1 %v4882_v5 }
 0x525   : > { %2971 = vmatprep.subr.bf16.mxu0 %v4885_v6  ;;  %4557 = vmatprep.subr.bf16.mxu1 %v4965_v2 }
 0x528   : > { %2972 = vmatpush1.bf16.msra.mxu0 %v4883_v7  ;;  %4558 = vmatpush3.bf16.msra.mxu1 %v4886_v8 }
 0x529   : > { %4563 = vmatprep.subr.bf16.mxu1 %v4965_v2 }
 0x52b   : > { %2990 = vmatmul.mubr.bf16.vlgmr.msra.gmra.mxu0 %v4887_v9  ;;  %4560 = vmatmul.mubr.bf16.vlgmr.msra.gmra.mxu1 %v4887_v9 }
 0x52c   : > { %4565 = vmatprep.mubr.msk.bf16.mxu1 %vm4967_vm0, %v4965_v2  ;;  %3092 = vmatprep.mubr.bf16.mxu0 %v4966_v3 }
 0x5cb   : > { %v2739_v10 = vpop.f32.mrf.mxu0  ;;  %v2780_v11 = vpop.f32.mrf.mxu1 }
 0x5cc   : > { %v2788_v12 = vpack.c.bf16 %v2739_v10, %v2739_v10  ;;  %v2790_v13 = vpack.c.bf16 %v2780_v11, %v2780_v11 }
 0x5cd   : > { %v2741_v14 = vpop.f32.mrf.mxu0  ;;  %v4541_v15 = vpop.f32.mrf.mxu1 }
 0x5ce   : > { %v3058_v16 = vsel %vm3050_vm7, %v2790_v13, 0  ;;  %v2789_v17 = vpack.c.bf16 %v2741_v14, %v2741_v14  ;;  %v3052_v23 = vsel %vm3050_vm7, %v2788_v12, 0 }
 0x5cf   : > { %v2743_v20 = vpop.f32.mrf.mxu0  ;;  %v2783_v21 = vpop.f32.mrf.mxu1  ;;  %4564 = vmatpush3.bf16.msra.mxu1 %v3058_v16 }
 0x5d0   : > { %4222 = vmatprep.subr.msk.bf16.mxu0 %vm3050_vm7, %v2789_v17  ;;  %4569 = vmatprep.subr.bf16.mxu1 %v4965_v2  ;;  %v4225_v17 = vld [vmem:[%s6132_s19] ss:$0 sm:$0xff] }
 0x5d1   : > { %v2744_v24 = vpop.f32.mrf.mxu0  ;;  %v4542_v25 = vpop.f32.mrf.mxu1  ;;  %3075 = vmatpush1.bf16.msra.mxu0 %v3052_v23 }
 0x5d2   : > { %4566 = vmatmul.mubr.msk.bf16.vlgmr.msra.gmra.mxu1 %vm3046_vm8, %v4888_v18  ;;  %3336 = vmatprep.subr.bf16.mxu0 %v4891_v19 }
 0x5d3   : > { %4570 = vmatpush3.bf16.msra.mxu1 %v4892_v22  ;;  %4585 = vmatprep.mubr.msk.bf16.mxu1 %vm4967_vm0, %v4965_v2 }
 0x5d4   : > { %4223 = vmatmul.mubr.msk.bf16.vlgmr.msra.gmra.mxu0 %vm3046_vm8, %v4888_v18  ;;  %4571 = vmatprep.subr.bf16.mxu1 %v4965_v2 }
 0x5d5   : > { %3337 = vmatpush1.bf16.msra.mxu0 %v4889_v26  ;;  %3368 = vmatprep.mubr.bf16.mxu0 %v4966_v3  ;;  %v4921_v26 = vld [vmem:[%s6135_s22 + $0xa8] ss:$12 sps:$4 sm:$0xff]  }
 0x5d6   : > { %3338 = vmatprep.subr.bf16.mxu0 %v4895_v27  ;;  %v4924_v27 = vld [vmem:[%s6135_s22 + $0xb0] ss:$12 sps:$4 sm:$0xff]  }
 0x5d7   : > { %4572 = vmatpush3.bf16.msra.mxu1 %v4896_v28 }
 0x5d8   : > { %4573 = vmatprep.subr.bf16.mxu1 %v4965_v2 }
 0x5d9   : > { %3339 = vmatpush1.bf16.msra.mxu0 %v4893_v29  ;;  %v4927_v29 = vld [vmem:[%s6135_s22 + $0x94] ss:$12 sps:$4 sm:$0xff]  }
 0x5da   : > { %3340 = vmatprep.subr.bf16.mxu0 %v4899_v30  ;;  %v4925_v30 = vld [vmem:[%s6135_s22 + $0x90] ss:$12 sps:$4 sm:$0xff]  }
 0x5db   : > { %4574 = vmatpush3.bf16.msra.mxu1 %v4900_v31  ;;  %v4928_v31 = vld [vmem:[%s6135_s22 + $0x98] ss:$12 sps:$4 sm:$0xff]  }
 0x5dc   : > { %4575 = vmatprep.subr.bf16.mxu1 %v4965_v2 }
 0x5dd   : > { %3341 = vmatpush1.bf16.msra.mxu0 %v4897_v32  ;;  %v4931_v32 = vld [vmem:[%s6135_s22 + $0x7c] ss:$12 sps:$4 sm:$0xff]  }
 0x5de   : > { %3342 = vmatprep.subr.bf16.mxu0 %v4903_v37  ;;  %v4936_v37 = vld [vmem:[%s6135_s22 + $0x68] ss:$12 sps:$4 sm:$0xff]  }
 0x5df   : > { %4576 = vmatpush3.bf16.msra.mxu1 %v4904_v39  ;;  %v4937_v39 = vld [vmem:[%s6135_s22 + $0x48] ss:$12 sps:$4 sm:$0xff]  }
 0x5e0   : > { %4577 = vmatprep.subr.bf16.mxu1 %v4965_v2 }
 0x5e1   : > { %3343 = vmatpush1.bf16.msra.mxu0 %v4901_v38  ;;  %v4939_v38 = vld [vmem:[%s6135_s22 + $0x4c] ss:$12 sps:$4 sm:$0xff]  }
 0x5e2   : > { %3344 = vmatprep.subr.bf16.mxu0 %v4907_v40  ;;  %v4940_v40 = vld [vmem:[%s6135_s22 + $0x50] ss:$12 sps:$4 sm:$0xff]  }
 0x5e3   : > { %4578 = vmatpush3.bf16.msra.mxu1 %v4908_v42  ;;  %v4941_v42 = vld [vmem:[%s6135_s22 + $0x30] ss:$12 sps:$4 sm:$0xff]  }
 0x5e4   : > { %4579 = vmatprep.subr.bf16.mxu1 %v4965_v2 }
 0x5e5   : > { %3345 = vmatpush1.bf16.msra.mxu0 %v4905_v41  ;;  %v4943_v41 = vld [vmem:[%s6135_s22 + $0x34] ss:$12 sps:$4 sm:$0xff]  }
 0x5e6   : > { %3346 = vmatprep.subr.bf16.mxu0 %v4911_v43  ;;  %v4944_v43 = vld [vmem:[%s6135_s22 + $0x38] ss:$12 sps:$4 sm:$0xff]  }
 0x5e7   : > { %4580 = vmatpush3.bf16.msra.mxu1 %v4912_v45  ;;  %v4945_v45 = vld [vmem:[%s6135_s22 + $0x18] ss:$12 sps:$4 sm:$0xff]  }
 0x5e8   : > { %4581 = vmatprep.subr.bf16.mxu1 %v4965_v2 }
 0x5e9   : > { %3347 = vmatpush1.bf16.msra.mxu0 %v4909_v44  ;;  %v4947_v44 = vld [vmem:[%s6135_s22 + $0x1c] ss:$12 sps:$4 sm:$0xff]  }
 0x5ea   : > { %3348 = vmatprep.subr.bf16.mxu0 %v4915_v46  ;;  %v4948_v46 = vld [vmem:[%s6135_s22 + $0x20] ss:$12 sps:$4 sm:$0xff]  }
 0x5eb   : > { %v3034_v33 = vpop.f32.mrf.mxu1  ;;  %4582 = vmatpush3.bf16.msra.mxu1 %v4916_v48  ;;  %v2991_v53 = vpop.f32.mrf.mxu0  ;;  %v4949_v48 = vld [vmem:[%s6135_s22] ss:$12 sps:$4 sm:$0xff]  }
 0x5ec   : > { %4583 = vmatprep.subr.bf16.mxu1 %v4965_v2 }
 0x5ed   : > { %v4561_v34 = vpop.f32.mrf.mxu1  ;;  %3349 = vmatpush1.bf16.msra.mxu0 %v4913_v47  ;;  %v2993_v54 = vpop.f32.mrf.mxu0  ;;  %v4951_v47 = vld [vmem:[%s6135_s22 + $0x4] ss:$12 sps:$4 sm:$0xff]  }
 0x5ee   : > { %3350 = vmatprep.subr.bf16.mxu0 %v4919_v49  ;;  %v4932_v34 = vld [vmem:[%s6135_s22 + $0x80] ss:$12 sps:$4 sm:$0xff]   ;;  %v4952_v49 = vld [vmem:[%s6135_s22 + $0x8] ss:$12 sps:$4 sm:$0xff]  }
 0x5ef   : > { %v3037_v35 = vpop.f32.mrf.mxu1  ;;  %4584 = vmatpush3.bf16.msra.mxu1 %v4920_v51  ;;  %v2995_v55 = vpop.f32.mrf.mxu0 }
 0x5f0   : > { %4589 = vmatprep.subr.bf16.mxu1 %v4965_v2 }
 0x5f1   : > { %v4562_v36 = vpop.f32.mrf.mxu1  ;;  %3351 = vmatpush1.bf16.msra.mxu0 %v4917_v50  ;;  %v2997_v56 = vpop.f32.mrf.mxu0 }
 0x5f2   : > { %3612 = vmatprep.subr.bf16.mxu0 %v4923_v52  ;;  %v4933_v36 = vld [vmem:[%s6135_s22 + $0x60] ss:$12 sps:$4 sm:$0xff]  }
 0x692   : > { %v3137_v57 = vpop.f32.mrf.mxu1 }
 0x693   : > { %v3138_v60 = vadd.f32 %v3137_v57, %v3034_v33  ;;  %v4929_v33 = vld [vmem:[%s6135_s22 + $0x78] ss:$12 sps:$4 sm:$0xff]  }
 0x694   : > { %v3094_v58 = vpop.f32.mrf.mxu0  ;;  %v4567_v59 = vpop.f32.mrf.mxu1 }
 0x695   : > { %v3095_v61 = vadd.f32 %v3094_v58, %v2991_v53  ;;  %v3155_v7 = vrot.slane %v3138_v60, 1 }
 0x696   : > { %v3096_v62 = vpop.f32.mrf.mxu0  ;;  %v3140_v63 = vpop.f32.mrf.mxu1 }
 0x697   : > { %v3147_v0 = vrot.slane %v3095_v61, 7  ;;  %v3097_v1 = vadd.f32 %v3096_v62, %v2993_v54  ;;  %v3141_v4 = vadd.f32 %v3140_v63, %v3037_v35  ;;  %v4935_v35 = vld [vmem:[%s6135_s22 + $0x64] ss:$12 sps:$4 sm:$0xff]  }
 0x698   : > { %v3098_v5 = vpop.f32.mrf.mxu0  ;;  %v4568_v6 = vpop.f32.mrf.mxu1 }
 0x699   : > { %v3152_v8 = vsel %vm1306_vm1, 0.0, %v3147_v0  ;;  %v3156_v9 = vrot.slane %v3141_v4, 1  ;;  %v3099_v10 = vadd.f32 %v3098_v5, %v2995_v55 }
 0x69a   : > { %v3161_v11 = vadd.f32 %v3152_v8, %v3097_v1  ;;  %v3100_v12 = vpop.f32.mrf.mxu0 }
 0x69b   : > { %v3157_v13 = vsel %vm2269_vm6, %v3155_v7, %v3156_v9  ;;  %v3148_v14 = vrot.slane %v3099_v10, 7  ;;  %v3101_v15 = vadd.f32 %v3100_v12, %v2997_v56  ;;  %v3160_v20 = vsel %vm2269_vm6, %v3156_v9, 0.0 }
 0x69c   : > { %v3163_v16 = vadd.f32 %v3161_v11, %v3157_v13  ;;  %v4953_v13 = vld [vmem:[%s6136_s23] sm:$0xff]  }
 0x69d   : > { %v3149_v18 = vsel %vm1306_vm1, %v3147_v0, %v3148_v14  ;;  %v4250_v0 = vld [vmem:[%s6134_s21] ss:$0 sm:$0xff] }
 0x69e   : > { %v3162_v19 = vadd.f32 %v3149_v18, %v3101_v15  ;;  %v3171_v22 = vadd.f32 %v4225_v17, %v3163_v16 }
 0x6a0   : > { %v3164_v21 = vadd.f32 %v3162_v19, %v3160_v20  ;;  %v3173_v24 = vmax.f32 %v3171_v22, 0.0 }
 0x6a2   : > { %v3172_v23 = vadd.f32 %v4225_v17, %v3164_v21 }
 0x6a4   : > { %v3174_v25 = vmax.f32 %v3172_v23, 0.0 }
 0x6a6   : > { %v3175_v28 = vpack.c.bf16 %v3174_v25, %v3173_v24  ;;  %v4955_v25 = vld [vmem:[%s6136_s23 + $0x10] sm:$0xff]  }
 0x6a8   : > { %3369 = vmatmul.mubr.bf16.vlgmr.msra.gmra.mxu0 %v3175_v28  ;;  %4586 = vmatmul.mubr.bf16.vlgmr.msra.gmra.mxu1 %v3175_v28  ;;  %v3709_v28 = vlaneseq }
 0x6a9   : > { %3613 = vmatpush1.bf16.msra.mxu0 %v4921_v26  ;;  %4590 = vmatpush3.bf16.msra.mxu1 %v4924_v27  ;;  %v4954_v26 = vld [vmem:[%s6136_s23 + $0x8] sm:$0xff]   ;;  %v4956_v27 = vld [vmem:[%s6136_s23 + $0x18] sm:$0xff]  }
 0x6aa   : > { %3614 = vmatprep.subr.bf16.mxu0 %v4927_v29  ;;  %4591 = vmatprep.subr.bf16.mxu1 %v4965_v2  ;;  %v3710_v29 = vshrl.u32 %v3709_v28, 7 }
 0x6ab   : > { %3644 = vmatprep.mubr.bf16.mxu0 %v4966_v3  ;;  %4605 = vmatprep.mubr.msk.bf16.mxu1 %vm4967_vm0, %v4965_v2 }
 0x6ad   : > { %3615 = vmatpush1.bf16.msra.mxu0 %v4925_v30  ;;  %4592 = vmatpush3.bf16.msra.mxu1 %v4928_v31  ;;  %v3719_v30 = vsub.s32 2, %v3710_v29  ;;  %v3711_v31 = vsub.s32 0, %v3710_v29 }
 0x6ae   : > { %3616 = vmatprep.subr.bf16.mxu0 %v4931_v32  ;;  %4593 = vmatprep.subr.bf16.mxu1 %v4965_v2  ;;  %v3707_v32 = vld [vmem:[%s6137_s24] sm:$0x7] }
 0x6b1   : > { %3617 = vmatpush1.bf16.msra.mxu0 %v4929_v33  ;;  %4594 = vmatpush3.bf16.msra.mxu1 %v4932_v34  ;;  %v3715_v33 = vsub.s32 1, %v3710_v29  ;;  %v3720_v34 = vrot.slane %v3707_v32, %v3719_v30 }
 0x6b2   : > { %3618 = vmatprep.subr.bf16.mxu0 %v4935_v35  ;;  %4595 = vmatprep.subr.bf16.mxu1 %v4965_v2  ;;  %v6053_v35 = vrot.slane %v3707_v32, %v3711_v31 }
 0x6b5   : > { %3619 = vmatpush1.bf16.msra.mxu0 %v4933_v36  ;;  %4596 = vmatpush3.bf16.msra.mxu1 %v4936_v37  ;;  %v6055_v37 = vrot.slane %v3707_v32, %v3715_v33 }
 0x6b6   : > { %4597 = vmatprep.subr.bf16.mxu1 %v4965_v2  ;;  %3620 = vmatprep.subr.bf16.mxu0 %v4939_v38 }
 0x6b9   : > { %3621 = vmatpush1.bf16.msra.mxu0 %v4937_v39  ;;  %4598 = vmatpush3.bf16.msra.mxu1 %v4940_v40 }
 0x6ba   : > { %4599 = vmatprep.subr.bf16.mxu1 %v4965_v2  ;;  %3622 = vmatprep.subr.bf16.mxu0 %v4943_v41 }
 0x6bd   : > { %3623 = vmatpush1.bf16.msra.mxu0 %v4941_v42  ;;  %4600 = vmatpush3.bf16.msra.mxu1 %v4944_v43 }
 0x6be   : > { %4601 = vmatprep.subr.bf16.mxu1 %v4965_v2  ;;  %3624 = vmatprep.subr.bf16.mxu0 %v4947_v44 }
 0x6c1   : > { %3625 = vmatpush1.bf16.msra.mxu0 %v4945_v45  ;;  %4602 = vmatpush3.bf16.msra.mxu1 %v4948_v46 }
 0x6c2   : > { %4603 = vmatprep.subr.bf16.mxu1 %v4965_v2  ;;  %3626 = vmatprep.subr.bf16.mxu0 %v4951_v47 }
 0x6c5   : > { %3627 = vmatpush1.bf16.msra.mxu0 %v4949_v48  ;;  %4604 = vmatpush3.bf16.msra.mxu1 %v4952_v49 }
 0x768   : > { %v3370_v50 = vpop.f32.mrf.mxu0  ;;  %v3413_v51 = vpop.f32.mrf.mxu1 }
 0x769   : > { %v3423_v52 = vrot.slane %v3370_v50, 7  ;;  %v3431_v57 = vrot.slane %v3413_v51, 1 }
 0x76a   : > { %v3372_v53 = vpop.f32.mrf.mxu0  ;;  %v4587_v54 = vpop.f32.mrf.mxu1 }
 0x76b   : > { %v3428_v55 = vsel %vm1306_vm1, 0.0, %v3423_v52 }
 0x76c   : > { %v3374_v56 = vpop.f32.mrf.mxu0  ;;  %v3416_v2 = vpop.f32.mrf.mxu1  ;;  %v3437_v60 = vadd.f32 %v3428_v55, %v3372_v53 }
 0x76d   : > { %v3424_v58 = vrot.slane %v3374_v56, 7  ;;  %v3432_v59 = vrot.slane %v3416_v2, 1 }
 0x76e   : > { %v3376_v61 = vpop.f32.mrf.mxu0  ;;  %v4588_v62 = vpop.f32.mrf.mxu1 }
 0x76f   : > { %v3433_v63 = vsel %vm2269_vm6, %v3431_v57, %v3432_v59  ;;  %v3425_v1 = vsel %vm1306_vm1, %v3423_v52, %v3424_v58  ;;  %v3436_v6 = vsel %vm2269_vm6, %v3432_v59, 0.0 }
 0x770   : > { %v3439_v4 = vadd.f32 %v3437_v60, %v3433_v63  ;;  %v3438_v5 = vadd.f32 %v3425_v1, %v3376_v61 }
 0x772   : > { %v3440_v7 = vadd.f32 %v3438_v5, %v3436_v6  ;;  %v3447_v8 = vadd.f32 %v4250_v0, %v3439_v4 }
 0x774   : > { %v3448_v9 = vadd.f32 %v4250_v0, %v3440_v7  ;;  %v3449_v10 = vmax.f32 %v3447_v8, 0.0 }
 0x776   : > { %v3450_v11 = vmax.f32 %v3448_v9, 0.0 }
 0x778   : > { %v3451_v12 = vpack.c.bf16 %v3450_v11, %v3449_v10 }
 0x77a   : > { %3645 = vmatmul.mubr.bf16.vlgmr.msra.gmra.mxu0 %v3451_v12  ;;  %4606 = vmatmul.mubr.bf16.vlgmr.msra.gmra.mxu1 %v3451_v12 }
 0x77b   : > { %3789 = vmatprep.mubr.bf16.mxu0 %v4966_v3  ;;  %4611 = vmatprep.mubr.msk.bf16.mxu1 %vm3744_vm9, %v4953_v13 }
 0x83a   : > { %v3646_v14 = vpop.f32.mrf.mxu0  ;;  %v3689_v15 = vpop.f32.mrf.mxu1 }
 0x83c   : > { %v3648_v16 = vpop.f32.mrf.mxu0  ;;  %v4607_v17 = vpop.f32.mrf.mxu1 }
 0x83e   : > { %v3650_v18 = vpop.f32.mrf.mxu0  ;;  %v3692_v19 = vpop.f32.mrf.mxu1 }
 0x83f   : > { %v3706_v20 = vpack.c.bf16 %v3692_v19, %v3689_v15  ;;  %v3704_v24 = vpack.c.bf16 %v3650_v18, %v3646_v14 }
 0x840   : > { %v3652_v21 = vpop.f32.mrf.mxu0  ;;  %v4608_v22 = vpop.f32.mrf.mxu1 }
 0x841   : > { %v3705_v23 = vpack.c.bf16 %v3652_v21, %v3648_v16  ;;  %4609 = vmatprep.subr.bf16.mxu1 %v3706_v20 }
 0x842   : > { %4610 = vmatpush3.bf16.msra.mxu1 %v3706_v20 }
 0x843   : > { %3771 = vmatprep.subr.bf16.mxu0 %v3705_v23 }
 0x844   : > { %3772 = vmatpush1.bf16.msra.mxu0 %v3704_v24 }
 0x845   : > { %4612 = vmatmul.mubr.msk.bf16.vlgmr.msra.gmra.mxu1 %vm3744_vm9, %v4954_v26 }
 0x846   : > { %4615 = vmatprep.mubr.msk.bf16.mxu1 %vm3744_vm9, %v4955_v25 }
 0x847   : > { %4279 = vmatmul.mubr.msk.bf16.vlgmr.msra.gmra.mxu0 %vm3744_vm9, %v4953_v13 }
 0x848   : > { %3799 = vmatprep.mubr.bf16.mxu0 %v4966_v3 }
 0x84d   : > { %4616 = vmatmul.mubr.msk.bf16.gmra.mxu1 %vm3744_vm9, %v4956_v27 }
 0x84f   : > { %4280 = vmatmul.mubr.msk.bf16.gmra.mxu0 %vm3744_vm9, %v4954_v26 }
 0x850   : > { %3809 = vmatprep.mubr.bf16.mxu0 %v4966_v3 }
 0x857   : > { %4281 = vmatmul.mubr.msk.bf16.gmra.mxu0 %vm3744_vm9, %v4955_v25 }
 0x858   : > { %3819 = vmatprep.mubr.bf16.mxu0 %v4966_v3 }
 0x85f   : > { %4282 = vmatmul.mubr.msk.bf16.gmra.mxu0 %vm3744_vm9, %v4956_v27 }
 0x905   : > { %v4613_v36 = vpop.f32.mrf.mxu1 }
 0x906   : > { %v3873_v3 = vadd.f32 %v4613_v36, %v3720_v34 }
 0x907   : > { %v3791_v38 = vpop.f32.mrf.mxu0  ;;  %v3864_v39 = vpop.f32.mrf.mxu1 }
 0x908   : > { %v3792_v40 = vadd.f32 %v3791_v38, %v6053_v35  ;;  %3904 = vst.msk [vmem:[%s6060_s0 + $0x40] sm:$0xff] %vm3897_vm10, %v3873_v3  ;;  %v3865_v41 = vadd.f32 %v3864_v39, %v3720_v34 }
 0x909   : > { %v3793_v42 = vpop.f32.mrf.mxu0  ;;  %v4614_v43 = vpop.f32.mrf.mxu1 }
 0x90a   : > { %3895 = vst [vmem:[%s6060_s0] sm:$0xff] %v3792_v40  ;;  %v3794_v44 = vadd.f32 %v3793_v42, %v6055_v37  ;;  %3898 = vst.msk [vmem:[%s6060_s0 + $0x10] sm:$0xff] %vm3897_vm10, %v3865_v41  ;;  %v3876_v45 = vadd.f32 %v4614_v43, %v3720_v34 }
 0x90b   : > { %v3795_v46 = vpop.f32.mrf.mxu0  ;;  %v3867_v47 = vpop.f32.mrf.mxu1 }
 0x90c   : > { %3896 = vst [vmem:[%s6060_s0 + $0x8] sm:$0xff] %v3794_v44  ;;  %v3796_v48 = vadd.f32 %v3795_v46, %v6053_v35  ;;  %3907 = vst.msk [vmem:[%s6060_s0 + $0x58] sm:$0xff] %vm3897_vm10, %v3876_v45  ;;  %v3868_v49 = vadd.f32 %v3867_v47, %v3720_v34 }
 0x90d   : > { %v3797_v50 = vpop.f32.mrf.mxu0  ;;  %v4617_v51 = vpop.f32.mrf.mxu1 }
 0x90e   : > { %3899 = vst [vmem:[%s6060_s0 + $0x18] sm:$0xff] %v3796_v48  ;;  %v3798_v52 = vadd.f32 %v3797_v50, %v6055_v37  ;;  %3901 = vst.msk [vmem:[%s6060_s0 + $0x28] sm:$0xff] %vm3897_vm10, %v3868_v49  ;;  %v3889_v53 = vadd.f32 %v4617_v51, %v3720_v34 }
 0x90f   : > { %v3801_v54 = vpop.f32.mrf.mxu0  ;;  %v3880_v55 = vpop.f32.mrf.mxu1 }
 0x910   : > { %3900 = vst [vmem:[%s6060_s0 + $0x20] sm:$0xff] %v3798_v52  ;;  %v3802_v56 = vadd.f32 %v3801_v54, %v6053_v35  ;;  %3916 = vst.msk [vmem:[%s6060_s0 + $0xa0] sm:$0xff] %vm3897_vm10, %v3889_v53  ;;  %v3881_v2 = vadd.f32 %v3880_v55, %v3720_v34 }
 0x911   : > { %v3803_v57 = vpop.f32.mrf.mxu0  ;;  %v4618_v58 = vpop.f32.mrf.mxu1 }
 0x912   : > { %3902 = vst [vmem:[%s6060_s0 + $0x30] sm:$0xff] %v3802_v56  ;;  %v3804_v59 = vadd.f32 %v3803_v57, %v6055_v37  ;;  %3910 = vst.msk [vmem:[%s6060_s0 + $0x70] sm:$0xff] %vm3897_vm10, %v3881_v2  ;;  %v3892_v60 = vadd.f32 %v4618_v58, %v3720_v34 }
 0x913   : > { %v3805_v61 = vpop.f32.mrf.mxu0  ;;  %v3883_v62 = vpop.f32.mrf.mxu1 }
 0x914   : > { %3903 = vst [vmem:[%s6060_s0 + $0x38] sm:$0xff] %v3804_v59  ;;  %v3806_v63 = vadd.f32 %v3805_v61, %v6053_v35  ;;  %3919 = vst.msk [vmem:[%s6060_s0 + $0xb8] sm:$0xff] %vm3897_vm10, %v3892_v60  ;;  %v3884_v0 = vadd.f32 %v3883_v62, %v3720_v34 }
 0x915   : > { %v3807_v1 = vpop.f32.mrf.mxu0 }
 0x916   : > { %3905 = vst [vmem:[%s6060_s0 + $0x48] sm:$0xff] %v3806_v63  ;;  %v3808_v4 = vadd.f32 %v3807_v1, %v6055_v37  ;;  %3913 = vst.msk [vmem:[%s6060_s0 + $0x88] sm:$0xff] %vm3897_vm10, %v3884_v0 }
 0x917   : > { %v3811_v5 = vpop.f32.mrf.mxu0 }
 0x918   : > { %3906 = vst [vmem:[%s6060_s0 + $0x50] sm:$0xff] %v3808_v4  ;;  %v3812_v6 = vadd.f32 %v3811_v5, %v6053_v35 }
 0x919   : > { %v3813_v7 = vpop.f32.mrf.mxu0 }
 0x91a   : > { %3908 = vst [vmem:[%s6060_s0 + $0x60] sm:$0xff] %v3812_v6  ;;  %v3814_v8 = vadd.f32 %v3813_v7, %v6055_v37 }
 0x91b   : > { %v3815_v9 = vpop.f32.mrf.mxu0 }
 0x91c   : > { %3909 = vst [vmem:[%s6060_s0 + $0x68] sm:$0xff] %v3814_v8  ;;  %v3816_v10 = vadd.f32 %v3815_v9, %v6053_v35 }
 0x91d   : > { %v3817_v11 = vpop.f32.mrf.mxu0 }
 0x91e   : > { %3911 = vst [vmem:[%s6060_s0 + $0x78] sm:$0xff] %v3816_v10  ;;  %v3818_v12 = vadd.f32 %v3817_v11, %v6055_v37 }
 0x91f   : > { %v3821_v13 = vpop.f32.mrf.mxu0 }
 0x920   : > { %3912 = vst [vmem:[%s6060_s0 + $0x80] sm:$0xff] %v3818_v12  ;;  %v3822_v14 = vadd.f32 %v3821_v13, %v6053_v35 }
 0x921   : > { %v3823_v15 = vpop.f32.mrf.mxu0 }
 0x922   : > { %3914 = vst [vmem:[%s6060_s0 + $0x90] sm:$0xff] %v3822_v14  ;;  %v3824_v16 = vadd.f32 %v3823_v15, %v6055_v37 }
 0x923   : > { %v3825_v17 = vpop.f32.mrf.mxu0 }
 0x924   : > { %3915 = vst [vmem:[%s6060_s0 + $0x98] sm:$0xff] %v3824_v16  ;;  %v3826_v18 = vadd.f32 %v3825_v17, %v6053_v35 }
 0x925   : > { %v3827_v19 = vpop.f32.mrf.mxu0 }
 0x926   : > { %3917 = vst [vmem:[%s6060_s0 + $0xa8] sm:$0xff] %v3826_v18  ;;  %v3828_v20 = vadd.f32 %v3827_v19, %v6055_v37 }
 0x928   : > { %3918 = vst [vmem:[%s6060_s0 + $0xb0] sm:$0xff] %v3828_v20 }
 0x929 PF: > { %s35_s29 = sadd.s32 1, %s4963_s29  }
 0x92a   : > { %p32_p4 = scmp.ge.s32.totalorder %s35_s29, 4  }
 0x92c   :  { %34 = sbr.rel (!%p32_p4) target bundleno = 11 (0xb), region = 159 }

</bundles_post_ra>
